<compile_context>
chip_gen: v6e
topology: v6e:2x2x1
jax: 0.10.0
libtpu: 0.0.40
codegen_flags: <defaults>
</compile_context>

<pallas_src>
import functools
import math

import jax
import jax.numpy as jnp
from jax.experimental import pallas as pl
from jax.experimental.pallas import tpu as pltpu

_EPS = 1e-5  # torch.nn.LayerNorm default eps
_INV_SQRT2 = 1.0 / math.sqrt(2.0)


# ----------------------------- in-kernel helpers -----------------------------
def _erf(x):
    # Abramowitz & Stegun 7.1.26 (|err| < 1.5e-7): exact-GELU semantics of
    # torch.nn.GELU() to well below fp32 noise (one EUP exp + a few VALU ops).
    a1, a2, a3, a4, a5 = 0.254829592, -0.284496736, 1.421413741, -1.453152027, 1.061405429
    p = 0.3275911
    sign = jnp.where(x >= 0.0, 1.0, -1.0)
    ax = jnp.abs(x)
    t = 1.0 / (1.0 + p * ax)
    poly = ((((a5 * t + a4) * t + a3) * t + a2) * t + a1) * t
    return sign * (1.0 - poly * jnp.exp(-ax * ax))


def _gelu(x):
    return 0.5 * x * (1.0 + _erf(x * _INV_SQRT2))


def _layernorm_cs(v, gamma, beta, inv_c):
    # LayerNorm over the channel axis (axis 0) of a (C, S) slab.
    # Two-pass (centered) variance: avoids catastrophic cancellation of E[x^2]-E[x]^2.
    mean = jnp.sum(v, axis=0, keepdims=True) * inv_c
    xc = v - mean
    var = jnp.sum(xc * xc, axis=0, keepdims=True) * inv_c
    return xc * jax.lax.rsqrt(var + _EPS) * gamma + beta


# --------------------------------- kernel ------------------------------------
def _self_attention_kernel(x_ref, g1_ref, b1_ref, wqkv_ref, bqkv_ref,
                           wo_ref, bo_ref, g2_ref, b2_ref,
                           w1_ref, fb1_ref, w2_ref, fb2_ref, o_ref,
                           qkv_ref, attn_ref,
                           *, num_heads, q_block, pv_bf16):
    x = x_ref[0]                                       # (C, S): channels x tokens
    c, s = x.shape
    hd = c // num_heads
    n_qb = s // q_block
    inv_c = 1.0 / c

    # ---- LayerNorm (self.ln) ----
    x_ln = _layernorm_cs(x, g1_ref[...], b1_ref[...], inv_c)

    # ---- QKV projection: in_proj_weight (3C, C) @ x_ln (C, S) -> (3C, S) ----
    # The 1/sqrt(hd) query scale is already folded into the first C rows of
    # wqkv / bqkv (see fold_attention_scale), so no in-kernel scale multiply.
    qkv_ref[...] = (jnp.dot(wqkv_ref[...], x_ln, preferred_element_type=jnp.float32)
                    + bqkv_ref[...])

    # ---- per-head attention, tiled over query blocks; results -> attn_ref slab ----
    def head_body(h, carry):
        row_q = pl.multiple_of(h * hd, hd)
        row_k = pl.multiple_of(c + h * hd, hd)
        row_v = pl.multiple_of(2 * c + h * hd, hd)
        kh = qkv_ref[pl.ds(row_k, hd), :]              # (hd, S)
        vh = qkv_ref[pl.ds(row_v, hd), :]              # (hd, S)
        vh_mm = vh.astype(jnp.bfloat16) if pv_bf16 else vh

        # Static inner loop over query tiles: each tile's (Sq,S) scores / probs
        # die at the store below, keeping the live set ~32 vregs.
        for qb in range(n_qb):
            col = qb * q_block                         # static lane offset
            q_blk = qkv_ref[pl.ds(row_q, hd), pl.ds(col, q_block)]   # (hd, Sq)
            # scores[i, j] = q_i . k_j  -> (Sq, S), softmax over lanes (keys)
            scores = jax.lax.dot_general(
                q_blk, kh, (((0,), (0,)), ((), ())),
                preferred_element_type=jnp.float32)
            m = jnp.max(scores, axis=-1, keepdims=True)
            p = jnp.exp(scores - m)
            inv_l = pl.reciprocal(jnp.sum(p, axis=-1, keepdims=True), approx=True)
            p = p * inv_l                              # EUP reciprocal + VALU mul, no divide
            p_mm = p.astype(jnp.bfloat16) if pv_bf16 else p
            # out[d, i] = sum_j V[d, j] * P[i, j]  -> (hd, Sq)
            out = jax.lax.dot_general(
                vh_mm, p_mm, (((1,), (1,)), ((), ())),
                preferred_element_type=jnp.float32)
            attn_ref[pl.ds(row_q, hd), pl.ds(col, q_block)] = out
        return carry

    jax.lax.fori_loop(0, num_heads, head_body, 0)

    # ---- output projection + residual 1 ----
    attn_out = (jnp.dot(wo_ref[...], attn_ref[...], preferred_element_type=jnp.float32)
                + bo_ref[...])
    h1 = attn_out + x                                  # (C, S)

    # ---- ff_self: LayerNorm -> Linear -> GELU -> Linear ----
    f = _layernorm_cs(h1, g2_ref[...], b2_ref[...], inv_c)
    f = jnp.dot(w1_ref[...], f, preferred_element_type=jnp.float32) + fb1_ref[...]
    f = _gelu(f)
    f = jnp.dot(w2_ref[...], f, preferred_element_type=jnp.float32) + fb2_ref[...]

    # ---- residual 2; store lane-dense (C, S) ----
    o_ref[0] = f + h1


# ------------------------------ wrapper ---------------------------------------
def fold_attention_scale(params, *, num_heads=4):
    """Fold the 1/sqrt(head_dim) query scale of nn.MultiheadAttention into the Q
    rows of the in-proj weight/bias.  Call ONCE at parameter-build time."""
    c = params["wo"].shape[0]
    scale = 1.0 / math.sqrt(c // num_heads)
    out = dict(params)
    out["wqkv"] = params["wqkv"].at[:c].multiply(scale)
    out["bqkv"] = params["bqkv"].at[:c].multiply(scale)
    return out


def self_attention_forward(params, x, *, num_heads=4, q_block=64, pv_bf16=False):
    """x: (N, C, H, W) float array. Returns (N, C, H, W).
    `params` must already have the query scale folded in (fold_attention_scale).
    (y/cond is unused in the reference forward and therefore ignored here.)"""
    n, c, h, w = x.shape
    s = h * w
    assert c % num_heads == 0, (c, num_heads)
    if s % q_block != 0:
        q_block = s
    x_cs = x.reshape(n, c, s).astype(jnp.float32)      # free view: NCHW -> (N, C, S)

    def full(shape):
        return pl.BlockSpec(shape, lambda i, _ndim=len(shape): (0,) * _ndim)

    # Advisory cost hint (kernel is launch/DMA dominated; helps XLA scheduling).
    macs = n * (6 * c * c * s + 2 * c * s * s)
    cost = pl.CostEstimate(
        flops=2 * macs,
        transcendentals=n * (num_heads * s * s + 2 * c * s),
        bytes_accessed=4 * (2 * n * c * s + 6 * c * c + 10 * c),
    )

    out = pl.pallas_call(
        functools.partial(_self_attention_kernel, num_heads=num_heads,
                          q_block=q_block, pv_bf16=pv_bf16),
        out_shape=jax.ShapeDtypeStruct((n, c, s), jnp.float32),
        grid=(n,),
        in_specs=[
            pl.BlockSpec((1, c, s), lambda i: (i, 0, 0)),   # x (per-sample, lane-dense)
            full((c, 1)), full((c, 1)),                     # ln gamma / beta
            full((3 * c, c)), full((3 * c, 1)),             # in_proj weight / bias (scale folded)
            full((c, c)), full((c, 1)),                     # out_proj weight / bias
            full((c, 1)), full((c, 1)),                     # ff LayerNorm gamma / beta
            full((c, c)), full((c, 1)),                     # ff Linear1 weight / bias
            full((c, c)), full((c, 1)),                     # ff Linear2 weight / bias
        ],
        out_specs=pl.BlockSpec((1, c, s), lambda i: (i, 0, 0)),
        scratch_shapes=[
            pltpu.VMEM((3 * c, s), jnp.float32),            # qkv slab
            pltpu.VMEM((c, s), jnp.float32),                # attention-output slab
        ],
        compiler_params=pltpu.CompilerParams(dimension_semantics=("parallel",)),
        cost_estimate=cost,
    )(x_cs,
      params["ln1_g"], params["ln1_b"],
      params["wqkv"], params["bqkv"],
      params["wo"], params["bo"],
      params["ln2_g"], params["ln2_b"],
      params["w1"], params["b1"],
      params["w2"], params["b2"])
    return out.reshape(n, c, h, w)                     # free view back to NCHW


# ----------------------------------- main -------------------------------------
if __name__ == "__main__":
    key = jax.random.PRNGKey(0)
    N, C, H, W = 2, 32, 16, 16          # channels divisible by 4 heads; S = 256
    ks = jax.random.split(key, 9)

    def u(k, shape, fan_in):
        bound = 1.0 / math.sqrt(fan_in)
        return jax.random.uniform(k, shape, jnp.float32, -bound, bound)

    params = {
        # self.ln = LayerNorm([C])
        "ln1_g": jnp.ones((C, 1), jnp.float32),
        "ln1_b": jnp.zeros((C, 1), jnp.float32),
        # nn.MultiheadAttention(C, 4): in_proj (3C, C) + bias, out_proj (C, C) + bias
        "wqkv": u(ks[0], (3 * C, C), C),
        "bqkv": u(ks[1], (3 * C, 1), C),
        "wo": u(ks[2], (C, C), C),
        "bo": u(ks[3], (C, 1), C),
        # ff_self = [LayerNorm(C), Linear(C, C), GELU, Linear(C, C)]
        "ln2_g": jnp.ones((C, 1), jnp.float32),
        "ln2_b": jnp.zeros((C, 1), jnp.float32),
        "w1": u(ks[4], (C, C), C),
        "b1": u(ks[5], (C, 1), C),
        "w2": u(ks[6], (C, C), C),
        "b2": u(ks[7], (C, 1), C),
    }
    # Fold the 1/sqrt(head_dim) query scale into the params once (build time).
    params = fold_attention_scale(params, num_heads=4)

    x = jax.random.normal(ks[8], (N, C, H, W), jnp.float32)

    out = self_attention_forward(params, x, num_heads=4)
    out = jax.block_until_ready(out)
    assert out.shape == (N, C, H, W), out.shape
    assert bool(jnp.all(jnp.isfinite(out)))
    print("KERNEL_OK")
</pallas_src>

<mosaic_0001>
module attributes {stable_mosaic.version = 11 : i64} {
  func.func @_self_attention_kernel(%arg0: i32, %arg1: memref<1x32x256xf32, #tpu.memory_space<vmem>>, %arg2: memref<32x1xf32, #tpu.memory_space<vmem>>, %arg3: memref<32x1xf32, #tpu.memory_space<vmem>>, %arg4: memref<96x32xf32, #tpu.memory_space<vmem>>, %arg5: memref<96x1xf32, #tpu.memory_space<vmem>>, %arg6: memref<32x32xf32, #tpu.memory_space<vmem>>, %arg7: memref<32x1xf32, #tpu.memory_space<vmem>>, %arg8: memref<32x1xf32, #tpu.memory_space<vmem>>, %arg9: memref<32x1xf32, #tpu.memory_space<vmem>>, %arg10: memref<32x32xf32, #tpu.memory_space<vmem>>, %arg11: memref<32x1xf32, #tpu.memory_space<vmem>>, %arg12: memref<32x32xf32, #tpu.memory_space<vmem>>, %arg13: memref<32x1xf32, #tpu.memory_space<vmem>>, %arg14: memref<1x32x256xf32, #tpu.memory_space<vmem>>, %arg15: memref<96x256xf32, #tpu.memory_space<vmem>>, %arg16: memref<32x256xf32, #tpu.memory_space<vmem>>) attributes {dimension_semantics = [#tpu.dimension_semantics<parallel>], iteration_bounds = array<i64: 2>, scalar_prefetch = 0 : i64, scratch_operands = 2 : i64, tpu.core_type = #tpu.core_type<tc>, window_params = [{transform_indices = @transform_0, window_bounds = array<i64: 1, 32, 256>}, {pipeline_mode = #tpu.pipeline_mode<synchronous>, transform_indices = @transform_1, window_bounds = array<i64: 32, 1>}, {pipeline_mode = #tpu.pipeline_mode<synchronous>, transform_indices = @transform_2, window_bounds = array<i64: 32, 1>}, {pipeline_mode = #tpu.pipeline_mode<synchronous>, transform_indices = @transform_3, window_bounds = array<i64: 96, 32>}, {pipeline_mode = #tpu.pipeline_mode<synchronous>, transform_indices = @transform_4, window_bounds = array<i64: 96, 1>}, {pipeline_mode = #tpu.pipeline_mode<synchronous>, transform_indices = @transform_5, window_bounds = array<i64: 32, 32>}, {pipeline_mode = #tpu.pipeline_mode<synchronous>, transform_indices = @transform_6, window_bounds = array<i64: 32, 1>}, {pipeline_mode = #tpu.pipeline_mode<synchronous>, transform_indices = @transform_7, window_bounds = array<i64: 32, 1>}, {pipeline_mode = #tpu.pipeline_mode<synchronous>, transform_indices = @transform_8, window_bounds = array<i64: 32, 1>}, {pipeline_mode = #tpu.pipeline_mode<synchronous>, transform_indices = @transform_9, window_bounds = array<i64: 32, 32>}, {pipeline_mode = #tpu.pipeline_mode<synchronous>, transform_indices = @transform_10, window_bounds = array<i64: 32, 1>}, {pipeline_mode = #tpu.pipeline_mode<synchronous>, transform_indices = @transform_11, window_bounds = array<i64: 32, 32>}, {pipeline_mode = #tpu.pipeline_mode<synchronous>, transform_indices = @transform_12, window_bounds = array<i64: 32, 1>}, {transform_indices = @transform_13, window_bounds = array<i64: 1, 32, 256>}]} {
    %c0 = arith.constant 0 : index
    %c0_0 = arith.constant 0 : index
    %c0_1 = arith.constant 0 : index
    %0 = vector.load %arg1[%c0, %c0_0, %c0_1] : memref<1x32x256xf32, #tpu.memory_space<vmem>>, vector<1x32x256xf32>
    %1 = vector.shape_cast %0 : vector<1x32x256xf32> to vector<32x256xf32>
    %c0_2 = arith.constant 0 : index
    %c0_3 = arith.constant 0 : index
    %2 = vector.load %arg2[%c0_2, %c0_3] : memref<32x1xf32, #tpu.memory_space<vmem>>, vector<32x1xf32>
    %c0_4 = arith.constant 0 : index
    %c0_5 = arith.constant 0 : index
    %3 = vector.load %arg3[%c0_4, %c0_5] : memref<32x1xf32, #tpu.memory_space<vmem>>, vector<32x1xf32>
    %cst = arith.constant dense<0.000000e+00> : vector<256xf32>
    %4 = vector.multi_reduction <add>, %1, %cst [0] : vector<32x256xf32> to vector<256xf32>
    %5 = vector.shape_cast %4 : vector<256xf32> to vector<1x256xf32>
    %cst_6 = arith.constant 3.125000e-02 : f32
    %6 = vector.broadcast %cst_6 : f32 to vector<1x256xf32>
    %7 = arith.mulf %5, %6 : vector<1x256xf32>
    %8 = vector.broadcast %7 : vector<1x256xf32> to vector<32x256xf32>
    %9 = arith.subf %1, %8 : vector<32x256xf32>
    %10 = arith.mulf %9, %9 : vector<32x256xf32>
    %cst_7 = arith.constant dense<0.000000e+00> : vector<256xf32>
    %11 = vector.multi_reduction <add>, %10, %cst_7 [0] : vector<32x256xf32> to vector<256xf32>
    %12 = vector.shape_cast %11 : vector<256xf32> to vector<1x256xf32>
    %cst_8 = arith.constant 3.125000e-02 : f32
    %13 = vector.broadcast %cst_8 : f32 to vector<1x256xf32>
    %14 = arith.mulf %12, %13 : vector<1x256xf32>
    %cst_9 = arith.constant 9.99999974E-6 : f32
    %15 = vector.broadcast %cst_9 : f32 to vector<1x256xf32>
    %16 = arith.addf %14, %15 : vector<1x256xf32>
    %17 = math.rsqrt %16 : vector<1x256xf32>
    %18 = vector.broadcast %17 : vector<1x256xf32> to vector<32x256xf32>
    %19 = arith.mulf %9, %18 : vector<32x256xf32>
    %20 = vector.broadcast %2 : vector<32x1xf32> to vector<32x256xf32>
    %21 = arith.mulf %19, %20 : vector<32x256xf32>
    %22 = vector.broadcast %3 : vector<32x1xf32> to vector<32x256xf32>
    %23 = arith.addf %21, %22 : vector<32x256xf32>
    %c0_10 = arith.constant 0 : index
    %c0_11 = arith.constant 0 : index
    %24 = vector.load %arg4[%c0_10, %c0_11] : memref<96x32xf32, #tpu.memory_space<vmem>>, vector<96x32xf32>
    %cst_12 = arith.constant dense<0.000000e+00> : vector<96x256xf32>
    %25 = tpu.matmul %24, %23, %cst_12 {dimension_numbers = #tpu.dot_dimension_numbers<[1], [0], [0], [1], [0, 0, 1, 1], [], []>} : vector<96x32xf32>, vector<32x256xf32>, vector<96x256xf32> -> vector<96x256xf32>
    %c0_13 = arith.constant 0 : index
    %c0_14 = arith.constant 0 : index
    %26 = vector.load %arg5[%c0_13, %c0_14] : memref<96x1xf32, #tpu.memory_space<vmem>>, vector<96x1xf32>
    %27 = vector.broadcast %26 : vector<96x1xf32> to vector<96x256xf32>
    %28 = arith.addf %25, %27 : vector<96x256xf32>
    %c0_15 = arith.constant 0 : index
    %c0_16 = arith.constant 0 : index
    %29 = vector.load %arg15[%c0_15, %c0_16] : memref<96x256xf32, #tpu.memory_space<vmem>>, vector<96x256xf32>
    tpu.vector_store %arg15[%c0_15, %c0_16], %28 {strides = array<i32>} : memref<96x256xf32, #tpu.memory_space<vmem>>, vector<96x256xf32>,
    %c0_i32 = arith.constant 0 : i32
    %c4_i32 = arith.constant 4 : i32
    %30 = arith.addi %c0_i32, %c4_i32 : i32
    %c1_i32 = arith.constant 1 : i32
    scf.for %arg17 = %c0_i32 to %30 step %c1_i32  : i32 {
      %c8_i32 = arith.constant 8 : i32
      %115 = arith.muli %arg17, %c8_i32 : i32
      %116 = tpu.assume_multiple %115, 8 : i32
      %c8_i32_63 = arith.constant 8 : i32
      %117 = arith.muli %arg17, %c8_i32_63 : i32
      %c32_i32 = arith.constant 32 : i32
      %118 = arith.addi %c32_i32, %117 : i32
      %119 = tpu.assume_multiple %118, 8 : i32
      %c8_i32_64 = arith.constant 8 : i32
      %120 = arith.muli %arg17, %c8_i32_64 : i32
      %c64_i32 = arith.constant 64 : i32
      %121 = arith.addi %c64_i32, %120 : i32
      %122 = tpu.assume_multiple %121, 8 : i32
      %123 = arith.index_cast %119 : i32 to index
      %c0_65 = arith.constant 0 : index
      %124 = vector.load %arg15[%123, %c0_65] : memref<96x256xf32, #tpu.memory_space<vmem>>, vector<8x256xf32>
      %125 = arith.index_cast %122 : i32 to index
      %c0_66 = arith.constant 0 : index
      %126 = vector.load %arg15[%125, %c0_66] : memref<96x256xf32, #tpu.memory_space<vmem>>, vector<8x256xf32>
      %127 = arith.index_cast %116 : i32 to index
      %c0_67 = arith.constant 0 : index
      %128 = vector.load %arg15[%127, %c0_67] : memref<96x256xf32, #tpu.memory_space<vmem>>, vector<8x64xf32>
      %cst_68 = arith.constant dense<0.000000e+00> : vector<64x256xf32>
      %129 = tpu.matmul %128, %124, %cst_68 {dimension_numbers = #tpu.dot_dimension_numbers<[0], [0], [1], [1], [0, 1, 1, 1], [], []>} : vector<8x64xf32>, vector<8x256xf32>, vector<64x256xf32> -> vector<64x256xf32>
      %cst_69 = arith.constant dense<0xFF800000> : vector<64xf32>
      %130 = vector.multi_reduction <maximumf>, %129, %cst_69 [1] : vector<64x256xf32> to vector<64xf32>
      %131 = vector.shape_cast %130 : vector<64xf32> to vector<64x1xf32>
      %132 = vector.broadcast %131 : vector<64x1xf32> to vector<64x256xf32>
      %133 = arith.subf %129, %132 : vector<64x256xf32>
      %134 = math.exp %133 : vector<64x256xf32>
      %cst_70 = arith.constant dense<0.000000e+00> : vector<64xf32>
      %135 = vector.multi_reduction <add>, %134, %cst_70 [1] : vector<64x256xf32> to vector<64xf32>
      %136 = vector.shape_cast %135 : vector<64xf32> to vector<64x1xf32>
      %137 = tpu.reciprocal %136 {approx = true} : vector<64x1xf32> -> vector<64x1xf32>
      %138 = vector.broadcast %137 : vector<64x1xf32> to vector<64x256xf32>
      %139 = arith.mulf %134, %138 : vector<64x256xf32>
      %cst_71 = arith.constant dense<0.000000e+00> : vector<8x64xf32>
      %140 = tpu.matmul %126, %139, %cst_71 {dimension_numbers = #tpu.dot_dimension_numbers<[1], [1], [0], [0], [0, 0, 1, 0], [], []>} : vector<8x256xf32>, vector<64x256xf32>, vector<8x64xf32> -> vector<8x64xf32>
      %141 = arith.index_cast %116 : i32 to index
      %c0_72 = arith.constant 0 : index
      %142 = vector.load %arg16[%141, %c0_72] : memref<32x256xf32, #tpu.memory_space<vmem>>, vector<8x64xf32>
      tpu.vector_store %arg16[%141, %c0_72], %140 {strides = array<i32>} : memref<32x256xf32, #tpu.memory_space<vmem>>, vector<8x64xf32>,
      %143 = arith.index_cast %116 : i32 to index
      %c64 = arith.constant 64 : index
      %144 = vector.load %arg15[%143, %c64] : memref<96x256xf32, #tpu.memory_space<vmem>>, vector<8x64xf32>
      %cst_73 = arith.constant dense<0.000000e+00> : vector<64x256xf32>
      %145 = tpu.matmul %144, %124, %cst_73 {dimension_numbers = #tpu.dot_dimension_numbers<[0], [0], [1], [1], [0, 1, 1, 1], [], []>} : vector<8x64xf32>, vector<8x256xf32>, vector<64x256xf32> -> vector<64x256xf32>
      %cst_74 = arith.constant dense<0xFF800000> : vector<64xf32>
      %146 = vector.multi_reduction <maximumf>, %145, %cst_74 [1] : vector<64x256xf32> to vector<64xf32>
      %147 = vector.shape_cast %146 : vector<64xf32> to vector<64x1xf32>
      %148 = vector.broadcast %147 : vector<64x1xf32> to vector<64x256xf32>
      %149 = arith.subf %145, %148 : vector<64x256xf32>
      %150 = math.exp %149 : vector<64x256xf32>
      %cst_75 = arith.constant dense<0.000000e+00> : vector<64xf32>
      %151 = vector.multi_reduction <add>, %150, %cst_75 [1] : vector<64x256xf32> to vector<64xf32>
      %152 = vector.shape_cast %151 : vector<64xf32> to vector<64x1xf32>
      %153 = tpu.reciprocal %152 {approx = true} : vector<64x1xf32> -> vector<64x1xf32>
      %154 = vector.broadcast %153 : vector<64x1xf32> to vector<64x256xf32>
      %155 = arith.mulf %150, %154 : vector<64x256xf32>
      %cst_76 = arith.constant dense<0.000000e+00> : vector<8x64xf32>
      %156 = tpu.matmul %126, %155, %cst_76 {dimension_numbers = #tpu.dot_dimension_numbers<[1], [1], [0], [0], [0, 0, 1, 0], [], []>} : vector<8x256xf32>, vector<64x256xf32>, vector<8x64xf32> -> vector<8x64xf32>
      %157 = arith.index_cast %116 : i32 to index
      %c64_77 = arith.constant 64 : index
      %158 = vector.load %arg16[%157, %c64_77] : memref<32x256xf32, #tpu.memory_space<vmem>>, vector<8x64xf32>
      tpu.vector_store %arg16[%157, %c64_77], %156 {strides = array<i32>} : memref<32x256xf32, #tpu.memory_space<vmem>>, vector<8x64xf32>,
      %159 = arith.index_cast %116 : i32 to index
      %c128 = arith.constant 128 : index
      %160 = vector.load %arg15[%159, %c128] : memref<96x256xf32, #tpu.memory_space<vmem>>, vector<8x64xf32>
      %cst_78 = arith.constant dense<0.000000e+00> : vector<64x256xf32>
      %161 = tpu.matmul %160, %124, %cst_78 {dimension_numbers = #tpu.dot_dimension_numbers<[0], [0], [1], [1], [0, 1, 1, 1], [], []>} : vector<8x64xf32>, vector<8x256xf32>, vector<64x256xf32> -> vector<64x256xf32>
      %cst_79 = arith.constant dense<0xFF800000> : vector<64xf32>
      %162 = vector.multi_reduction <maximumf>, %161, %cst_79 [1] : vector<64x256xf32> to vector<64xf32>
      %163 = vector.shape_cast %162 : vector<64xf32> to vector<64x1xf32>
      %164 = vector.broadcast %163 : vector<64x1xf32> to vector<64x256xf32>
      %165 = arith.subf %161, %164 : vector<64x256xf32>
      %166 = math.exp %165 : vector<64x256xf32>
      %cst_80 = arith.constant dense<0.000000e+00> : vector<64xf32>
      %167 = vector.multi_reduction <add>, %166, %cst_80 [1] : vector<64x256xf32> to vector<64xf32>
      %168 = vector.shape_cast %167 : vector<64xf32> to vector<64x1xf32>
      %169 = tpu.reciprocal %168 {approx = true} : vector<64x1xf32> -> vector<64x1xf32>
      %170 = vector.broadcast %169 : vector<64x1xf32> to vector<64x256xf32>
      %171 = arith.mulf %166, %170 : vector<64x256xf32>
      %cst_81 = arith.constant dense<0.000000e+00> : vector<8x64xf32>
      %172 = tpu.matmul %126, %171, %cst_81 {dimension_numbers = #tpu.dot_dimension_numbers<[1], [1], [0], [0], [0, 0, 1, 0], [], []>} : vector<8x256xf32>, vector<64x256xf32>, vector<8x64xf32> -> vector<8x64xf32>
      %173 = arith.index_cast %116 : i32 to index
      %c128_82 = arith.constant 128 : index
      %174 = vector.load %arg16[%173, %c128_82] : memref<32x256xf32, #tpu.memory_space<vmem>>, vector<8x64xf32>
      tpu.vector_store %arg16[%173, %c128_82], %172 {strides = array<i32>} : memref<32x256xf32, #tpu.memory_space<vmem>>, vector<8x64xf32>,
      %175 = arith.index_cast %116 : i32 to index
      %c192 = arith.constant 192 : index
      %176 = vector.load %arg15[%175, %c192] : memref<96x256xf32, #tpu.memory_space<vmem>>, vector<8x64xf32>
      %cst_83 = arith.constant dense<0.000000e+00> : vector<64x256xf32>
      %177 = tpu.matmul %176, %124, %cst_83 {dimension_numbers = #tpu.dot_dimension_numbers<[0], [0], [1], [1], [0, 1, 1, 1], [], []>} : vector<8x64xf32>, vector<8x256xf32>, vector<64x256xf32> -> vector<64x256xf32>
      %cst_84 = arith.constant dense<0xFF800000> : vector<64xf32>
      %178 = vector.multi_reduction <maximumf>, %177, %cst_84 [1] : vector<64x256xf32> to vector<64xf32>
      %179 = vector.shape_cast %178 : vector<64xf32> to vector<64x1xf32>
      %180 = vector.broadcast %179 : vector<64x1xf32> to vector<64x256xf32>
      %181 = arith.subf %177, %180 : vector<64x256xf32>
      %182 = math.exp %181 : vector<64x256xf32>
      %cst_85 = arith.constant dense<0.000000e+00> : vector<64xf32>
      %183 = vector.multi_reduction <add>, %182, %cst_85 [1] : vector<64x256xf32> to vector<64xf32>
      %184 = vector.shape_cast %183 : vector<64xf32> to vector<64x1xf32>
      %185 = tpu.reciprocal %184 {approx = true} : vector<64x1xf32> -> vector<64x1xf32>
      %186 = vector.broadcast %185 : vector<64x1xf32> to vector<64x256xf32>
      %187 = arith.mulf %182, %186 : vector<64x256xf32>
      %cst_86 = arith.constant dense<0.000000e+00> : vector<8x64xf32>
      %188 = tpu.matmul %126, %187, %cst_86 {dimension_numbers = #tpu.dot_dimension_numbers<[1], [1], [0], [0], [0, 0, 1, 0], [], []>} : vector<8x256xf32>, vector<64x256xf32>, vector<8x64xf32> -> vector<8x64xf32>
      %189 = arith.index_cast %116 : i32 to index
      %c192_87 = arith.constant 192 : index
      %190 = vector.load %arg16[%189, %c192_87] : memref<32x256xf32, #tpu.memory_space<vmem>>, vector<8x64xf32>
      tpu.vector_store %arg16[%189, %c192_87], %188 {strides = array<i32>} : memref<32x256xf32, #tpu.memory_space<vmem>>, vector<8x64xf32>,
    }
    %c4_i32_17 = arith.constant 4 : i32
    %c0_18 = arith.constant 0 : index
    %c0_19 = arith.constant 0 : index
    %31 = vector.load %arg6[%c0_18, %c0_19] : memref<32x32xf32, #tpu.memory_space<vmem>>, vector<32x32xf32>
    %c0_20 = arith.constant 0 : index
    %c0_21 = arith.constant 0 : index
    %32 = vector.load %arg16[%c0_20, %c0_21] : memref<32x256xf32, #tpu.memory_space<vmem>>, vector<32x256xf32>
    %cst_22 = arith.constant dense<0.000000e+00> : vector<32x256xf32>
    %33 = tpu.matmul %31, %32, %cst_22 {dimension_numbers = #tpu.dot_dimension_numbers<[1], [0], [0], [1], [0, 0, 1, 1], [], []>} : vector<32x32xf32>, vector<32x256xf32>, vector<32x256xf32> -> vector<32x256xf32>
    %c0_23 = arith.constant 0 : index
    %c0_24 = arith.constant 0 : index
    %34 = vector.load %arg7[%c0_23, %c0_24] : memref<32x1xf32, #tpu.memory_space<vmem>>, vector<32x1xf32>
    %35 = vector.broadcast %34 : vector<32x1xf32> to vector<32x256xf32>
    %36 = arith.addf %33, %35 : vector<32x256xf32>
    %37 = arith.addf %36, %1 : vector<32x256xf32>
    %c0_25 = arith.constant 0 : index
    %c0_26 = arith.constant 0 : index
    %38 = vector.load %arg8[%c0_25, %c0_26] : memref<32x1xf32, #tpu.memory_space<vmem>>, vector<32x1xf32>
    %c0_27 = arith.constant 0 : index
    %c0_28 = arith.constant 0 : index
    %39 = vector.load %arg9[%c0_27, %c0_28] : memref<32x1xf32, #tpu.memory_space<vmem>>, vector<32x1xf32>
    %cst_29 = arith.constant dense<0.000000e+00> : vector<256xf32>
    %40 = vector.multi_reduction <add>, %37, %cst_29 [0] : vector<32x256xf32> to vector<256xf32>
    %41 = vector.shape_cast %40 : vector<256xf32> to vector<1x256xf32>
    %cst_30 = arith.constant 3.125000e-02 : f32
    %42 = vector.broadcast %cst_30 : f32 to vector<1x256xf32>
    %43 = arith.mulf %41, %42 : vector<1x256xf32>
    %44 = vector.broadcast %43 : vector<1x256xf32> to vector<32x256xf32>
    %45 = arith.subf %37, %44 : vector<32x256xf32>
    %46 = arith.mulf %45, %45 : vector<32x256xf32>
    %cst_31 = arith.constant dense<0.000000e+00> : vector<256xf32>
    %47 = vector.multi_reduction <add>, %46, %cst_31 [0] : vector<32x256xf32> to vector<256xf32>
    %48 = vector.shape_cast %47 : vector<256xf32> to vector<1x256xf32>
    %cst_32 = arith.constant 3.125000e-02 : f32
    %49 = vector.broadcast %cst_32 : f32 to vector<1x256xf32>
    %50 = arith.mulf %48, %49 : vector<1x256xf32>
    %cst_33 = arith.constant 9.99999974E-6 : f32
    %51 = vector.broadcast %cst_33 : f32 to vector<1x256xf32>
    %52 = arith.addf %50, %51 : vector<1x256xf32>
    %53 = math.rsqrt %52 : vector<1x256xf32>
    %54 = vector.broadcast %53 : vector<1x256xf32> to vector<32x256xf32>
    %55 = arith.mulf %45, %54 : vector<32x256xf32>
    %56 = vector.broadcast %38 : vector<32x1xf32> to vector<32x256xf32>
    %57 = arith.mulf %55, %56 : vector<32x256xf32>
    %58 = vector.broadcast %39 : vector<32x1xf32> to vector<32x256xf32>
    %59 = arith.addf %57, %58 : vector<32x256xf32>
    %c0_34 = arith.constant 0 : index
    %c0_35 = arith.constant 0 : index
    %60 = vector.load %arg10[%c0_34, %c0_35] : memref<32x32xf32, #tpu.memory_space<vmem>>, vector<32x32xf32>
    %cst_36 = arith.constant dense<0.000000e+00> : vector<32x256xf32>
    %61 = tpu.matmul %60, %59, %cst_36 {dimension_numbers = #tpu.dot_dimension_numbers<[1], [0], [0], [1], [0, 0, 1, 1], [], []>} : vector<32x32xf32>, vector<32x256xf32>, vector<32x256xf32> -> vector<32x256xf32>
    %c0_37 = arith.constant 0 : index
    %c0_38 = arith.constant 0 : index
    %62 = vector.load %arg11[%c0_37, %c0_38] : memref<32x1xf32, #tpu.memory_space<vmem>>, vector<32x1xf32>
    %63 = vector.broadcast %62 : vector<32x1xf32> to vector<32x256xf32>
    %64 = arith.addf %61, %63 : vector<32x256xf32>
    %cst_39 = arith.constant 5.000000e-01 : f32
    %65 = vector.broadcast %cst_39 : f32 to vector<32x256xf32>
    %66 = arith.mulf %65, %64 : vector<32x256xf32>
    %cst_40 = arith.constant 0.707106769 : f32
    %67 = vector.broadcast %cst_40 : f32 to vector<32x256xf32>
    %68 = arith.mulf %64, %67 : vector<32x256xf32>
    %cst_41 = arith.constant 0.000000e+00 : f32
    %69 = vector.broadcast %cst_41 : f32 to vector<32x256xf32>
    %70 = arith.cmpf oge, %68, %69 : vector<32x256xf32>
    %cst_42 = arith.constant 1.000000e+00 : f32
    %cst_43 = arith.constant -1.000000e+00 : f32
    %71 = vector.broadcast %cst_42 : f32 to vector<32x256xf32>
    %72 = vector.broadcast %cst_43 : f32 to vector<32x256xf32>
    %73 = arith.select %70, %71, %72 : vector<32x256xi1>, vector<32x256xf32>
    %74 = math.absf %68 : vector<32x256xf32>
    %cst_44 = arith.constant 0.327591091 : f32
    %75 = vector.broadcast %cst_44 : f32 to vector<32x256xf32>
    %76 = arith.mulf %75, %74 : vector<32x256xf32>
    %cst_45 = arith.constant 1.000000e+00 : f32
    %77 = vector.broadcast %cst_45 : f32 to vector<32x256xf32>
    %78 = arith.addf %77, %76 : vector<32x256xf32>
    %cst_46 = arith.constant 1.000000e+00 : f32
    %79 = vector.broadcast %cst_46 : f32 to vector<32x256xf32>
    %80 = arith.divf %79, %78 : vector<32x256xf32>
    %cst_47 = arith.constant 1.06140542 : f32
    %81 = vector.broadcast %cst_47 : f32 to vector<32x256xf32>
    %82 = arith.mulf %81, %80 : vector<32x256xf32>
    %cst_48 = arith.constant -1.45315206 : f32
    %83 = vector.broadcast %cst_48 : f32 to vector<32x256xf32>
    %84 = arith.addf %82, %83 : vector<32x256xf32>
    %85 = arith.mulf %84, %80 : vector<32x256xf32>
    %cst_49 = arith.constant 1.42141378 : f32
    %86 = vector.broadcast %cst_49 : f32 to vector<32x256xf32>
    %87 = arith.addf %85, %86 : vector<32x256xf32>
    %88 = arith.mulf %87, %80 : vector<32x256xf32>
    %cst_50 = arith.constant -0.284496725 : f32
    %89 = vector.broadcast %cst_50 : f32 to vector<32x256xf32>
    %90 = arith.addf %88, %89 : vector<32x256xf32>
    %91 = arith.mulf %90, %80 : vector<32x256xf32>
    %cst_51 = arith.constant 0.254829586 : f32
    %92 = vector.broadcast %cst_51 : f32 to vector<32x256xf32>
    %93 = arith.addf %91, %92 : vector<32x256xf32>
    %94 = arith.mulf %93, %80 : vector<32x256xf32>
    %cst_52 = arith.constant 0.000000e+00 : f32
    %95 = vector.broadcast %cst_52 : f32 to vector<32x256xf32>
    %96 = arith.subf %95, %74 : vector<32x256xf32>
    %97 = arith.mulf %96, %74 : vector<32x256xf32>
    %98 = math.exp %97 : vector<32x256xf32>
    %99 = arith.mulf %94, %98 : vector<32x256xf32>
    %cst_53 = arith.constant 1.000000e+00 : f32
    %100 = vector.broadcast %cst_53 : f32 to vector<32x256xf32>
    %101 = arith.subf %100, %99 : vector<32x256xf32>
    %102 = arith.mulf %73, %101 : vector<32x256xf32>
    %cst_54 = arith.constant 1.000000e+00 : f32
    %103 = vector.broadcast %cst_54 : f32 to vector<32x256xf32>
    %104 = arith.addf %103, %102 : vector<32x256xf32>
    %105 = arith.mulf %66, %104 : vector<32x256xf32>
    %c0_55 = arith.constant 0 : index
    %c0_56 = arith.constant 0 : index
    %106 = vector.load %arg12[%c0_55, %c0_56] : memref<32x32xf32, #tpu.memory_space<vmem>>, vector<32x32xf32>
    %cst_57 = arith.constant dense<0.000000e+00> : vector<32x256xf32>
    %107 = tpu.matmul %106, %105, %cst_57 {dimension_numbers = #tpu.dot_dimension_numbers<[1], [0], [0], [1], [0, 0, 1, 1], [], []>} : vector<32x32xf32>, vector<32x256xf32>, vector<32x256xf32> -> vector<32x256xf32>
    %c0_58 = arith.constant 0 : index
    %c0_59 = arith.constant 0 : index
    %108 = vector.load %arg13[%c0_58, %c0_59] : memref<32x1xf32, #tpu.memory_space<vmem>>, vector<32x1xf32>
    %109 = vector.broadcast %108 : vector<32x1xf32> to vector<32x256xf32>
    %110 = arith.addf %107, %109 : vector<32x256xf32>
    %111 = arith.addf %110, %37 : vector<32x256xf32>
    %c0_60 = arith.constant 0 : index
    %c0_61 = arith.constant 0 : index
    %c0_62 = arith.constant 0 : index
    %112 = vector.load %arg14[%c0_60, %c0_61, %c0_62] : memref<1x32x256xf32, #tpu.memory_space<vmem>>, vector<1x32x256xf32>
    %113 = vector.shape_cast %112 : vector<1x32x256xf32> to vector<32x256xf32>
    %114 = vector.shape_cast %111 : vector<32x256xf32> to vector<1x32x256xf32>
    tpu.vector_store %arg14[%c0_60, %c0_61, %c0_62], %114 {strides = array<i32>} : memref<1x32x256xf32, #tpu.memory_space<vmem>>, vector<1x32x256xf32>,
    return
  }
  func.func @transform_0(%arg0: i32) -> (i32, i32, i32) {
    %c0_i32 = arith.constant 0 : i32
    %c0_i32_0 = arith.constant 0 : i32
    %c0_i32_1 = arith.constant 0 : i32
    return %arg0, %c0_i32, %c0_i32_0 : i32, i32, i32
  }
  func.func @transform_1(%arg0: i32) -> (i32, i32) {
    %c0_i32 = arith.constant 0 : i32
    %c0_i32_0 = arith.constant 0 : i32
    %c0_i32_1 = arith.constant 0 : i32
    return %c0_i32, %c0_i32_0 : i32, i32
  }
  func.func @transform_2(%arg0: i32) -> (i32, i32) {
    %c0_i32 = arith.constant 0 : i32
    %c0_i32_0 = arith.constant 0 : i32
    %c0_i32_1 = arith.constant 0 : i32
    return %c0_i32, %c0_i32_0 : i32, i32
  }
  func.func @transform_3(%arg0: i32) -> (i32, i32) {
    %c0_i32 = arith.constant 0 : i32
    %c0_i32_0 = arith.constant 0 : i32
    %c0_i32_1 = arith.constant 0 : i32
    return %c0_i32, %c0_i32_0 : i32, i32
  }
  func.func @transform_4(%arg0: i32) -> (i32, i32) {
    %c0_i32 = arith.constant 0 : i32
    %c0_i32_0 = arith.constant 0 : i32
    %c0_i32_1 = arith.constant 0 : i32
    return %c0_i32, %c0_i32_0 : i32, i32
  }
  func.func @transform_5(%arg0: i32) -> (i32, i32) {
    %c0_i32 = arith.constant 0 : i32
    %c0_i32_0 = arith.constant 0 : i32
    %c0_i32_1 = arith.constant 0 : i32
    return %c0_i32, %c0_i32_0 : i32, i32
  }
  func.func @transform_6(%arg0: i32) -> (i32, i32) {
    %c0_i32 = arith.constant 0 : i32
    %c0_i32_0 = arith.constant 0 : i32
    %c0_i32_1 = arith.constant 0 : i32
    return %c0_i32, %c0_i32_0 : i32, i32
  }
  func.func @transform_7(%arg0: i32) -> (i32, i32) {
    %c0_i32 = arith.constant 0 : i32
    %c0_i32_0 = arith.constant 0 : i32
    %c0_i32_1 = arith.constant 0 : i32
    return %c0_i32, %c0_i32_0 : i32, i32
  }
  func.func @transform_8(%arg0: i32) -> (i32, i32) {
    %c0_i32 = arith.constant 0 : i32
    %c0_i32_0 = arith.constant 0 : i32
    %c0_i32_1 = arith.constant 0 : i32
    return %c0_i32, %c0_i32_0 : i32, i32
  }
  func.func @transform_9(%arg0: i32) -> (i32, i32) {
    %c0_i32 = arith.constant 0 : i32
    %c0_i32_0 = arith.constant 0 : i32
    %c0_i32_1 = arith.constant 0 : i32
    return %c0_i32, %c0_i32_0 : i32, i32
  }
  func.func @transform_10(%arg0: i32) -> (i32, i32) {
    %c0_i32 = arith.constant 0 : i32
    %c0_i32_0 = arith.constant 0 : i32
    %c0_i32_1 = arith.constant 0 : i32
    return %c0_i32, %c0_i32_0 : i32, i32
  }
  func.func @transform_11(%arg0: i32) -> (i32, i32) {
    %c0_i32 = arith.constant 0 : i32
    %c0_i32_0 = arith.constant 0 : i32
    %c0_i32_1 = arith.constant 0 : i32
    return %c0_i32, %c0_i32_0 : i32, i32
  }
  func.func @transform_12(%arg0: i32) -> (i32, i32) {
    %c0_i32 = arith.constant 0 : i32
    %c0_i32_0 = arith.constant 0 : i32
    %c0_i32_1 = arith.constant 0 : i32
    return %c0_i32, %c0_i32_0 : i32, i32
  }
  func.func @transform_13(%arg0: i32) -> (i32, i32, i32) {
    %c0_i32 = arith.constant 0 : i32
    %c0_i32_0 = arith.constant 0 : i32
    %c0_i32_1 = arith.constant 0 : i32
    return %arg0, %c0_i32, %c0_i32_0 : i32, i32, i32
  }
}

</mosaic_0001>

<bundles_post_ra>
// kernel: tpu_custom_call.1
= control target key start
LH: loop header
LB: loop body
LE: loop exit
PB: predicated region body
PF: predicated region fallthrough
CT: control target
= control target key end

     0   :  { %18 = vsyncpa [#allocation5], 0  ;;  %s5002_s0 = inlined_call_operand.vmem [shape: f32[2,32,256], index: 0, kind: input, shape index: {}]   ;;  %s5003_s1 = inlined_call_operand.vmem [shape: f32[32,1], index: 1, kind: input, shape index: {}]   ;;  %s5004_s2 = inlined_call_operand.vmem [shape: f32[32,1], index: 2, kind: input, shape index: {}]   ;;  %s5005_s3 = inlined_call_operand.vmem [shape: f32[96,32], index: 3, kind: input, shape index: {}]   ;;  %s5006_s4 = inlined_call_operand.vmem [shape: f32[96,1], index: 4, kind: input, shape index: {}]   ;;  %s5007_s5 = inlined_call_operand.vmem [shape: f32[32,32], index: 5, kind: input, shape index: {}]   ;;  %s5008_s6 = inlined_call_operand.vmem [shape: f32[32,1], index: 6, kind: input, shape index: {}]   ;;  %s5009_s7 = inlined_call_operand.vmem [shape: f32[32,1], index: 7, kind: input, shape index: {}]   ;;  %s5010_s8 = inlined_call_operand.vmem [shape: f32[32,1], index: 8, kind: input, shape index: {}]   ;;  %s5011_s9 = inlined_call_operand.vmem [shape: f32[32,32], index: 9, kind: input, shape index: {}]   ;;  %s5012_s10 = inlined_call_operand.vmem [shape: f32[32,1], index: 10, kind: input, shape index: {}]   ;;  %s5013_s11 = inlined_call_operand.vmem [shape: f32[32,32], index: 11, kind: input, shape index: {}]   ;;  %s5014_s12 = inlined_call_operand.vmem [shape: f32[32,1], index: 12, kind: input, shape index: {}]   ;;  %s5015_s13 = inlined_call_operand.hbm [shape: f32[2,32,256], index: 13, kind: output, shape index: {}]  }
   0x1   :  { %20 = vsyncpa [#allocation5 + $0x1], 0  ;;  %s3746_s25 = smov 0   ;;  %s3748_s26 = smov 0  }
   0x2   :  { %s3750_s27 = smov 0   ;;  %s3752_s28 = smov 0  }
   0x3 LB: > { %5045 = sst [smem:[#allocation7_spill]] %s3658_s27  ;;  %s3767_s29 = sadd.s32 4294967295, %s3662_s28   ;;  %s3662_s28 = sphi %s3752_s28, %s5096_s28   ;;  %s3658_s27 = sphi %s3750_s27, %s5098_s27   ;;  %s3654_s26 = sphi %s3748_s26, %s5100_s26   ;;  %s3650_s25 = sphi %s3746_s25, %s5099_s25  }
   0x4   : > { %s3210_s30 = sadd.s32 4294967294, %s3662_s28   ;;  %s3771_s14 = sadd.s32 1, %s3662_s28  }
   0x5   : > { %5046 = sst [smem:[#allocation8_spill]] %s3771_s14  ;;  %s311_s15 = sadd.s32 1, %s3658_s27 }
   0x6   : > { %s308_s16 = ssub.s32 %s3662_s28, %s3771_s14  ;;  %p321_p0 = scmp.ne.s32.totalorder %s3658_s27, %s3654_s26 }
   0x7   : > { %p309_p1 = scmp.eq.s32.totalorder %s308_s16, 0  ;;  %p322_p2 = scmp.eq.s32.totalorder %s3767_s29, 1 }
   0x8   : > { %p327_p3 = scmp.ne.s32.totalorder %s3654_s26, %s3650_s25  ;;  %p328_p4 = scmp.eq.s32.totalorder %s3210_s30, 1 }
   0x9   : > { %s3782_s17 = scalar_select %p309_p1, %s3658_s27, %s311_s15  }
   0xa   : > { %p3784_p5 = por %p322_p2, %p321_p0  ;;  %p3788_p6 = por %p328_p4, %p327_p3 }
   0xb   : > { %5047 = sst [smem:[#allocation9_spill]] %s3782_s17  ;;  %p3213_p7 = scmp.ge.s32.totalorder %s3662_s28, 1 }
   0xc   : > { %s5049_s19 = scalar_select %p3788_p6, 1, 0 }
   0xd   : > { %p390_p8 = scmp.lt.s32.totalorder %s3662_s28, 3 }
   0xe   : > { %5050 = sst [smem:[#allocation10_spill]] %s5049_s19 }
   0xf   : > { %p391_p9 = pnand %p3213_p7, %p390_p8 }
  0x11   : > { %394 = sbr.rel (%p391_p9) target bundleno = 2467 (0x9a3), region = 72 }
  0x16   : > { %v454_v0 = vld [vmem:[%s5004_s2 + $0x18] sm:$0xff]  ;;  %p434_p10 = scmp.lt.s32.totalorder %s3767_s29, 1  ;;  %v5020_v2 = vmov 0   ;;  %v449_v3 = vld [vmem:[%s5003_s1 + $0x10] sm:$0xff]  ;;  %v448_v4 = vld [vmem:[%s5003_s1 + $0x8] sm:$0xff]  ;;  %s431_s21 = sand.u32 1, %s3654_s26  }
  0x17   : > { %v450_v1 = vld [vmem:[%s5003_s1 + $0x18] sm:$0xff]  ;;  %3363 = vset.pattern.permute.xlu1 %v5020_v2  ;;  %3362 = vset.pattern.permute.xlu0 %v5020_v2  ;;  %s3813_s23 = sshll.u32 %s431_s21, 6  ;;  %v453_v5 = vld [vmem:[%s5004_s2 + $0x10] sm:$0xff]  ;;  %v447_v6 = vld [vmem:[%s5003_s1] sm:$0xff]  ;;  %v5022_v19 = vmov 0.0   ;;  %vm663_vm0 = vcmask 261120  }
  0x18   : > { %568 = vperm.xlu1 %3363, %v454_v0   ;;  %540 = vperm.xlu0 %3362, %v450_v1   ;;  %s435_s24 = scalar_select %p434_p10, %s3767_s29, 1  ;;  %v452_v7 = vld [vmem:[%s5004_s2 + $0x8] sm:$0xff]  ;;  %v451_v10 = vld [vmem:[%s5004_s2] sm:$0xff]  ;;  %v593_v23 = vld [vmem:[%s5006_s4 + $0x10] sm:$0xff] }
  0x19   : > { %v591_v16 = vld [vmem:[%s5006_s4] sm:$0xff]  ;;  %v592_v17 = vld [vmem:[%s5006_s4 + $0x8] sm:$0xff]  ;;  %764 = vmatprep.mubr.f32.mxu0 %v5022_v19  ;;  %800 = vmatprep.mubr.f32.mxu1 %v5022_v19  ;;  %v594_v24 = vld [vmem:[%s5006_s4 + $0x18] sm:$0xff]  ;;  %s3977_s17 = scalar_lea.vmem [#allocation4], %s3813_s23  ;;  %s3979_s14 = smov 0  }
  0x1a   : > { %s3286_s22 = sshll.u32 %s435_s24, 6  ;;  %v595_v28 = vld [vmem:[%s5006_s4 + $0x20] sm:$0xff]  ;;  %v596_v29 = vld [vmem:[%s5006_s4 + $0x28] sm:$0xff]  ;;  %v597_v32 = vld [vmem:[%s5006_s4 + $0x30] sm:$0xff] }
  0x1b   : > { %s438_s16 = scalar_lea.vmem %s5002_s0, %s3286_s22  ;;  %v598_v33 = vld [vmem:[%s5006_s4 + $0x38] sm:$0xff]  ;;  %v599_v36 = vld [vmem:[%s5006_s4 + $0x40] sm:$0xff]  ;;  %v600_v37 = vld [vmem:[%s5006_s4 + $0x48] sm:$0xff] }
  0x1c   : > { %535 = vperm.xlu0 %3362, %v449_v3   ;;  %530 = vperm.xlu1 %3363, %v448_v4   ;;  %v3827_v8 = vld [vmem:[%s438_s16] sm:$0xff]  ;;  %v3829_v9 = vld [vmem:[%s438_s16 + $0x10] sm:$0xff]  ;;  %v3834_v11 = vld [vmem:[%s438_s16 + $0x8] sm:$0xff] }
  0x1d   : > { %5051 = vst [vmem:[#allocation11_spill] sm:$0xff] %v3827_v8  ;;  %5052 = vst [vmem:[#allocation12_spill] sm:$0xff] %v3829_v9  ;;  %v3836_v12 = vld [vmem:[%s438_s16 + $0x18] sm:$0xff]  ;;  %v455_v13 = vadd.f32 %v3829_v9, %v3827_v8  ;;  %v3840_v14 = vld [vmem:[%s438_s16 + $0x20] sm:$0xff] }
  0x1e   : > { %5053 = vst [vmem:[#allocation13_spill] sm:$0xff] %v3834_v11  ;;  %5054 = vst [vmem:[#allocation14_spill] sm:$0xff] %v3836_v12  ;;  %v464_v15 = vadd.f32 %v3836_v12, %v3834_v11  ;;  %v3850_v18 = vld [vmem:[%s438_s16 + $0x28] sm:$0xff]  ;;  %v3855_v21 = vld [vmem:[%s438_s16 + $0x30] sm:$0xff] }
  0x1f   : > { %5055 = vst [vmem:[#allocation15_spill] sm:$0xff] %v3840_v14  ;;  %5056 = vst [vmem:[#allocation16_spill] sm:$0xff] %v3850_v18  ;;  %v456_v20 = vadd.f32 %v455_v13, %v3840_v14  ;;  %v3864_v25 = vld [vmem:[%s438_s16 + $0x38] sm:$0xff]  ;;  %v601_v40 = vld [vmem:[%s5006_s4 + $0x50] sm:$0xff] }
  0x20   : > { %563 = vperm.xlu0 %3362, %v453_v5   ;;  %525 = vperm.xlu1 %3363, %v447_v6   ;;  %5057 = vst [vmem:[#allocation17_spill] sm:$0xff] %v3855_v21  ;;  %v465_v22 = vadd.f32 %v464_v15, %v3850_v18  ;;  %5058 = vst [vmem:[#allocation18_spill] sm:$0xff] %v3864_v25  ;;  %v602_v41 = vld [vmem:[%s5006_s4 + $0x58] sm:$0xff] }
  0x21   : > { %v457_v26 = vadd.f32 %v456_v20, %v3855_v21 }
  0x22   : > { %v466_v27 = vadd.f32 %v465_v22, %v3864_v25 }
  0x23   : > { %v458_v30 = vrot.slane %v457_v26, 4 }
  0x24   : > { %558 = vperm.xlu0 %3362, %v452_v7   ;;  %553 = vperm.xlu1 %3363, %v451_v10   ;;  %v467_v31 = vrot.slane %v466_v27, 4 }
  0x25   : > { %v459_v34 = vadd.f32 %v458_v30, %v457_v26 }
  0x26   : > { %v468_v35 = vadd.f32 %v467_v31, %v466_v27 }
  0x27   : > { %v460_v38 = vrot.slane %v459_v34, 2 }
  0x28   : > { %605 = vperm.xlu0 %3362, %v591_v16   ;;  %610 = vperm.xlu1 %3363, %v592_v17   ;;  %v469_v39 = vrot.slane %v468_v35, 2 }
  0x29   : > { %v461_v42 = vadd.f32 %v460_v38, %v459_v34 }
  0x2a   : > { %v470_v43 = vadd.f32 %v469_v39, %v468_v35 }
  0x2b   : > { %v462_v44 = vrot.slane %v461_v42, 1 }
  0x2c   : > { %615 = vperm.xlu0 %3362, %v593_v23   ;;  %620 = vperm.xlu1 %3363, %v594_v24   ;;  %v471_v45 = vrot.slane %v470_v43, 1 }
  0x2d   : > { %v463_v46 = vadd.f32 %v462_v44, %v461_v42 }
  0x2e   : > { %v472_v47 = vadd.f32 %v471_v45, %v470_v43 }
  0x2f   : > { %v473_v48 = vmul.f32 0.03125, %v463_v46 }
  0x30   : > { %625 = vperm.xlu0 %3362, %v595_v28   ;;  %630 = vperm.xlu1 %3363, %v596_v29   ;;  %v474_v49 = vmul.f32 0.03125, %v472_v47 }
  0x31   : > { %v3893_v50 = vsub.f32 %v3827_v8, %v473_v48  ;;  %v477_v51 = vsub.f32 %v3829_v9, %v473_v48  ;;  %v479_v54 = vsub.f32 %v3840_v14, %v473_v48  ;;  %v481_v60 = vsub.f32 %v3855_v21, %v473_v48 }
  0x32   : > { %v3897_v52 = vsub.f32 %v3834_v11, %v474_v49  ;;  %v478_v53 = vsub.f32 %v3836_v12, %v474_v49  ;;  %v480_v57 = vsub.f32 %v3850_v18, %v474_v49  ;;  %v482_v63 = vsub.f32 %v3864_v25, %v474_v49 }
  0x33   : > { %v483_v55 = vmul.f32 %v3893_v50, %v3893_v50  ;;  %v485_v56 = vmul.f32 %v477_v51, %v477_v51  ;;  %v487_v61 = vmul.f32 %v479_v54, %v479_v54  ;;  %v489_v3 = vmul.f32 %v481_v60, %v481_v60 }
  0x34   : > { %635 = vperm.xlu0 %3362, %v597_v32   ;;  %640 = vperm.xlu1 %3363, %v598_v33   ;;  %v484_v58 = vmul.f32 %v3897_v52, %v3897_v52  ;;  %v486_v59 = vmul.f32 %v478_v53, %v478_v53  ;;  %v488_v0 = vmul.f32 %v480_v57, %v480_v57 }
  0x35   : > { %v491_v62 = vadd.f32 %v485_v56, %v483_v55  ;;  %v490_v5 = vmul.f32 %v482_v63, %v482_v63 }
  0x36   : > { %v500_v1 = vadd.f32 %v486_v59, %v484_v58 }
  0x37   : > { %v492_v4 = vadd.f32 %v491_v62, %v487_v61 }
  0x38   : > { %645 = vperm.xlu0 %3362, %v599_v36   ;;  %650 = vperm.xlu1 %3363, %v600_v37   ;;  %v501_v6 = vadd.f32 %v500_v1, %v488_v0 }
  0x39   : > { %v493_v7 = vadd.f32 %v492_v4, %v489_v3 }
  0x3a   : > { %v502_v10 = vadd.f32 %v501_v6, %v490_v5 }
  0x3b   : > { %v494_v13 = vrot.slane %v493_v7, 4 }
  0x3c   : > { %655 = vperm.xlu0 %3362, %v601_v40   ;;  %660 = vperm.xlu1 %3363, %v602_v41   ;;  %v503_v15 = vrot.slane %v502_v10, 4 }
  0x3d   : > { %v495_v16 = vadd.f32 %v494_v13, %v493_v7  ;;  %v580_v7 = vld [vmem:[%s5005_s3 + $0x8] sm:$0xff]  ;;  %v581_v13 = vld [vmem:[%s5005_s3 + $0x10] sm:$0xff] }
  0x3e   : > { %v504_v17 = vadd.f32 %v503_v15, %v502_v10  ;;  %v586_v10 = vld [vmem:[%s5005_s3 + $0x38] sm:$0xff]  ;;  %v587_v15 = vld [vmem:[%s5005_s3 + $0x40] sm:$0xff] }
  0x3f   : > { %v496_v20 = vrot.slane %v495_v16, 2 }
  0x40   : > { %v505_v22 = vrot.slane %v504_v17, 2 }
  0x41   : > { %v497_v23 = vadd.f32 %v496_v20, %v495_v16  ;;  %v582_v16 = vld [vmem:[%s5005_s3 + $0x18] sm:$0xff]  ;;  %v583_v20 = vld [vmem:[%s5005_s3 + $0x20] sm:$0xff] }
  0x42   : > { %v506_v24 = vadd.f32 %v505_v22, %v504_v17  ;;  %v588_v17 = vld [vmem:[%s5005_s3 + $0x48] sm:$0xff]  ;;  %v589_v22 = vld [vmem:[%s5005_s3 + $0x50] sm:$0xff] }
  0x43   : > { %v498_v26 = vrot.slane %v497_v23, 1 }
  0x44   : > { %v507_v27 = vrot.slane %v506_v24, 1 }
  0x45   : > { %v499_v28 = vadd.f32 %v498_v26, %v497_v23  ;;  %v584_v23 = vld [vmem:[%s5005_s3 + $0x28] sm:$0xff] }
  0x46   : > { %v508_v29 = vadd.f32 %v507_v27, %v506_v24  ;;  %v590_v24 = vld [vmem:[%s5005_s3 + $0x58] sm:$0xff] }
  0x47   : > { %v509_v30 = vmul.f32 0.03125, %v499_v28 }
  0x48   : > { %v510_v31 = vmul.f32 0.03125, %v508_v29 }
  0x49   : > { %v511_v32 = vadd.f32 1e-05, %v509_v30 }
  0x4a   : > { %v512_v33 = vadd.f32 1e-05, %v510_v31 }
  0x4b   : > { %3364 = vrsqrt.f32 %v511_v32 }
  0x4c   : > { %3366 = vrsqrt.f32 %v512_v33 }
  0x58   : > { %v3365_v34 = vpop.eup %3364 }
  0x59   : > { %v3367_v35 = vpop.eup %3366  ;;  %v521_v36 = vmul.f32 %v3365_v34, %v481_v60  ;;  %v519_v42 = vmul.f32 %v3365_v34, %v479_v54  ;;  %v517_v55 = vmul.f32 %v3365_v34, %v477_v51  ;;  %v515_v54 = vmul.f32 %v3365_v34, %v3893_v50  ;;  %v579_v50 = vld [vmem:[%s5005_s3] sm:$0xff] }
  0x5a   : > { %v522_v37 = vmul.f32 %v3367_v35, %v482_v63  ;;  %v520_v43 = vmul.f32 %v3367_v35, %v480_v57  ;;  %v518_v56 = vmul.f32 %v3367_v35, %v478_v53  ;;  %v516_v62 = vmul.f32 %v3367_v35, %v3897_v52  ;;  %v585_v52 = vld [vmem:[%s5005_s3 + $0x30] sm:$0xff] }
  0x93   : > { %v569_v38 = vpop.permute.xlu1 %568  ;;  %v541_v39 = vpop.permute.xlu0 %540 }
  0x94   : > { %v549_v40 = vmul.f32 %v541_v39, %v521_v36  ;;  %v550_v41 = vmul.f32 %v541_v39, %v522_v37 }
  0x96   : > { %v578_v44 = vadd.f32 %v569_v38, %v550_v41  ;;  %v577_v45 = vadd.f32 %v569_v38, %v549_v40 }
  0x97   : > { %v536_v46 = vpop.permute.xlu0 %535  ;;  %v531_v47 = vpop.permute.xlu1 %530 }
  0x98   : > { %724 = vmatprep.subr.mxu0 %v578_v44  ;;  %3292 = vmatprep.subr.mxu1 %v578_v44  ;;  %v547_v48 = vmul.f32 %v536_v46, %v519_v42  ;;  %v548_v49 = vmul.f32 %v536_v46, %v520_v43  ;;  %v545_v57 = vmul.f32 %v531_v47, %v517_v55 }
  0x99   : > { %725 = vmatpush1.msra.mxu0 %v577_v45  ;;  %3296 = vmatpush1.msra.mxu1 %v577_v45  ;;  %v546_v63 = vmul.f32 %v531_v47, %v518_v56 }
  0x9b   : > { %v564_v58 = vpop.permute.xlu0 %563  ;;  %v526_v59 = vpop.permute.xlu1 %525 }
  0x9c   : > { %v575_v60 = vadd.f32 %v564_v58, %v547_v48  ;;  %v576_v61 = vadd.f32 %v564_v58, %v548_v49  ;;  %v544_v3 = vmul.f32 %v526_v59, %v516_v62  ;;  %v543_v4 = vmul.f32 %v526_v59, %v515_v54 }
  0x9e   : > { %726 = vmatprep.subr.mxu0 %v576_v61  ;;  %3293 = vmatprep.subr.mxu1 %v576_v61 }
  0x9f   : > { %v559_v0 = vpop.permute.xlu0 %558  ;;  %v554_v1 = vpop.permute.xlu1 %553  ;;  %727 = vmatpush1.msra.mxu0 %v575_v60  ;;  %3297 = vmatpush1.msra.mxu1 %v575_v60 }
  0xa0   : > { %v573_v51 = vadd.f32 %v559_v0, %v545_v57  ;;  %v574_v53 = vadd.f32 %v559_v0, %v546_v63  ;;  %v572_v5 = vadd.f32 %v554_v1, %v544_v3  ;;  %v571_v6 = vadd.f32 %v554_v1, %v543_v4 }
  0xa2   : > { %728 = vmatprep.subr.mxu0 %v574_v53  ;;  %3294 = vmatprep.subr.mxu1 %v574_v53 }
  0xa3   : > { %729 = vmatpush1.msra.mxu0 %v573_v51  ;;  %3298 = vmatpush1.msra.mxu1 %v573_v51  ;;  %v606_v26 = vpop.permute.xlu0 %605  ;;  %v611_v27 = vpop.permute.xlu1 %610 }
  0xa4   : > { %730 = vmatprep.subr.mxu0 %v572_v5  ;;  %3295 = vmatprep.subr.mxu1 %v572_v5 }
  0xa5   : > { %731 = vmatpush1.msra.mxu0 %v571_v6  ;;  %3299 = vmatpush1.msra.mxu1 %v571_v6 }
  0xa6   : > { %3217 = vmatmul.mubr.msk.f32.vlgmr.msra.gmra.mxu0 %vm663_vm0, %v579_v50  ;;  %3223 = vmatmul.mubr.msk.f32.vlgmr.msra.gmra.mxu1 %vm663_vm0, %v585_v52 }
  0xa7   : > { %770 = vmatprep.mubr.f32.mxu0 %v5022_v19  ;;  %806 = vmatprep.mubr.f32.mxu1 %v5022_v19  ;;  %v616_v28 = vpop.permute.xlu0 %615  ;;  %v621_v29 = vpop.permute.xlu1 %620 }
  0xaa   : > { %3218 = vmatmul.mubr.msk.f32.gmra.mxu0 %vm663_vm0, %v580_v7  ;;  %3224 = vmatmul.mubr.msk.f32.gmra.mxu1 %vm663_vm0, %v586_v10 }
  0xab   : > { %776 = vmatprep.mubr.f32.mxu0 %v5022_v19  ;;  %812 = vmatprep.mubr.f32.mxu1 %v5022_v19  ;;  %v3968_v30 = vpop.permute.xlu0 %625  ;;  %v3970_v31 = vpop.permute.xlu1 %630 }
  0xae   : > { %3219 = vmatmul.mubr.msk.f32.gmra.mxu0 %vm663_vm0, %v581_v13  ;;  %3225 = vmatmul.mubr.msk.f32.gmra.mxu1 %vm663_vm0, %v587_v15 }
  0xaf   : > { %782 = vmatprep.mubr.f32.mxu0 %v5022_v19  ;;  %818 = vmatprep.mubr.f32.mxu1 %v5022_v19  ;;  %v636_v32 = vpop.permute.xlu0 %635  ;;  %v641_v39 = vpop.permute.xlu1 %640 }
  0xb2   : > { %3220 = vmatmul.mubr.msk.f32.gmra.mxu0 %vm663_vm0, %v582_v16  ;;  %3226 = vmatmul.mubr.msk.f32.gmra.mxu1 %vm663_vm0, %v588_v17 }
  0xb3   : > { %788 = vmatprep.mubr.f32.mxu0 %v5022_v19  ;;  %824 = vmatprep.mubr.f32.mxu1 %v5022_v19  ;;  %v646_v48 = vpop.permute.xlu0 %645  ;;  %v651_v54 = vpop.permute.xlu1 %650 }
  0xb6   : > { %3221 = vmatmul.mubr.msk.f32.gmra.mxu0 %vm663_vm0, %v583_v20  ;;  %3227 = vmatmul.mubr.msk.f32.gmra.mxu1 %vm663_vm0, %v589_v22 }
  0xb7   : > { %794 = vmatprep.mubr.f32.mxu0 %v5022_v19  ;;  %830 = vmatprep.mubr.f32.mxu1 %v5022_v19  ;;  %v656_v5 = vpop.permute.xlu0 %655  ;;  %v661_v17 = vpop.permute.xlu1 %660 }
  0xba   : > { %3222 = vmatmul.mubr.msk.f32.gmra.mxu0 %vm663_vm0, %v584_v23  ;;  %3228 = vmatmul.mubr.msk.f32.gmra.mxu1 %vm663_vm0, %v590_v24 }
 0x166   : > { %v766_v33 = vpop.f32.mrf.mxu0  ;;  %v802_v34 = vpop.f32.mrf.mxu1 }
 0x167   : > { %v767_v35 = vadd.f32 %v766_v33, %v606_v26  ;;  %v803_v36 = vadd.f32 %v802_v34, %v636_v32 }
 0x168   : > { %v768_v37 = vpop.f32.mrf.mxu0  ;;  %v804_v38 = vpop.f32.mrf.mxu1 }
 0x169   : > { %837 = vst [vmem:[#allocation2] sm:$0xff] %v767_v35  ;;  %849 = vst [vmem:[#allocation2 + $0x60] sm:$0xff] %v803_v36  ;;  %v769_v40 = vadd.f32 %v768_v37, %v606_v26  ;;  %v805_v41 = vadd.f32 %v804_v38, %v636_v32 }
 0x16a   : > { %v772_v42 = vpop.f32.mrf.mxu0  ;;  %v808_v43 = vpop.f32.mrf.mxu1 }
 0x16b   : > { %838 = vst [vmem:[#allocation2 + $0x8] sm:$0xff] %v769_v40  ;;  %850 = vst [vmem:[#allocation2 + $0x68] sm:$0xff] %v805_v41  ;;  %v773_v44 = vadd.f32 %v772_v42, %v611_v27  ;;  %v809_v45 = vadd.f32 %v808_v43, %v641_v39 }
 0x16c   : > { %v774_v46 = vpop.f32.mrf.mxu0  ;;  %v810_v47 = vpop.f32.mrf.mxu1 }
 0x16d   : > { %839 = vst [vmem:[#allocation2 + $0x10] sm:$0xff] %v773_v44  ;;  %851 = vst [vmem:[#allocation2 + $0x70] sm:$0xff] %v809_v45  ;;  %v775_v49 = vadd.f32 %v774_v46, %v611_v27  ;;  %v811_v55 = vadd.f32 %v810_v47, %v641_v39 }
 0x16e   : > { %v778_v56 = vpop.f32.mrf.mxu0  ;;  %v814_v58 = vpop.f32.mrf.mxu1 }
 0x16f   : > { %840 = vst [vmem:[#allocation2 + $0x18] sm:$0xff] %v775_v49  ;;  %852 = vst [vmem:[#allocation2 + $0x78] sm:$0xff] %v811_v55  ;;  %v779_v59 = vadd.f32 %v778_v56, %v616_v28  ;;  %v815_v60 = vadd.f32 %v814_v58, %v646_v48 }
 0x170   : > { %v780_v61 = vpop.f32.mrf.mxu0  ;;  %v816_v62 = vpop.f32.mrf.mxu1 }
 0x171   : > { %841 = vst [vmem:[#allocation2 + $0x20] sm:$0xff] %v779_v59  ;;  %853 = vst [vmem:[#allocation2 + $0x80] sm:$0xff] %v815_v60  ;;  %v781_v57 = vadd.f32 %v780_v61, %v616_v28  ;;  %v817_v63 = vadd.f32 %v816_v62, %v646_v48 }
 0x172   : > { %v784_v0 = vpop.f32.mrf.mxu0  ;;  %v820_v1 = vpop.f32.mrf.mxu1 }
 0x173   : > { %842 = vst [vmem:[#allocation2 + $0x28] sm:$0xff] %v781_v57  ;;  %854 = vst [vmem:[#allocation2 + $0x88] sm:$0xff] %v817_v63  ;;  %v785_v3 = vadd.f32 %v784_v0, %v621_v29  ;;  %v821_v51 = vadd.f32 %v820_v1, %v651_v54 }
 0x174   : > { %v786_v53 = vpop.f32.mrf.mxu0  ;;  %v822_v4 = vpop.f32.mrf.mxu1 }
 0x175   : > { %843 = vst [vmem:[#allocation2 + $0x30] sm:$0xff] %v785_v3  ;;  %855 = vst [vmem:[#allocation2 + $0x90] sm:$0xff] %v821_v51  ;;  %v787_v6 = vadd.f32 %v786_v53, %v621_v29  ;;  %v823_v50 = vadd.f32 %v822_v4, %v651_v54 }
 0x176   : > { %v790_v52 = vpop.f32.mrf.mxu0  ;;  %v826_v7 = vpop.f32.mrf.mxu1 }
 0x177   : > { %844 = vst [vmem:[#allocation2 + $0x38] sm:$0xff] %v787_v6  ;;  %856 = vst [vmem:[#allocation2 + $0x98] sm:$0xff] %v823_v50  ;;  %v791_v10 = vadd.f32 %v790_v52, %v3968_v30  ;;  %v827_v13 = vadd.f32 %v826_v7, %v656_v5 }
 0x178   : > { %v792_v15 = vpop.f32.mrf.mxu0  ;;  %v828_v16 = vpop.f32.mrf.mxu1 }
 0x179   : > { %845 = vst [vmem:[#allocation2 + $0x40] sm:$0xff] %v791_v10  ;;  %857 = vst [vmem:[#allocation2 + $0xa0] sm:$0xff] %v827_v13  ;;  %v793_v20 = vadd.f32 %v792_v15, %v3968_v30  ;;  %v829_v22 = vadd.f32 %v828_v16, %v656_v5 }
 0x17a   : > { %v796_v23 = vpop.f32.mrf.mxu0  ;;  %v832_v24 = vpop.f32.mrf.mxu1 }
 0x17b   : > { %846 = vst [vmem:[#allocation2 + $0x48] sm:$0xff] %v793_v20  ;;  %858 = vst [vmem:[#allocation2 + $0xa8] sm:$0xff] %v829_v22  ;;  %v797_v26 = vadd.f32 %v796_v23, %v3970_v31  ;;  %v833_v27 = vadd.f32 %v832_v24, %v661_v17 }
 0x17c   : > { %v798_v28 = vpop.f32.mrf.mxu0  ;;  %v834_v29 = vpop.f32.mrf.mxu1 }
 0x17d   : > { %847 = vst [vmem:[#allocation2 + $0x50] sm:$0xff] %v797_v26  ;;  %859 = vst [vmem:[#allocation2 + $0xb0] sm:$0xff] %v833_v27  ;;  %v799_v32 = vadd.f32 %v798_v28, %v3970_v31  ;;  %v835_v33 = vadd.f32 %v834_v29, %v661_v17 }
 0x17f   : > { %848 = vst [vmem:[#allocation2 + $0x58] sm:$0xff] %v799_v32  ;;  %860 = vst [vmem:[#allocation2 + $0xb8] sm:$0xff] %v835_v33 }
 0x180 LB: >> { %v3670_v30 = vmov 0.0   ;;  %s3986_s19 = sshll.u32 %s3666_s14, 3  ;;  %s3671_s20 = smov 64   ;;  %vm922_vm1 = vcmask 64512   ;;  %vm1252_vm2 = vcmask 523264   ;;  %vm1622_vm3 = vcmask 1048064   ;;  %s3666_s14 = sphi %s3979_s14, %s866_s14  }
 0x181   : >> { %1011 = vmatprep.mubr.f32.mxu0 %v3670_v30  ;;  %s884_s22 = sshra.s32 %s3986_s19, 3  ;;  %s868_s16 = sadd.s32 32, %s3986_s19 }
 0x182   : >> { %s3990_s30 = sshll.u32 %s884_s22, 4  ;;  %s870_s23 = sshra.s32 %s868_s16, 3 }
 0x183   : >> { %s3287_s15 = sshll.u32 %s870_s23, 4  ;;  %s888_s24 = scalar_lea.vmem [#allocation2], %s3990_s30 }
 0x184   : >> { %s874_s27 = scalar_lea.vmem [#allocation2], %s3287_s15  ;;  %s869_s22 = sadd.s32 64, %s3986_s19 }
 0x185   : >> { %s877_s16 = sshra.s32 %s869_s22, 3  ;;  %s4605_s15 = scalar_lea.vmem [#allocation3], %s3990_s30 }
 0x186   : >> { %v1254_v31 = vld [vmem:[%s888_s24] sm:$0xff]  ;;  %v876_v34 = vld [vmem:[%s874_s27 + $0x8] sm:$0xff]  ;;  %s3288_s23 = sshll.u32 %s877_s16, 4  ;;  %s866_s14 = sadd.s32 1, %s3666_s14  }
 0x187   : >> { %1256 = vrot.lane.b32.xlu0 %v1254_v31, %s3671_s20  ;;  %977 = vmatprep.subr.mxu0 %v876_v34  ;;  %v3994_v35 = vld [vmem:[%s874_s27] sm:$0xff]  ;;  %v1624_v36 = vld [vmem:[%s888_s24 + $0x8] sm:$0xff]  ;;  %s4391_s19 = scalar_lea.vmem [#allocation2], %s3288_s23  ;;  %p863_p11 = scmp.ge.s32.totalorder %s866_s14, 4  }
 0x188   : >> { %978 = vmatpush1.msra.mxu0 %v3994_v35  ;;  %s3291_s27 = sshll.u32 (%p863_p11), %s3767_s29, 10  ;;  %s3135_s22 = sshll.u32 (%p863_p11), %s3977_s17, 4  ;;  %s4955_s22 = int_to_ptr.vmem [resolvable:$true] %s3135_s22 }
 0x189   : >> { %1345 = vmatprep.subr.mxu0 %v876_v34  ;;  %s4962_s29 = scalar_lea.sflag (%p863_p11), [#allocation5], %s431_s21  ;;  %s3673_s14 = smov (%p863_p11), [#allocation4]  }
 0x18a   : > { %s3602_s30 = sshll.u32 (%p863_p11), %s3673_s14, 4  ;;  %s3603_s30 = int_to_ptr.vmem [resolvable:$false] %s3602_s30 }
 0x18b   : > { %s3604_s24 = scalar_lea.vmem (%p863_p11), %s3603_s30, 2048  ;;  %p3605_p1 = scmp.lt.s32.totalorder (%p863_p11), %s4955_s22, %s3603_s30 }
 0x1a5   : >> { %890 = vxpose.xlu0.b32.start.end [1/1] (short) (narrow) %v1254_v31, 64 }
 0x1c2   : >> { %1625 = vxpose.xlu0.b32.start.end [1/1] (short) (narrow) %v1624_v36, 64 }
 0x1f9   : >> { %v1257_v37 = vpop.permute.xlu0 %1256 }
 0x1fa   : >> { %1259 = vxpose.xlu1.b32.start.end [1/1] (short) (narrow) %v1257_v37, 64 }
 0x221   : >> { %v906_v38 = vpop.trf.xlu0 }
 0x222   : >> { %3236 = vmatmul.mubr.msk.f32.vlgmr.msra.gmra.mxu0 %vm922_vm1, %v906_v38 }
 0x223   : >> { %1017 = vmatprep.mubr.f32.mxu0 %v3670_v30  ;;  %1346 = vmatpush1.msra.mxu0 %v3994_v35 }
 0x224   : >> { %1711 = vmatprep.subr.mxu0 %v876_v34 }
 0x225   : >> { %v907_v39 = vpop.trf.xlu0 }
 0x226   : >> { %3237 = vmatmul.mubr.msk.f32.gmra.mxu0 %vm922_vm1, %v907_v39 }
 0x227   : >> { %1023 = vmatprep.mubr.f32.mxu0 %v3670_v30 }
 0x229   : >> { %v908_v40 = vpop.trf.xlu0 }
 0x22a   : >> { %3238 = vmatmul.mubr.msk.f32.gmra.mxu0 %vm922_vm1, %v908_v40 }
 0x22b   : >> { %1029 = vmatprep.mubr.f32.mxu0 %v3670_v30 }
 0x22d   : >> { %v909_v41 = vpop.trf.xlu0 }
 0x22e   : >> { %3239 = vmatmul.mubr.msk.f32.gmra.mxu0 %vm922_vm1, %v909_v41 }
 0x22f   : >> { %1035 = vmatprep.mubr.f32.mxu0 %v3670_v30 }
 0x231   : >> { %v910_v42 = vpop.trf.xlu0 }
 0x232   : >> { %3240 = vmatmul.mubr.msk.f32.gmra.mxu0 %vm922_vm1, %v910_v42 }
 0x233   : >> { %1041 = vmatprep.mubr.f32.mxu0 %v3670_v30 }
 0x234   : >> { %1987 = vrot.lane.b32.xlu1 %v1624_v36, %s3671_s20 }
 0x235   : >> { %v911_v43 = vpop.trf.xlu0 }
 0x236   : >> { %3241 = vmatmul.mubr.msk.f32.gmra.mxu0 %vm922_vm1, %v911_v43 }
 0x237   : >> { %1047 = vmatprep.mubr.f32.mxu0 %v3670_v30 }
 0x239   : >> { %v912_v44 = vpop.trf.xlu0 }
 0x23a   : >> { %3242 = vmatmul.mubr.msk.f32.gmra.mxu0 %vm922_vm1, %v912_v44 }
 0x23b   : >> { %1053 = vmatprep.mubr.f32.mxu0 %v3670_v30 }
 0x23d   : >> { %v913_v45 = vpop.trf.xlu0 }
 0x23e   : >> { %3243 = vmatmul.mubr.msk.f32.gmra.mxu0 %vm922_vm1, %v913_v45 }
 0x23f   : >> { %1379 = vmatprep.mubr.f32.mxu0 %v3670_v30 }
 0x241   : >> { %v1641_v56 = vpop.trf.xlu0 }
 0x245   : >> { %v1642_v59 = vpop.trf.xlu0 }
 0x249   : >> { %v1643_v62 = vpop.trf.xlu0 }
 0x24d   : >> { %v1644_v54 = vpop.trf.xlu0 }
 0x251   : >> { %v1645_v57 = vpop.trf.xlu0 }
 0x255   : >> { %v1646_v63 = vpop.trf.xlu0 }
 0x259   : >> { %v1647_v1 = vpop.trf.xlu0 }
 0x25d   : >> { %v1648_v3 = vpop.trf.xlu0 }
 0x276   : >> { %v1275_v46 = vpop.trf.xlu1 }
 0x277   : >> { %3245 = vmatmul.mubr.msk.f32.vlgmr.msra.gmra.mxu0 %vm922_vm1, %v1275_v46 }
 0x278   : >> { %1385 = vmatprep.mubr.f32.mxu0 %v3670_v30  ;;  %1712 = vmatpush1.msra.mxu0 %v3994_v35 }
 0x279   : >> { %2076 = vmatprep.subr.mxu0 %v876_v34 }
 0x27a   : >> { %v1276_v47 = vpop.trf.xlu1 }
 0x27b   : >> { %3246 = vmatmul.mubr.msk.f32.gmra.mxu0 %vm922_vm1, %v1276_v47 }
 0x27c   : >> { %1391 = vmatprep.mubr.f32.mxu0 %v3670_v30 }
 0x27e   : >> { %v1277_v48 = vpop.trf.xlu1 }
 0x27f   : >> { %3247 = vmatmul.mubr.msk.f32.gmra.mxu0 %vm922_vm1, %v1277_v48 }
 0x280   : >> { %1397 = vmatprep.mubr.f32.mxu0 %v3670_v30 }
 0x282   : >> { %v1278_v49 = vpop.trf.xlu1 }
 0x283   : >> { %3248 = vmatmul.mubr.msk.f32.gmra.mxu0 %vm922_vm1, %v1278_v49 }
 0x284   : >> { %1403 = vmatprep.mubr.f32.mxu0 %v3670_v30 }
 0x286   : >> { %v1279_v55 = vpop.trf.xlu1 }
 0x287   : >> { %3249 = vmatmul.mubr.msk.f32.gmra.mxu0 %vm922_vm1, %v1279_v55 }
 0x288   : >> { %1409 = vmatprep.mubr.f32.mxu0 %v3670_v30 }
 0x28a   : >> { %v1280_v58 = vpop.trf.xlu1 }
 0x28b   : >> { %3250 = vmatmul.mubr.msk.f32.gmra.mxu0 %vm922_vm1, %v1280_v58 }
 0x28c   : >> { %1415 = vmatprep.mubr.f32.mxu0 %v3670_v30 }
 0x28e   : >> { %v1281_v60 = vpop.trf.xlu1 }
 0x28f   : >> { %3251 = vmatmul.mubr.msk.f32.gmra.mxu0 %vm922_vm1, %v1281_v60 }
 0x290   : >> { %1421 = vmatprep.mubr.f32.mxu0 %v3670_v30 }
 0x292   : >> { %v1282_v61 = vpop.trf.xlu1 }
 0x293   : >> { %3252 = vmatmul.mubr.msk.f32.gmra.mxu0 %vm922_vm1, %v1282_v61 }
 0x294   : >> { %1745 = vmatprep.mubr.f32.mxu0 %v3670_v30 }
 0x297   : >> { %3253 = vmatmul.mubr.msk.f32.vlgmr.msra.gmra.mxu0 %vm922_vm1, %v1641_v56 }
 0x298   : >> { %1751 = vmatprep.mubr.f32.mxu0 %v3670_v30  ;;  %2077 = vmatpush1.msra.mxu0 %v3994_v35 }
 0x29b   : >> { %3254 = vmatmul.mubr.msk.f32.gmra.mxu0 %vm922_vm1, %v1642_v59 }
 0x29c   : >> { %1757 = vmatprep.mubr.f32.mxu0 %v3670_v30 }
 0x29f   : >> { %3255 = vmatmul.mubr.msk.f32.gmra.mxu0 %vm922_vm1, %v1643_v62 }
 0x2a0   : >> { %1763 = vmatprep.mubr.f32.mxu0 %v3670_v30 }
 0x2a3   : >> { %3256 = vmatmul.mubr.msk.f32.gmra.mxu0 %vm922_vm1, %v1644_v54 }
 0x2a4   : >> { %1769 = vmatprep.mubr.f32.mxu0 %v3670_v30 }
 0x2a6   : >> { %v1988_v0 = vpop.permute.xlu1 %1987 }
 0x2a7   : >> { %1990 = vxpose.xlu1.b32.start.end [1/1] (short) (narrow) %v1988_v0, 64  ;;  %3257 = vmatmul.mubr.msk.f32.gmra.mxu0 %vm922_vm1, %v1645_v57 }
 0x2a8   : >> { %1775 = vmatprep.mubr.f32.mxu0 %v3670_v30 }
 0x2ab   : >> { %3258 = vmatmul.mubr.msk.f32.gmra.mxu0 %vm922_vm1, %v1646_v63 }
 0x2ac   : >> { %1781 = vmatprep.mubr.f32.mxu0 %v3670_v30 }
 0x2af   : >> { %3259 = vmatmul.mubr.msk.f32.gmra.mxu0 %vm922_vm1, %v1647_v1 }
 0x2b0   : >> { %1787 = vmatprep.mubr.f32.mxu0 %v3670_v30 }
 0x2b3   : >> { %3260 = vmatmul.mubr.msk.f32.gmra.mxu0 %vm922_vm1, %v1648_v3 }
 0x2b4   : >> { %2110 = vmatprep.mubr.f32.mxu0 %v3670_v30 }
 0x2e2   : >> { %v4049_v51 = vpop.f32.mrf.mxu0 }
 0x2e4   : >> { %v4051_v53 = vpop.f32.mrf.mxu0 }
 0x2e5   : >> { %v1060_v31 = vmax.f32 %v4049_v51, %v4051_v53 }
 0x2e6   : >> { %v4053_v4 = vpop.f32.mrf.mxu0 }
 0x2e8   : >> { %v4055_v5 = vpop.f32.mrf.mxu0 }
 0x2e9   : >> { %v1063_v33 = vmax.f32 %v4053_v4, %v4055_v5 }
 0x2ea   : >> { %v4057_v6 = vpop.f32.mrf.mxu0 }
 0x2ec   : >> { %v4059_v50 = vpop.f32.mrf.mxu0 }
 0x2ed   : >> { %v1066_v32 = vmax.f32 %v4057_v6, %v4059_v50 }
 0x2ee   : >> { %v4061_v52 = vpop.f32.mrf.mxu0 }
 0x2f0   : >> { %v4063_v7 = vpop.f32.mrf.mxu0 }
 0x2f1   : >> { %v1069_v29 = vmax.f32 %v4061_v52, %v4063_v7 }
 0x2f2   : >> { %v4065_v10 = vpop.f32.mrf.mxu0 }
 0x2f4   : >> { %v4067_v13 = vpop.f32.mrf.mxu0 }
 0x2f5   : >> { %v1072_v28 = vmax.f32 %v4065_v10, %v4067_v13 }
 0x2f6   : >> { %v4069_v15 = vpop.f32.mrf.mxu0 }
 0x2f8   : >> { %v4071_v16 = vpop.f32.mrf.mxu0 }
 0x2f9   : >> { %v1075_v27 = vmax.f32 %v4069_v15, %v4071_v16 }
 0x2fa   : >> { %v4073_v17 = vpop.f32.mrf.mxu0 }
 0x2fc   : >> { %v4075_v20 = vpop.f32.mrf.mxu0 }
 0x2fd   : >> { %v1078_v22 = vmax.f32 %v4073_v17, %v4075_v20 }
 0x2fe   : >> { %v4079_v23 = vpop.f32.mrf.mxu0 }
 0x2ff   : >> { %1079 = vmax.xlane.f32.xlu1 %v1078_v22 }
 0x300   : >> { %v4081_v24 = vpop.f32.mrf.mxu0 }
 0x301   : >> { %v1081_v26 = vmax.f32 %v4079_v23, %v4081_v24 }
 0x303   : >> { %1082 = vmax.xlane.f32.xlu0 %v1081_v26 }
 0x307   : >> { %1076 = vmax.xlane.f32.xlu0 %v1075_v27 }
 0x30b   : >> { %1073 = vmax.xlane.f32.xlu0 %v1072_v28 }
 0x30f   : >> { %1070 = vmax.xlane.f32.xlu0 %v1069_v29 }
 0x313   : >> { %1067 = vmax.xlane.f32.xlu0 %v1066_v32 }
 0x317   : >> { %1064 = vmax.xlane.f32.xlu0 %v1063_v33 }
 0x31b   : >> { %1061 = vmax.xlane.f32.xlu0 %v1060_v31 }
 0x323   : >> { %v2006_v34 = vpop.trf.xlu1 }
 0x324   : >> { %3261 = vmatmul.mubr.msk.f32.vlgmr.msra.gmra.mxu0 %vm922_vm1, %v2006_v34 }
 0x325   : >> { %2116 = vmatprep.mubr.f32.mxu0 %v3670_v30 }
 0x327   : >> { %v2007_v35 = vpop.trf.xlu1 }
 0x328   : >> { %3262 = vmatmul.mubr.msk.f32.gmra.mxu0 %vm922_vm1, %v2007_v35 }
 0x329   : >> { %2122 = vmatprep.mubr.f32.mxu0 %v3670_v30 }
 0x32b   : >> { %v2008_v36 = vpop.trf.xlu1 }
 0x32c   : >> { %3263 = vmatmul.mubr.msk.f32.gmra.mxu0 %vm922_vm1, %v2008_v36 }
 0x32d   : >> { %2128 = vmatprep.mubr.f32.mxu0 %v3670_v30 }
 0x32f   : >> { %v2009_v37 = vpop.trf.xlu1 }
 0x330   : >> { %3264 = vmatmul.mubr.msk.f32.gmra.mxu0 %vm922_vm1, %v2009_v37 }
 0x331   : >> { %2134 = vmatprep.mubr.f32.mxu0 %v3670_v30 }
 0x333   : >> { %v2010_v38 = vpop.trf.xlu1 }
 0x334   : >> { %3265 = vmatmul.mubr.msk.f32.gmra.mxu0 %vm922_vm1, %v2010_v38 }
 0x335   : >> { %2140 = vmatprep.mubr.f32.mxu0 %v3670_v30 }
 0x337   : >> { %v2011_v39 = vpop.trf.xlu1  ;;  %v4107_v40 = vpop.f32.mrf.mxu0 }
 0x338   : >> { %3266 = vmatmul.mubr.msk.f32.gmra.mxu0 %vm922_vm1, %v2011_v39 }
 0x339   : >> { %v4110_v41 = vpop.f32.mrf.mxu0  ;;  %2146 = vmatprep.mubr.f32.mxu0 %v3670_v30 }
 0x33a   : >> { %v1428_v54 = vmax.f32 %v4107_v40, %v4110_v41 }
 0x33b   : >> { %v2012_v42 = vpop.trf.xlu1  ;;  %v4113_v43 = vpop.f32.mrf.mxu0 }
 0x33c   : >> { %3267 = vmatmul.mubr.msk.f32.gmra.mxu0 %vm922_vm1, %v2012_v42 }
 0x33d   : >> { %v4116_v44 = vpop.f32.mrf.mxu0  ;;  %2152 = vmatprep.mubr.f32.mxu0 %v3670_v30 }
 0x33e   : >> { %v1431_v35 = vmax.f32 %v4113_v43, %v4116_v44 }
 0x33f   : >> { %v2013_v45 = vpop.trf.xlu1  ;;  %v4119_v46 = vpop.f32.mrf.mxu0 }
 0x340   : >> { %3268 = vmatmul.mubr.msk.f32.gmra.mxu0 %vm922_vm1, %v2013_v45 }
 0x341   : >> { %v4122_v47 = vpop.f32.mrf.mxu0 }
 0x342   : >> { %v1434_v30 = vmax.f32 %v4119_v46, %v4122_v47 }
 0x343   : >> { %v4124_v48 = vpop.f32.mrf.mxu0 }
 0x345   : >> { %v4126_v49 = vpop.f32.mrf.mxu0 }
 0x346   : >> { %v1437_v33 = vmax.f32 %v4124_v48, %v4126_v49 }
 0x347   : >> { %v4128_v55 = vpop.f32.mrf.mxu0 }
 0x349   : >> { %v4130_v56 = vpop.f32.mrf.mxu0 }
 0x34a   : >> { %v1440_v58 = vmax.f32 %v4128_v55, %v4130_v56 }
 0x34b   : >> { %v4134_v59 = vpop.f32.mrf.mxu0 }
 0x34c   : >> { %1441 = vmax.xlane.f32.xlu1 %v1440_v58 }
 0x34d   : >> { %v4138_v60 = vpop.f32.mrf.mxu0 }
 0x34e   : >> { %v1443_v28 = vmax.f32 %v4134_v59, %v4138_v60 }
 0x34f   : >> { %v4140_v61 = vpop.f32.mrf.mxu0 }
 0x350   : >> { %1435 = vmax.xlane.f32.xlu1 %v1434_v30 }
 0x351   : >> { %v4142_v62 = vpop.f32.mrf.mxu0 }
 0x352   : >> { %v1446_v3 = vmax.f32 %v4140_v61, %v4142_v62 }
 0x353   : >> { %v4146_v57 = vpop.f32.mrf.mxu0 }
 0x354   : >> { %1429 = vmax.xlane.f32.xlu1 %v1428_v54 }
 0x355   : >> { %v4148_v63 = vpop.f32.mrf.mxu0 }
 0x356   : >> { %v1449_v0 = vmax.f32 %v4146_v57, %v4148_v63 }
 0x357   : >> { %v4152_v1 = vpop.f32.mrf.mxu0 }
 0x358   : >> { %1450 = vmax.xlane.f32.xlu0 %v1449_v0 }
 0x359   : >> { %v4156_v22 = vpop.f32.mrf.mxu0 }
 0x35b   : >> { %v4158_v26 = vpop.f32.mrf.mxu0 }
 0x35c   : >> { %1447 = vmax.xlane.f32.xlu0 %v1446_v3 }
 0x35d   : >> { %v4160_v27 = vpop.f32.mrf.mxu0 }
 0x35f   : >> { %v4164_v29 = vpop.f32.mrf.mxu0 }
 0x360   : >> { %1444 = vmax.xlane.f32.xlu0 %v1443_v28 }
 0x361   : >> { %v4166_v32 = vpop.f32.mrf.mxu0 }
 0x362   : >> { %v1800_v28 = vmax.f32 %v4164_v29, %v4166_v32 }
 0x363   : >> { %v4170_v31 = vpop.f32.mrf.mxu0 }
 0x364   : >> { %1438 = vmax.xlane.f32.xlu0 %v1437_v33 }
 0x365   : >> { %v4172_v34 = vpop.f32.mrf.mxu0 }
 0x367   : >> { %v4176_v36 = vpop.f32.mrf.mxu0 }
 0x368   : >> { %1432 = vmax.xlane.f32.xlu0 %v1431_v35  ;;  %v1803_v35 = vmax.f32 %v4170_v31, %v4172_v34 }
 0x369   : >> { %v4178_v37 = vpop.f32.mrf.mxu0 }
 0x36a   : >> { %v1806_v54 = vmax.f32 %v4176_v36, %v4178_v37 }
 0x36b   : >> { %v4180_v38 = vpop.f32.mrf.mxu0 }
 0x36d   : >> { %v4182_v39 = vpop.f32.mrf.mxu0 }
 0x36e   : >> { %v1809_v33 = vmax.f32 %v4180_v38, %v4182_v39 }
 0x36f   : >> { %v4184_v42 = vpop.f32.mrf.mxu0 }
 0x371   : >> { %v4186_v45 = vpop.f32.mrf.mxu0 }
 0x372   : >> { %v1812_v58 = vmax.f32 %v4184_v42, %v4186_v45 }
 0x373   : >> { %v4190_v30 = vpop.f32.mrf.mxu0 }
 0x374   : >> { %1813 = vmax.xlane.f32.xlu1 %v1812_v58  ;;  %v1797_v58 = vmax.f32 %v4158_v26, %v4160_v27 }
 0x375   : >> { %v4194_v0 = vpop.f32.mrf.mxu0 }
 0x376   : >> { %v1815_v3 = vmax.f32 %v4190_v30, %v4194_v0 }
 0x378   : >> { %1807 = vmax.xlane.f32.xlu1 %v1806_v54  ;;  %1816 = vmax.xlane.f32.xlu0 %v1815_v3  ;;  %v1794_v54 = vmax.f32 %v4152_v1, %v4156_v22 }
 0x37c   : >> { %1801 = vmax.xlane.f32.xlu1 %v1800_v28  ;;  %1810 = vmax.xlane.f32.xlu0 %v1809_v33 }
 0x380   : >> { %1804 = vmax.xlane.f32.xlu0 %v1803_v35 }
 0x384   : >> { %1798 = vmax.xlane.f32.xlu0 %v1797_v58 }
 0x388   : >> { %1795 = vmax.xlane.f32.xlu0 %v1794_v54  ;;  %v1080_v3 = vpop.xlane.xlu1 %1079 }
 0x389   : >> { %v1096_v2 = vsub.f32 %v4073_v17, %v1080_v3  ;;  %v1097_v19 = vsub.f32 %v4075_v20, %v1080_v3 }
 0x38b   : >> { %v1124_v25 = vmul.f32 1.442695, %v1096_v2  ;;  %v1126_v33 = vmul.f32 1.442695, %v1097_v19 }
 0x38c   : >> { %v1083_v28 = vpop.xlane.xlu0 %1082 }
 0x38d   : >> { %v1098_v21 = vsub.f32 %v4079_v23, %v1083_v28  ;;  %v1099_v35 = vsub.f32 %v4081_v24, %v1083_v28  ;;  %3368 = vpow2.f32 %v1124_v25 }
 0x38e   : >> { %3370 = vpow2.f32 %v1126_v33 }
 0x38f   : >> { %v1128_v18 = vmul.f32 1.442695, %v1098_v21  ;;  %v1130_v12 = vmul.f32 1.442695, %v1099_v35 }
 0x390   : >> { %v1077_v58 = vpop.xlane.xlu0 %1076 }
 0x391   : >> { %3372 = vpow2.f32 %v1128_v18  ;;  %v1094_v54 = vsub.f32 %v4069_v15, %v1077_v58  ;;  %v1095_v11 = vsub.f32 %v4071_v16, %v1077_v58 }
 0x392   : >> { %3374 = vpow2.f32 %v1130_v12 }
 0x393   : >> { %v1120_v17 = vmul.f32 1.442695, %v1094_v54  ;;  %v1122_v20 = vmul.f32 1.442695, %v1095_v11 }
 0x394   : >> { %v1074_v2 = vpop.xlane.xlu0 %1073 }
 0x395   : >> { %3376 = vpow2.f32 %v1120_v17  ;;  %v1092_v19 = vsub.f32 %v4065_v10, %v1074_v2  ;;  %v1093_v23 = vsub.f32 %v4067_v13, %v1074_v2 }
 0x396   : >> { %3378 = vpow2.f32 %v1122_v20 }
 0x397   : >> { %v1116_v21 = vmul.f32 1.442695, %v1092_v19  ;;  %v1118_v24 = vmul.f32 1.442695, %v1093_v23 }
 0x398   : >> { %v1071_v25 = vpop.xlane.xlu0 %1070 }
 0x399   : >> { %v1090_v3 = vsub.f32 %v4061_v52, %v1071_v25  ;;  %v1091_v18 = vsub.f32 %v4063_v7, %v1071_v25  ;;  %3380 = vpow2.f32 %v1116_v21 }
 0x39a   : >> { %v4218_v16 = vpop.eup %3368  ;;  %3382 = vpow2.f32 %v1118_v24 }
 0x39b   : >> { %v1112_v15 = vmul.f32 1.442695, %v1090_v3  ;;  %v1114_v11 = vmul.f32 1.442695, %v1091_v18  ;;  %v4220_v28 = vpop.eup %3370 }
 0x39c   : >> { %v1068_v12 = vpop.xlane.xlu0 %1067 }
 0x39d   : >> { %v1088_v10 = vsub.f32 %v4057_v6, %v1068_v12  ;;  %v1089_v13 = vsub.f32 %v4059_v50, %v1068_v12  ;;  %3384 = vpow2.f32 %v1112_v15  ;;  %v1150_v6 = vadd.f32 %v4220_v28, %v4218_v16 }
 0x39e   : >> { %v4224_v33 = vpop.eup %3372  ;;  %3386 = vpow2.f32 %v1114_v11 }
 0x39f   : >> { %v4226_v35 = vpop.eup %3374  ;;  %v1108_v52 = vmul.f32 1.442695, %v1088_v10  ;;  %v1110_v7 = vmul.f32 1.442695, %v1089_v13 }
 0x3a0   : >> { %v1065_v58 = vpop.xlane.xlu0 %1064  ;;  %v1153_v54 = vadd.f32 %v4226_v35, %v4224_v33 }
 0x3a1   : >> { %v1086_v17 = vsub.f32 %v4053_v4, %v1065_v58  ;;  %v1087_v20 = vsub.f32 %v4055_v5, %v1065_v58  ;;  %3388 = vpow2.f32 %v1108_v52 }
 0x3a2   : >> { %v4232_v2 = vpop.eup %3376  ;;  %1154 = vadd.xlane.f32.xlu1 %v1153_v54  ;;  %3390 = vpow2.f32 %v1110_v7 }
 0x3a3   : >> { %v4236_v50 = vpop.eup %3378  ;;  %v1104_v19 = vmul.f32 1.442695, %v1086_v17  ;;  %v1106_v23 = vmul.f32 1.442695, %v1087_v20 }
 0x3a4   : >> { %v1062_v21 = vpop.xlane.xlu0 %1061  ;;  %v1147_v4 = vadd.f32 %v4236_v50, %v4232_v2 }
 0x3a5   : >> { %v1084_v24 = vsub.f32 %v4049_v51, %v1062_v21  ;;  %v1085_v25 = vsub.f32 %v4051_v53, %v1062_v21  ;;  %3392 = vpow2.f32 %v1104_v19 }
 0x3a6   : >> { %1151 = vadd.xlane.f32.xlu1 %v1150_v6  ;;  %v4242_v3 = vpop.eup %3380  ;;  %3394 = vpow2.f32 %v1106_v23 }
 0x3a7   : >> { %v1100_v5 = vmul.f32 1.442695, %v1084_v24  ;;  %v1102_v18 = vmul.f32 1.442695, %v1085_v25  ;;  %v4244_v15 = vpop.eup %3382 }
 0x3a8   : >> { %v1144_v51 = vadd.f32 %v4244_v15, %v4242_v3 }
 0x3a9   : >> { %3396 = vpow2.f32 %v1100_v5 }
 0x3aa   : >> { %1148 = vadd.xlane.f32.xlu1 %v1147_v4  ;;  %v4246_v11 = vpop.eup %3384  ;;  %3398 = vpow2.f32 %v1102_v18 }
 0x3ab   : >> { %5059 = vst [vmem:[#allocation19_spill] sm:$0xff] %v4246_v11  ;;  %v4250_v53 = vpop.eup %3386 }
 0x3ac   : >> { %v1141_v10 = vadd.f32 %v4250_v53, %v4246_v11 }
 0x3ae   : >> { %1145 = vadd.xlane.f32.xlu1 %v1144_v51  ;;  %v4252_v12 = vpop.eup %3388 }
 0x3af   : >> { %5060 = vst [vmem:[#allocation20_spill] sm:$0xff] %v4252_v12  ;;  %v4256_v13 = vpop.eup %3390 }
 0x3b0   : >> { %5061 = vst [vmem:[#allocation21_spill] sm:$0xff] %v4256_v13  ;;  %v1138_v7 = vadd.f32 %v4256_v13, %v4252_v12 }
 0x3b2   : >> { %1142 = vadd.xlane.f32.xlu1 %v1141_v10  ;;  %v4258_v52 = vpop.eup %3392 }
 0x3b3   : >> { %5062 = vst [vmem:[#allocation22_spill] sm:$0xff] %v4258_v52  ;;  %v4262_v58 = vpop.eup %3394 }
 0x3b4   : >> { %5063 = vst [vmem:[#allocation23_spill] sm:$0xff] %v4262_v58  ;;  %v1135_v17 = vadd.f32 %v4262_v58, %v4258_v52 }
 0x3b6   : >> { %1139 = vadd.xlane.f32.xlu1 %v1138_v7  ;;  %v4264_v54 = vpop.eup %3396 }
 0x3b7   : >> { %5064 = vst [vmem:[#allocation24_spill] sm:$0xff] %v4264_v54  ;;  %v4268_v20 = vpop.eup %3398 }
 0x3b8   : >> { %5065 = vst [vmem:[#allocation25_spill] sm:$0xff] %v4268_v20  ;;  %v1132_v6 = vadd.f32 %v4268_v20, %v4264_v54 }
 0x3ba   : >> { %1136 = vadd.xlane.f32.xlu1 %v1135_v17 }
 0x3be   : >> { %1133 = vadd.xlane.f32.xlu1 %v1132_v6 }
 0x3d5   : >> { %v1442_v19 = vpop.xlane.xlu1 %1441 }
 0x3d6   : >> { %v1460_v4 = vsub.f32 %v4128_v55, %v1442_v19  ;;  %v1461_v10 = vsub.f32 %v4130_v56, %v1442_v19 }
 0x3d9   : >> { %v1436_v25 = vpop.xlane.xlu1 %1435 }
 0x3da   : >> { %v1457_v9 = vsub.f32 %v4122_v47, %v1436_v25 }
 0x3dd   : >> { %v1430_v56 = vpop.xlane.xlu1 %1429 }
 0x3e1   : >> { %v1451_v23 = vpop.xlane.xlu0 %1450 }
 0x3e2   : >> { %v1466_v21 = vsub.f32 %v4146_v57, %v1451_v23  ;;  %v1467_v24 = vsub.f32 %v4148_v63, %v1451_v23  ;;  %v1484_v57 = vmul.f32 1.442695, %v1460_v4  ;;  %v1456_v63 = vsub.f32 %v4119_v46, %v1436_v25 }
 0x3e3   : >> { %v1478_v46 = vmul.f32 1.442695, %v1457_v9  ;;  %v1453_v4 = vsub.f32 %v4110_v41, %v1430_v56 }
 0x3e4   : >> { %v1496_v5 = vmul.f32 1.442695, %v1466_v21  ;;  %v1498_v18 = vmul.f32 1.442695, %v1467_v24  ;;  %v4275_v51 = vpop.f32.mrf.mxu0  ;;  %v1486_v24 = vmul.f32 1.442695, %v1461_v10 }
 0x3e5   : >> { %v1448_v7 = vpop.xlane.xlu0 %1447  ;;  %v1470_v25 = vmul.f32 1.442695, %v1453_v4 }
 0x3e6   : >> { %3400 = vpow2.f32 %v1496_v5  ;;  %v1464_v17 = vsub.f32 %v4140_v61, %v1448_v7  ;;  %v1465_v6 = vsub.f32 %v4142_v62, %v1448_v7  ;;  %v4280_v14 = vpop.f32.mrf.mxu0  ;;  %v1476_v61 = vmul.f32 1.442695, %v1456_v63 }
 0x3e7   : >> { %3402 = vpow2.f32 %v1498_v18  ;;  %v1452_v62 = vsub.f32 %v4107_v40, %v1430_v56 }
 0x3e8   : >> { %v1492_v23 = vmul.f32 1.442695, %v1464_v17  ;;  %v1494_v55 = vmul.f32 1.442695, %v1465_v6  ;;  %v4283_v21 = vpop.f32.mrf.mxu0 }
 0x3e9   : >> { %v1468_v10 = vmul.f32 1.442695, %v1452_v62  ;;  %v4296_v7 = vpop.xlane.xlu0 %1444 }
 0x3ea   : >> { %3404 = vpow2.f32 %v1492_v23  ;;  %v4286_v19 = vpop.f32.mrf.mxu0 }
 0x3eb   : >> { %3406 = vpow2.f32 %v1494_v55 }
 0x3ec   : >> { %3408 = vpow2.f32 %v1484_v57  ;;  %v4289_v5 = vpop.f32.mrf.mxu0 }
 0x3ed   : >> { %3410 = vpow2.f32 %v1486_v24  ;;  %v4312_v23 = vpop.xlane.xlu0 %1438 }
 0x3ee   : >> { %v4292_v18 = vpop.f32.mrf.mxu0  ;;  %3412 = vpow2.f32 %v1476_v61 }
 0x3ef   : >> { %3414 = vpow2.f32 %v1478_v46 }
 0x3f0   : >> { %v4294_v47 = vpop.f32.mrf.mxu0  ;;  %3416 = vpow2.f32 %v1468_v10 }
 0x3f1   : >> { %3418 = vpow2.f32 %v1470_v25  ;;  %v4330_v25 = vpop.xlane.xlu0 %1432 }
 0x3f2   : >> { %v4298_v17 = vpop.f32.mrf.mxu0 }
 0x3f3   : >> { %v4300_v6 = vpop.eup %3400 }
 0x3f4   : >> { %5066 = vst [vmem:[#allocation26_spill] sm:$0xff] %v4300_v6  ;;  %v4302_v40 = vpop.eup %3402  ;;  %v4304_v9 = vpop.f32.mrf.mxu0 }
 0x3f5   : >> { %5067 = vst [vmem:[#allocation27_spill] sm:$0xff] %v4302_v40  ;;  %v1521_v41 = vadd.f32 %v4302_v40, %v4300_v6 }
 0x3f6   : >> { %v4308_v57 = vpop.f32.mrf.mxu0 }
 0x3f7   : >> { %v4310_v63 = vpop.eup %3404  ;;  %1522 = vadd.xlane.f32.xlu1 %v1521_v41 }
 0x3f8   : >> { %5068 = vst [vmem:[#allocation28_spill] sm:$0xff] %v4310_v63  ;;  %v4314_v55 = vpop.eup %3406  ;;  %v4316_v24 = vpop.f32.mrf.mxu0 }
 0x3f9   : >> { %5069 = vst [vmem:[#allocation29_spill] sm:$0xff] %v4314_v55  ;;  %v4318_v56 = vpop.eup %3408  ;;  %v1518_v61 = vadd.f32 %v4314_v55, %v4310_v63 }
 0x3fa   : >> { %5070 = vst [vmem:[#allocation30_spill] sm:$0xff] %v4318_v56  ;;  %v4322_v62 = vpop.eup %3410  ;;  %v4324_v46 = vpop.f32.mrf.mxu0 }
 0x3fb   : >> { %5071 = vst [vmem:[#allocation31_spill] sm:$0xff] %v4322_v62  ;;  %1519 = vadd.xlane.f32.xlu1 %v1518_v61  ;;  %v4328_v10 = vpop.eup %3412  ;;  %v1512_v8 = vadd.f32 %v4322_v62, %v4318_v56 }
 0x3fc   : >> { %v4326_v4 = vpop.f32.mrf.mxu0  ;;  %v4334_v6 = vpop.eup %3414 }
 0x3fd   : >> { %v1814_v41 = vpop.xlane.xlu1 %1813  ;;  %v4342_v52 = vpop.eup %3416  ;;  %v1506_v56 = vadd.f32 %v4334_v6, %v4328_v10 }
 0x3fe   : >> { %v1830_v40 = vsub.f32 %v4184_v42, %v1814_v41  ;;  %v1831_v63 = vsub.f32 %v4186_v45, %v1814_v41  ;;  %v4338_v55 = vpop.f32.mrf.mxu0  ;;  %v4348_v62 = vpop.eup %3418 }
 0x3ff   : >> { %1513 = vadd.xlane.f32.xlu1 %v1512_v8 }
 0x400   : >> { %v1858_v61 = vmul.f32 1.442695, %v1830_v40  ;;  %v1860_v54 = vmul.f32 1.442695, %v1831_v63  ;;  %v4340_v20 = vpop.f32.mrf.mxu0 }
 0x401   : >> { %v1808_v58 = vpop.xlane.xlu1 %1807  ;;  %v4344_v12 = vpop.xlane.xlu0 %1816 }
 0x402   : >> { %3420 = vpow2.f32 %v1858_v61  ;;  %v1826_v42 = vsub.f32 %v4176_v36, %v1808_v58  ;;  %v1827_v45 = vsub.f32 %v4178_v37, %v1808_v58  ;;  %v4352_v8 = vpop.f32.mrf.mxu0  ;;  %v1500_v61 = vadd.f32 %v4348_v62, %v4342_v52 }
 0x403   : >> { %3422 = vpow2.f32 %v1860_v54  ;;  %v2180_v40 = vmax.f32 %v4340_v20, %v4352_v8  ;;  %1507 = vadd.xlane.f32.xlu1 %v1506_v56  ;;  %v2177_v58 = vmax.f32 %v4326_v4, %v4338_v55 }
 0x404   : >> { %v1850_v63 = vmul.f32 1.442695, %v1826_v42  ;;  %v1852_v41 = vmul.f32 1.442695, %v1827_v45  ;;  %v1462_v45 = vsub.f32 %v4134_v59, %v4296_v7 }
 0x405   : >> { %v1802_v13 = vpop.xlane.xlu1 %1801  ;;  %2181 = vmax.xlane.f32.xlu0 %v2180_v40  ;;  %v4356_v11 = vpop.xlane.xlu0 %1810  ;;  %v1459_v40 = vsub.f32 %v4126_v49, %v4312_v23 }
 0x406   : >> { %3424 = vpow2.f32 %v1850_v63  ;;  %v1822_v36 = vsub.f32 %v4164_v29, %v1802_v13  ;;  %v1823_v37 = vsub.f32 %v4166_v32, %v1802_v13  ;;  %v1463_v29 = vsub.f32 %v4138_v60, %v4296_v7 }
 0x407   : >> { %3426 = vpow2.f32 %v1852_v41  ;;  %1501 = vadd.xlane.f32.xlu1 %v1500_v61  ;;  %v2174_v32 = vmax.f32 %v4316_v24, %v4324_v46  ;;  %v1458_v13 = vsub.f32 %v4124_v48, %v4312_v23  ;;  %v1488_v41 = vmul.f32 1.442695, %v1462_v45 }
 0x408   : >> { %v1842_v54 = vmul.f32 1.442695, %v1822_v36  ;;  %v1844_v56 = vmul.f32 1.442695, %v1823_v37  ;;  %v1490_v61 = vmul.f32 1.442695, %v1463_v29  ;;  %v2171_v60 = vmax.f32 %v4304_v9, %v4308_v57 }
 0x409   : >> { %2178 = vmax.xlane.f32.xlu0 %v2177_v58  ;;  %v4364_v42 = vpop.xlane.xlu0 %1804  ;;  %v1480_v36 = vmul.f32 1.442695, %v1458_v13  ;;  %v1482_v48 = vmul.f32 1.442695, %v1459_v40  ;;  %v1454_v23 = vsub.f32 %v4113_v43, %v4330_v25  ;;  %v1455_v29 = vsub.f32 %v4116_v44, %v4330_v25 }
 0x40a   : >> { %3428 = vpow2.f32 %v1842_v54  ;;  %v1832_v44 = vsub.f32 %v4190_v30, %v4344_v12 }
 0x40b   : >> { %3430 = vpow2.f32 %v1844_v56  ;;  %v4394_v56 = vld [vmem:[%s4391_s19 + $0x8] sm:$0xff]  ;;  %v1472_v40 = vmul.f32 1.442695, %v1454_v23 }
 0x40c   : >> { %3432 = vpow2.f32 %v1488_v41  ;;  %1244 = vmatprep.mubr.f32.mxu1 %v4394_v56  ;;  %v1474_v41 = vmul.f32 1.442695, %v1455_v29  ;;  %v1862_v30 = vmul.f32 1.442695, %v1832_v44 }
 0x40d   : >> { %2175 = vmax.xlane.f32.xlu0 %v2174_v32  ;;  %v4376_v63 = vpop.xlane.xlu0 %1798  ;;  %3434 = vpow2.f32 %v1490_v61  ;;  %v2168_v32 = vmax.f32 %v4294_v47, %v4298_v17  ;;  %v1833_v61 = vsub.f32 %v4194_v0, %v4344_v12  ;;  %v1829_v0 = vsub.f32 %v4182_v39, %v4356_v11 }
 0x40e   : >> { %3436 = vpow2.f32 %v1480_v36  ;;  %v2162_v12 = vmax.f32 %v4283_v21, %v4286_v19  ;;  %v2159_v39 = vmax.f32 %v4275_v51, %v4280_v14 }
 0x40f   : >> { %v4379_v59 = vpop.eup %3420  ;;  %3438 = vpow2.f32 %v1482_v48  ;;  %v1856_v29 = vmul.f32 1.442695, %v1829_v0 }
 0x410   : >> { %v4383_v7 = vpop.eup %3422 }
 0x411   : >> { %2172 = vmax.xlane.f32.xlu0 %v2171_v60  ;;  %v1796_v37 = vpop.xlane.xlu0 %1795  ;;  %v1884_v49 = vadd.f32 %v4383_v7, %v4379_v59  ;;  %v2165_v60 = vmax.f32 %v4289_v5, %v4292_v18 }
 0x412   : >> { %v1818_v58 = vsub.f32 %v4152_v1, %v1796_v37  ;;  %v1819_v54 = vsub.f32 %v4156_v22, %v1796_v37  ;;  %v1828_v37 = vsub.f32 %v4180_v38, %v4356_v11  ;;  %v1825_v38 = vsub.f32 %v4172_v34, %v4364_v42 }
 0x413   : >> { %v4396_v45 = vpop.eup %3424  ;;  %1885 = vadd.xlane.f32.xlu1 %v1884_v49  ;;  %v1864_v49 = vmul.f32 1.442695, %v1833_v61  ;;  %v1821_v34 = vsub.f32 %v4160_v27, %v4376_v63 }
 0x414   : >> { %v4403_v43 = vpop.eup %3426  ;;  %v1834_v1 = vmul.f32 1.442695, %v1818_v58  ;;  %v1836_v22 = vmul.f32 1.442695, %v1819_v54  ;;  %v1854_v23 = vmul.f32 1.442695, %v1828_v37  ;;  %v1824_v58 = vsub.f32 %v4170_v31, %v4364_v42 }
 0x415   : >> { %2169 = vmax.xlane.f32.xlu0 %v2168_v32  ;;  %v1878_v13 = vadd.f32 %v4403_v43, %v4396_v45  ;;  %v1820_v31 = vsub.f32 %v4158_v26, %v4376_v63  ;;  %v1840_v26 = vmul.f32 1.442695, %v1821_v34 }
 0x416   : >> { %3440 = vpow2.f32 %v1834_v1 }
 0x417   : >> { %v4409_v25 = vpop.eup %3428  ;;  %3442 = vpow2.f32 %v1836_v22  ;;  %1879 = vadd.xlane.f32.xlu1 %v1878_v13  ;;  %v1846_v22 = vmul.f32 1.442695, %v1824_v58  ;;  %v1838_v61 = vmul.f32 1.442695, %v1820_v31 }
 0x418   : >> { %v4415_v36 = vpop.eup %3430  ;;  %3444 = vpow2.f32 %v1472_v40  ;;  %v1848_v40 = vmul.f32 1.442695, %v1825_v38 }
 0x419   : >> { %2166 = vmax.xlane.f32.xlu0 %v2165_v60  ;;  %v1872_v48 = vadd.f32 %v4415_v36, %v4409_v25  ;;  %3446 = vpow2.f32 %v1474_v41  ;;  %v4427_v54 = vpop.eup %3432 }
 0x41a   : >> { %3448 = vpow2.f32 %v1862_v30  ;;  %v4433_v11 = vpop.eup %3434 }
 0x41b   : >> { %1873 = vadd.xlane.f32.xlu1 %v1872_v48  ;;  %3450 = vpow2.f32 %v1864_v49  ;;  %v4435_v32 = vpop.eup %3436  ;;  %v1515_v42 = vadd.f32 %v4433_v11, %v4427_v54 }
 0x41c   : >> { %v4437_v1 = vpop.eup %3438  ;;  %3452 = vpow2.f32 %v1854_v23 }
 0x41d   : >> { %2163 = vmax.xlane.f32.xlu0 %v2162_v12  ;;  %3454 = vpow2.f32 %v1856_v29  ;;  %v1509_v48 = vadd.f32 %v4437_v1, %v4435_v32 }
 0x41e   : >> { %3456 = vpow2.f32 %v1846_v22 }
 0x41f   : >> { %3458 = vpow2.f32 %v1848_v40 }
 0x420   : >> { %3460 = vpow2.f32 %v1838_v61 }
 0x421   : >> { %2160 = vmax.xlane.f32.xlu0 %v2159_v39  ;;  %3462 = vpow2.f32 %v1840_v26 }
 0x423   : >> { %v4441_v13 = vpop.eup %3440 }
 0x424   : >> { %v4447_v44 = vpop.eup %3442 }
 0x425   : >> { %1516 = vadd.xlane.f32.xlu0 %v1515_v42  ;;  %v1866_v41 = vadd.f32 %v4447_v44, %v4441_v13  ;;  %v4451_v60 = vpop.eup %3444 }
 0x426   : >> { %v4455_v27 = vpop.eup %3446 }
 0x427   : >> { %1867 = vadd.xlane.f32.xlu1 %v1866_v41  ;;  %v4457_v63 = vpop.eup %3448  ;;  %v1503_v37 = vadd.f32 %v4455_v27, %v4451_v60 }
 0x428   : >> { %v4461_v49 = vpop.eup %3450 }
 0x429   : >> { %1510 = vadd.xlane.f32.xlu0 %v1509_v48  ;;  %v4463_v0 = vpop.eup %3452  ;;  %v1887_v23 = vadd.f32 %v4461_v49, %v4457_v63 }
 0x42a   : >> { %v4467_v58 = vpop.eup %3454 }
 0x42b   : >> { %v1155_v30 = vpop.xlane.xlu1 %1154  ;;  %v4469_v29 = vpop.eup %3456  ;;  %v1881_v39 = vadd.f32 %v4467_v58, %v4463_v0 }
 0x42c   : >> { %3464 = vrcp.f32 %v1155_v30  ;;  %v4473_v22 = vpop.eup %3458 }
 0x42d   : >> { %1504 = vadd.xlane.f32.xlu0 %v1503_v37  ;;  %v4475_v31 = vpop.eup %3460  ;;  %v1875_v34 = vadd.f32 %v4473_v22, %v4469_v29 }
 0x42e   : >> { %v4479_v42 = vpop.eup %3462 }
 0x42f   : >> { %v1152_v12 = vpop.xlane.xlu1 %1151  ;;  %v1869_v30 = vadd.f32 %v4479_v42, %v4475_v31 }
 0x430   : >> { %3466 = vrcp.f32 %v1152_v12 }
 0x431   : >> { %1888 = vadd.xlane.f32.xlu0 %v1887_v23 }
 0x433   : >> { %v1149_v38 = vpop.xlane.xlu1 %1148 }
 0x434   : >> { %3468 = vrcp.f32 %v1149_v38 }
 0x435   : >> { %1882 = vadd.xlane.f32.xlu0 %v1881_v39 }
 0x437   : >> { %v1146_v40 = vpop.xlane.xlu1 %1145 }
 0x438   : >> { %3470 = vrcp.f32 %v1146_v40 }
 0x439   : >> { %v3465_v41 = vpop.eup %3464  ;;  %1876 = vadd.xlane.f32.xlu0 %v1875_v34 }
 0x43a   : >> { %v1179_v61 = vmul.f32 %v3465_v41, %v4226_v35  ;;  %v1178_v26 = vmul.f32 %v3465_v41, %v4224_v33 }
 0x43b   : >> { %v1143_v48 = vpop.xlane.xlu1 %1142 }
 0x43c   : >> { %3472 = vrcp.f32 %v1143_v48  ;;  %1196 = vmatprep.subr.mxu1 %v1179_v61  ;;  %v5072_v48 = vld [vmem:[#allocation19_spill] sm:$0xff] }
 0x43d   : >> { %v3467_v37 = vpop.eup %3466  ;;  %1197 = vmatpush1.xpose.msra.mxu1 %v1178_v26  ;;  %1870 = vadd.xlane.f32.xlu0 %v1869_v30  ;;  %v5073_v30 = vld [vmem:[#allocation21_spill] sm:$0xff] }
 0x43e   : >> { %v1177_v12 = vmul.f32 %v3467_v37, %v4220_v28  ;;  %v1176_v23 = vmul.f32 %v3467_v37, %v4218_v16 }
 0x43f   : >> { %v1140_v38 = vpop.xlane.xlu1 %1139 }
 0x440   : >> { %3474 = vrcp.f32 %v1140_v38  ;;  %1198 = vmatprep.subr.mxu1 %v1177_v12  ;;  %v5074_v12 = vld [vmem:[#allocation20_spill] sm:$0xff] }
 0x441   : >> { %v3469_v39 = vpop.eup %3468  ;;  %1199 = vmatpush1.xpose.msra.mxu1 %v1176_v23 }
 0x442   : >> { %v1175_v33 = vmul.f32 %v3469_v39, %v4236_v50  ;;  %v1174_v35 = vmul.f32 %v3469_v39, %v4232_v2  ;;  %v5076_v39 = vld [vmem:[#allocation22_spill] sm:$0xff] }
 0x443   : >> { %v1137_v40 = vpop.xlane.xlu1 %1136 }
 0x444   : >> { %3476 = vrcp.f32 %v1137_v40  ;;  %1200 = vmatprep.subr.mxu1 %v1175_v33 }
 0x445   : >> { %v3471_v34 = vpop.eup %3470  ;;  %1201 = vmatpush1.xpose.msra.mxu1 %v1174_v35 }
 0x446   : >> { %v1173_v41 = vmul.f32 %v3471_v34, %v4244_v15  ;;  %v1172_v28 = vmul.f32 %v3471_v34, %v4242_v3  ;;  %v5075_v3 = vld [vmem:[#allocation23_spill] sm:$0xff]  ;;  %v5078_v34 = vld [vmem:[#allocation24_spill] sm:$0xff] }
 0x447   : >> { %v1134_v61 = vpop.xlane.xlu1 %1133 }
 0x448   : >> { %3478 = vrcp.f32 %v1134_v61  ;;  %1202 = vmatprep.subr.mxu1 %v1173_v41 }
 0x449   : >> { %v3473_v16 = vpop.eup %3472  ;;  %1203 = vmatpush1.xpose.msra.mxu1 %v1172_v28  ;;  %v4500_v28 = vld [vmem:[%s4391_s19] sm:$0xff]  ;;  %s4953_s19 = scalar_lea.hbm (%p863_p11), %s5015_s13, %s3291_s27 }
 0x44a   : >> { %v1171_v26 = vmul.f32 %v3473_v16, %v4250_v53  ;;  %v1170_v50 = vmul.f32 %v3473_v16, %v5072_v48  ;;  %v5077_v53 = vld [vmem:[#allocation25_spill] sm:$0xff] }
 0x44c   : >> { %1204 = vmatprep.subr.mxu1 %v1171_v26 }
 0x44d   : >> { %v3475_v2 = vpop.eup %3474  ;;  %1205 = vmatpush1.xpose.msra.mxu1 %v1170_v50 }
 0x44e   : >> { %v1169_v37 = vmul.f32 %v3475_v2, %v5073_v30  ;;  %v1168_v23 = vmul.f32 %v3475_v2, %v5074_v12  ;;  %v5079_v30 = vld [vmem:[#allocation27_spill] sm:$0xff]  ;;  %v5080_v12 = vld [vmem:[#allocation26_spill] sm:$0xff] }
 0x450   : >> { %1206 = vmatprep.subr.mxu1 %v1169_v37 }
 0x451   : >> { %v3477_v15 = vpop.eup %3476  ;;  %1207 = vmatpush1.xpose.msra.mxu1 %v1168_v23 }
 0x452   : >> { %v1167_v38 = vmul.f32 %v3477_v15, %v5075_v3  ;;  %v1166_v33 = vmul.f32 %v3477_v15, %v5076_v39 }
 0x454   : >> { %1208 = vmatprep.subr.mxu1 %v1167_v38 }
 0x455   : >> { %v3479_v35 = vpop.eup %3478  ;;  %1209 = vmatpush1.xpose.msra.mxu1 %v1166_v33 }
 0x456   : >> { %v1165_v40 = vmul.f32 %v3479_v35, %v5077_v53  ;;  %v1164_v41 = vmul.f32 %v3479_v35, %v5078_v34  ;;  %v5081_v53 = vld [vmem:[#allocation29_spill] sm:$0xff] }
 0x458   : >> { %1210 = vmatprep.subr.mxu1 %v1165_v40 }
 0x459   : >> { %1211 = vmatpush1.xpose.msra.mxu1 %v1164_v41 }
 0x45c   : >> { %1245 = vmatmul.mubr.f32.vlgmr.msra.gmra.mxu1 %v4500_v28 }
 0x45d   : >> { %1612 = vmatprep.mubr.f32.mxu1 %v4394_v56 }
 0x480   : >> { %v1523_v61 = vpop.xlane.xlu1 %1522 }
 0x481   : >> { %3480 = vrcp.f32 %v1523_v61 }
 0x484   : >> { %v1520_v16 = vpop.xlane.xlu1 %1519 }
 0x485   : >> { %3482 = vrcp.f32 %v1520_v16 }
 0x48e   : >> { %v3481_v26 = vpop.eup %3480  ;;  %v2182_v48 = vpop.xlane.xlu0 %2181 }
 0x48f   : >> { %v2197_v50 = vsub.f32 %v4340_v20, %v2182_v48  ;;  %v2198_v2 = vsub.f32 %v4352_v8, %v2182_v48  ;;  %v1547_v37 = vmul.f32 %v3481_v26, %v5079_v30  ;;  %v1546_v23 = vmul.f32 %v3481_v26, %v5080_v12  ;;  %v5082_v20 = vld [vmem:[#allocation28_spill] sm:$0xff] }
 0x491   : >> { %v2227_v15 = vmul.f32 1.442695, %v2197_v50  ;;  %v2229_v3 = vmul.f32 1.442695, %v2198_v2  ;;  %1564 = vmatprep.subr.mxu1 %v1547_v37 }
 0x492   : >> { %v3483_v38 = vpop.eup %3482  ;;  %1565 = vmatpush1.xpose.msra.mxu1 %v1546_v23  ;;  %v2179_v39 = vpop.xlane.xlu0 %2178 }
 0x493   : >> { %3484 = vpow2.f32 %v2227_v15  ;;  %v2195_v33 = vsub.f32 %v4326_v4, %v2179_v39  ;;  %v2196_v35 = vsub.f32 %v4338_v55, %v2179_v39  ;;  %v1545_v40 = vmul.f32 %v3483_v38, %v5081_v53 }
 0x494   : >> { %3486 = vpow2.f32 %v2229_v3  ;;  %v1544_v8 = vmul.f32 %v3483_v38, %v5082_v20 }
 0x495   : >> { %v2223_v34 = vmul.f32 1.442695, %v2195_v33  ;;  %v2225_v41 = vmul.f32 1.442695, %v2196_v35  ;;  %1566 = vmatprep.subr.mxu1 %v1545_v40 }
 0x496   : >> { %1567 = vmatpush1.xpose.msra.mxu1 %v1544_v8  ;;  %v2176_v61 = vpop.xlane.xlu0 %2175 }
 0x497   : >> { %3488 = vpow2.f32 %v2223_v34  ;;  %v2193_v16 = vsub.f32 %v4316_v24, %v2176_v61  ;;  %v2194_v26 = vsub.f32 %v4324_v46, %v2176_v61 }
 0x498   : >> { %3490 = vpow2.f32 %v2225_v41 }
 0x499   : >> { %v2219_v48 = vmul.f32 1.442695, %v2193_v16  ;;  %v2221_v4 = vmul.f32 1.442695, %v2194_v26 }
 0x49a   : >> { %v2173_v50 = vpop.xlane.xlu0 %2172 }
 0x49b   : >> { %3492 = vpow2.f32 %v2219_v48  ;;  %v2191_v55 = vsub.f32 %v4304_v9, %v2173_v50  ;;  %v2192_v2 = vsub.f32 %v4308_v57, %v2173_v50  ;;  %v1514_v48 = vpop.xlane.xlu1 %1513 }
 0x49c   : >> { %3494 = vpow2.f32 %v2221_v4 }
 0x49d   : >> { %v2215_v30 = vmul.f32 1.442695, %v2191_v55  ;;  %v2217_v37 = vmul.f32 1.442695, %v2192_v2 }
 0x49e   : >> { %v2170_v12 = vpop.xlane.xlu0 %2169 }
 0x49f   : >> { %3496 = vpow2.f32 %v2215_v30  ;;  %v2189_v23 = vsub.f32 %v4294_v47, %v2170_v12  ;;  %v2190_v24 = vsub.f32 %v4298_v17, %v2170_v12 }
 0x4a0   : >> { %v4518_v15 = vpop.eup %3484  ;;  %3498 = vpow2.f32 %v2217_v37 }
 0x4a1   : >> { %v4520_v46 = vpop.eup %3486  ;;  %v2211_v3 = vmul.f32 1.442695, %v2189_v23  ;;  %v2213_v38 = vmul.f32 1.442695, %v2190_v24 }
 0x4a2   : >> { %v2167_v39 = vpop.xlane.xlu0 %2166  ;;  %v2252_v9 = vadd.f32 %v4520_v46, %v4518_v15 }
 0x4a3   : >> { %3500 = vpow2.f32 %v2211_v3  ;;  %v2187_v57 = vsub.f32 %v4289_v5, %v2167_v39  ;;  %v2188_v33 = vsub.f32 %v4292_v18, %v2167_v39 }
 0x4a4   : >> { %v4526_v35 = vpop.eup %3488  ;;  %3502 = vpow2.f32 %v2213_v38  ;;  %2253 = vadd.xlane.f32.xlu0 %v2252_v9  ;;  %v1508_v38 = vpop.xlane.xlu1 %1507 }
 0x4a5   : >> { %v4528_v47 = vpop.eup %3490  ;;  %v2207_v17 = vmul.f32 1.442695, %v2187_v57  ;;  %v2209_v53 = vmul.f32 1.442695, %v2188_v33 }
 0x4a6   : >> { %v2164_v40 = vpop.xlane.xlu0 %2163  ;;  %v2249_v20 = vadd.f32 %v4528_v47, %v4526_v35 }
 0x4a7   : >> { %3504 = vpow2.f32 %v2207_v17  ;;  %v2185_v8 = vsub.f32 %v4283_v21, %v2164_v40  ;;  %v2186_v34 = vsub.f32 %v4286_v19, %v2164_v40 }
 0x4a8   : >> { %v4534_v5 = vpop.eup %3492  ;;  %3506 = vpow2.f32 %v2209_v53  ;;  %2250 = vadd.xlane.f32.xlu1 %v2249_v20 }
 0x4a9   : >> { %v4536_v18 = vpop.eup %3494  ;;  %v2203_v41 = vmul.f32 1.442695, %v2185_v8  ;;  %v2205_v61 = vmul.f32 1.442695, %v2186_v34  ;;  %v1502_v34 = vpop.xlane.xlu1 %1501 }
 0x4aa   : >> { %v2161_v16 = vpop.xlane.xlu0 %2160  ;;  %v2246_v26 = vadd.f32 %v4536_v18, %v4534_v5 }
 0x4ab   : >> { %3508 = vpow2.f32 %v2203_v41  ;;  %v2183_v4 = vsub.f32 %v4275_v51, %v2161_v16  ;;  %v2184_v21 = vsub.f32 %v4280_v14, %v2161_v16 }
 0x4ac   : >> { %v4542_v50 = vpop.eup %3496  ;;  %3510 = vpow2.f32 %v2205_v61  ;;  %2247 = vadd.xlane.f32.xlu0 %v2246_v26  ;;  %v5083_v26 = vld [vmem:[#allocation31_spill] sm:$0xff] }
 0x4ad   : >> { %v4544_v19 = vpop.eup %3498  ;;  %v2199_v55 = vmul.f32 1.442695, %v2183_v4  ;;  %v2201_v2 = vmul.f32 1.442695, %v2184_v21  ;;  %3512 = vrcp.f32 %v1514_v48 }
 0x4ae   : >> { %v1517_v30 = vpop.xlane.xlu0 %1516  ;;  %v2243_v37 = vadd.f32 %v4544_v19, %v4542_v50 }
 0x4af   : >> { %3514 = vpow2.f32 %v2199_v55  ;;  %v5084_v55 = vld [vmem:[#allocation30_spill] sm:$0xff] }
 0x4b0   : >> { %v4548_v12 = vpop.eup %3500  ;;  %3516 = vpow2.f32 %v2201_v2  ;;  %2244 = vadd.xlane.f32.xlu1 %v2243_v37 }
 0x4b1   : >> { %v4550_v51 = vpop.eup %3502  ;;  %3518 = vrcp.f32 %v1517_v30 }
 0x4b2   : >> { %v1511_v14 = vpop.xlane.xlu0 %1510  ;;  %v2240_v23 = vadd.f32 %v4550_v51, %v4548_v12 }
 0x4b3   : >> { %3520 = vrcp.f32 %v1511_v14  ;;  %v1886_v14 = vpop.xlane.xlu1 %1885 }
 0x4b4   : >> { %v4554_v24 = vpop.eup %3504  ;;  %2241 = vadd.xlane.f32.xlu0 %v2240_v23  ;;  %3522 = vrcp.f32 %v1508_v38 }
 0x4b5   : >> { %v4556_v3 = vpop.eup %3506 }
 0x4b6   : >> { %v2237_v39 = vadd.f32 %v4556_v3, %v4554_v24  ;;  %v1505_v33 = vpop.xlane.xlu0 %1504 }
 0x4b7   : >> { %3524 = vrcp.f32 %v1505_v33 }
 0x4b8   : >> { %v4560_v9 = vpop.eup %3508  ;;  %2238 = vadd.xlane.f32.xlu1 %v2237_v39  ;;  %3526 = vrcp.f32 %v1502_v34 }
 0x4b9   : >> { %v4562_v57 = vpop.eup %3510 }
 0x4ba   : >> { %v2234_v17 = vadd.f32 %v4562_v57, %v4560_v9  ;;  %v3513_v53 = vpop.eup %3512  ;;  %v1889_v21 = vpop.xlane.xlu0 %1888 }
 0x4bb   : >> { %v1541_v48 = vmul.f32 %v3513_v53, %v5083_v26  ;;  %v1540_v2 = vmul.f32 %v3513_v53, %v5084_v55  ;;  %3528 = vrcp.f32 %v1889_v21 }
 0x4bc   : >> { %v4566_v40 = vpop.eup %3514  ;;  %2235 = vadd.xlane.f32.xlu0 %v2234_v17  ;;  %3530 = vrcp.f32 %v1886_v14 }
 0x4bd   : >> { %v4568_v20 = vpop.eup %3516 }
 0x4be   : >> { %v3519_v8 = vpop.eup %3518  ;;  %v2231_v41 = vadd.f32 %v4568_v20, %v4566_v40  ;;  %v1883_v38 = vpop.xlane.xlu0 %1882 }
 0x4bf   : >> { %v1543_v61 = vmul.f32 %v3519_v8, %v4433_v11  ;;  %v1542_v16 = vmul.f32 %v3519_v8, %v4427_v54  ;;  %3532 = vrcp.f32 %v1883_v38 }
 0x4c0   : >> { %2232 = vadd.xlane.f32.xlu1 %v2231_v41  ;;  %v3521_v4 = vpop.eup %3520 }
 0x4c1   : >> { %1568 = vmatprep.subr.mxu1 %v1543_v61  ;;  %v1539_v30 = vmul.f32 %v3521_v4, %v4437_v1  ;;  %v3523_v37 = vpop.eup %3522  ;;  %v1538_v54 = vmul.f32 %v3521_v4, %v4435_v32  ;;  %v1880_v1 = vpop.xlane.xlu1 %1879 }
 0x4c2   : >> { %1569 = vmatpush1.xpose.msra.mxu1 %v1542_v16  ;;  %v1537_v11 = vmul.f32 %v3523_v37, %v4334_v6  ;;  %v1536_v39 = vmul.f32 %v3523_v37, %v4328_v10  ;;  %3534 = vrcp.f32 %v1880_v1  ;;  %v1877_v6 = vpop.xlane.xlu0 %1876 }
 0x4c3   : >> { %1570 = vmatprep.subr.mxu1 %v1541_v48  ;;  %3536 = vrcp.f32 %v1877_v6 }
 0x4c4   : >> { %v3525_v23 = vpop.eup %3524 }
 0x4c5   : >> { %v1535_v33 = vmul.f32 %v3525_v23, %v4455_v27  ;;  %v3527_v17 = vpop.eup %3526  ;;  %v1534_v53 = vmul.f32 %v3525_v23, %v4451_v60  ;;  %v1874_v27 = vpop.xlane.xlu1 %1873 }
 0x4c6   : >> { %1571 = vmatpush1.xpose.msra.mxu1 %v1540_v2  ;;  %v1533_v32 = vmul.f32 %v3527_v17, %v4348_v62  ;;  %v1532_v34 = vmul.f32 %v3527_v17, %v4342_v52  ;;  %3538 = vrcp.f32 %v1874_v27  ;;  %v1871_v16 = vpop.xlane.xlu0 %1870 }
 0x4c7   : >> { %1572 = vmatprep.subr.mxu1 %v1539_v30  ;;  %3540 = vrcp.f32 %v1871_v16 }
 0x4c8   : >> { %v3529_v8 = vpop.eup %3528 }
 0x4c9   : >> { %v1913_v10 = vmul.f32 %v3529_v8, %v4461_v49  ;;  %v3531_v41 = vpop.eup %3530  ;;  %v1912_v61 = vmul.f32 %v3529_v8, %v4457_v63  ;;  %v1868_v48 = vpop.xlane.xlu1 %1867 }
 0x4ca   : >> { %1573 = vmatpush1.xpose.msra.mxu1 %v1538_v54  ;;  %v1911_v62 = vmul.f32 %v3531_v41, %v4383_v7  ;;  %v1910_v52 = vmul.f32 %v3531_v41, %v4379_v59  ;;  %3542 = vrcp.f32 %v1868_v48 }
 0x4cb   : >> { %1574 = vmatprep.subr.mxu1 %v1537_v11 }
 0x4cc   : >> { %v3533_v60 = vpop.eup %3532 }
 0x4cd   : >> { %v1909_v49 = vmul.f32 %v3533_v60, %v4467_v58  ;;  %v1908_v63 = vmul.f32 %v3533_v60, %v4463_v0 }
 0x4ce   : >> { %1575 = vmatpush1.xpose.msra.mxu1 %v1536_v39 }
 0x4cf   : >> { %1576 = vmatprep.subr.mxu1 %v1535_v33  ;;  %v3535_v26 = vpop.eup %3534 }
 0x4d0   : >> { %v1907_v7 = vmul.f32 %v3535_v26, %v4403_v43  ;;  %v3537_v4 = vpop.eup %3536  ;;  %v1906_v21 = vmul.f32 %v3535_v26, %v4396_v45 }
 0x4d1   : >> { %v1905_v55 = vmul.f32 %v3537_v4, %v4473_v22  ;;  %v1904_v58 = vmul.f32 %v3537_v4, %v4469_v29  ;;  %v2354_v4 = vld [vmem:[%s5007_s5] sm:$0xff] (%p863_p11) }
 0x4d2   : >> { %1577 = vmatpush1.xpose.msra.mxu1 %v1534_v53 }
 0x4d3   : >> { %1578 = vmatprep.subr.mxu1 %v1533_v32  ;;  %v3539_v59 = vpop.eup %3538 }
 0x4d4   : >> { %v1903_v2 = vmul.f32 %v3539_v59, %v4415_v36  ;;  %v3541_v30 = vpop.eup %3540  ;;  %v1902_v43 = vmul.f32 %v3539_v59, %v4409_v25  ;;  %v2368_v59 = vld [vmem:[%s5008_s6 + $0x10] sm:$0xff] (%p863_p11) }
 0x4d5   : >> { %v1901_v0 = vmul.f32 %v3541_v30, %v4479_v42  ;;  %v1900_v45 = vmul.f32 %v3541_v30, %v4475_v31  ;;  %v5086_v30 = vmov (%p863_p11), 0  }
 0x4d6   : >> { %1579 = vmatpush1.xpose.msra.mxu1 %v1532_v34  ;;  %3560 = vset.pattern.permute.xlu0 (%p863_p11), %v5086_v30 }
 0x4d7   : >> { %1930 = vmatprep.subr.mxu1 %v1913_v10  ;;  %v3543_v37 = vpop.eup %3542  ;;  %3561 = vset.pattern.permute.xlu1 (%p863_p11), %v5086_v30 }
 0x4d8   : >> { %v1899_v22 = vmul.f32 %v3543_v37, %v4447_v44  ;;  %v1898_v29 = vmul.f32 %v3543_v37, %v4441_v13  ;;  %v2502_v37 = vld [vmem:[%s5009_s7 + $0x18] sm:$0xff] (%p863_p11) }
 0x4d9   : >> { %1613 = vmatmul.mubr.f32.vlgmr.msra.gmra.mxu1 %v4500_v28 }
 0x4da   : >> { %1931 = vmatpush1.xpose.msra.mxu1 %v1912_v61  ;;  %1978 = vmatprep.mubr.f32.mxu1 %v4394_v56 }
 0x4db   : >> { %1932 = vmatprep.subr.mxu1 %v1911_v62 }
 0x4de   : >> { %1933 = vmatpush1.xpose.msra.mxu1 %v1910_v52  ;;  %v5085_v52 = vmov (%p863_p11), 0.0  }
 0x4df   : >> { %1934 = vmatprep.subr.mxu1 %v1909_v49  ;;  %2466 = vmatprep.mubr.f32.mxu0 (%p863_p11), %v5085_v52 }
 0x4e2   : >> { %1935 = vmatpush1.xpose.msra.mxu1 %v1908_v63 }
 0x4e3   : >> { %1936 = vmatprep.subr.mxu1 %v1907_v7 }
 0x4e6   : >> { %1937 = vmatpush1.xpose.msra.mxu1 %v1906_v21  ;;  %v2356_v21 = vld [vmem:[%s5007_s5 + $0x10] sm:$0xff] (%p863_p11) }
 0x4e7   : >> { %1938 = vmatprep.subr.mxu1 %v1905_v55  ;;  %v2366_v55 = vld [vmem:[%s5008_s6] sm:$0xff] (%p863_p11) }
 0x4ea   : >> { %1939 = vmatpush1.xpose.msra.mxu1 %v1904_v58  ;;  %v2355_v58 = vld [vmem:[%s5007_s5 + $0x8] sm:$0xff] (%p863_p11) }
 0x4eb   : >> { %1940 = vmatprep.subr.mxu1 %v1903_v2  ;;  %v2357_v2 = vld [vmem:[%s5007_s5 + $0x18] sm:$0xff] (%p863_p11) }
 0x4ee   : >> { %1941 = vmatpush1.xpose.msra.mxu1 %v1902_v43  ;;  %v2367_v43 = vld [vmem:[%s5008_s6 + $0x8] sm:$0xff] (%p863_p11) }
 0x4ef   : >> { %1942 = vmatprep.subr.mxu1 %v1901_v0  ;;  %v2369_v0 = vld [vmem:[%s5008_s6 + $0x18] sm:$0xff] (%p863_p11) }
 0x4f2   : >> { %1943 = vmatpush1.xpose.msra.mxu1 %v1900_v45  ;;  %v2501_v45 = vld [vmem:[%s5009_s7 + $0x10] sm:$0xff] (%p863_p11) }
 0x4f3   : >> { %1944 = vmatprep.subr.mxu1 %v1899_v22  ;;  %v2506_v22 = vld [vmem:[%s5010_s8 + $0x18] sm:$0xff] (%p863_p11) }
 0x4f6   : >> { %1945 = vmatpush1.xpose.msra.mxu1 %v1898_v29  ;;  %v2500_v29 = vld [vmem:[%s5009_s7 + $0x8] sm:$0xff] (%p863_p11) }
 0x4f9   : >> { %1979 = vmatmul.mubr.f32.vlgmr.msra.gmra.mxu1 %v4500_v28 }
 0x4fa   : >> { %2343 = vmatprep.mubr.f32.mxu1 %v4394_v56 }
 0x51c   : >> { %v1246_v25 = vpop.f32.mrf.mxu1 }
 0x51d   : >> { %1253 = vst.msk [vmem:[%s4605_s15] sm:$0xff] %vm1252_vm2, %v1246_v25  ;;  %v2505_v25 = vld [vmem:[%s5010_s8 + $0x10] sm:$0xff] (%p863_p11) }
 0x51e   : >> { %v1248_v36 = vpop.f32.mrf.mxu1 }
 0x51f   : > { %v2499_v36 = vld [vmem:[%s5009_s7] sm:$0xff] (%p863_p11) }
 0x52d   : >> { %v2254_v31 = vpop.xlane.xlu0 %2253 }
 0x52e   : >> { %3544 = vrcp.f32 %v2254_v31  ;;  %v2504_v31 = vld [vmem:[%s5010_s8 + $0x8] sm:$0xff] (%p863_p11) }
 0x531   : >> { %v2251_v44 = vpop.xlane.xlu1 %2250 }
 0x532   : >> { %3546 = vrcp.f32 %v2251_v44  ;;  %v2503_v44 = vld [vmem:[%s5010_s8] sm:$0xff] (%p863_p11) }
 0x535   : >> { %v2248_v42 = vpop.xlane.xlu0 %2247 }
 0x536   : >> { %3548 = vrcp.f32 %v2248_v42  ;;  %v2638_v42 = vld [vmem:[%s5012_s10 + $0x18] sm:$0xff] (%p863_p11) }
 0x539   : >> { %v2245_v13 = vpop.xlane.xlu1 %2244 }
 0x53a   : >> { %3550 = vrcp.f32 %v2245_v13  ;;  %v2637_v13 = vld [vmem:[%s5012_s10 + $0x10] sm:$0xff] (%p863_p11) }
 0x53b   : >> { %v3545_v14 = vpop.eup %3544 }
 0x53c   : >> { %v2278_v54 = vmul.f32 %v3545_v14, %v4520_v46  ;;  %v2277_v56 = vmul.f32 %v3545_v14, %v4518_v15  ;;  %v2636_v14 = vld [vmem:[%s5012_s10 + $0x8] sm:$0xff] (%p863_p11) }
 0x53d   : >> { %v2242_v11 = vpop.xlane.xlu0 %2241 }
 0x53e   : >> { %3552 = vrcp.f32 %v2242_v11  ;;  %2295 = vmatprep.subr.mxu1 %v2278_v54  ;;  %v2635_v54 = vld [vmem:[%s5012_s10] sm:$0xff] (%p863_p11)  ;;  %v2981_v11 = vld [vmem:[%s5014_s12 + $0x8] sm:$0xff] (%p863_p11) }
 0x53f   : >> { %v3547_v23 = vpop.eup %3546  ;;  %2296 = vmatpush1.xpose.msra.mxu1 %v2277_v56  ;;  %v2980_v56 = vld [vmem:[%s5014_s12] sm:$0xff] (%p863_p11) }
 0x540   : >> { %v2276_v38 = vmul.f32 %v3547_v23, %v4528_v47  ;;  %v2275_v39 = vmul.f32 %v3547_v23, %v4526_v35  ;;  %v2982_v23 = vld [vmem:[%s5014_s12 + $0x10] sm:$0xff] (%p863_p11) }
 0x541   : >> { %v2239_v33 = vpop.xlane.xlu1 %2238 }
 0x542   : >> { %3554 = vrcp.f32 %v2239_v33  ;;  %2297 = vmatprep.subr.mxu1 %v2276_v38  ;;  %v2983_v38 = vld [vmem:[%s5014_s12 + $0x18] sm:$0xff] (%p863_p11) }
 0x543   : >> { %v3549_v17 = vpop.eup %3548  ;;  %2298 = vmatpush1.xpose.msra.mxu1 %v2275_v39 }
 0x544   : >> { %v2274_v1 = vmul.f32 %v3549_v17, %v4536_v18  ;;  %v2273_v46 = vmul.f32 %v3549_v17, %v4534_v5 }
 0x545   : >> { %v2236_v53 = vpop.xlane.xlu0 %2235 }
 0x546   : >> { %3556 = vrcp.f32 %v2236_v53  ;;  %2299 = vmatprep.subr.mxu1 %v2274_v1 }
 0x547   : >> { %v3551_v15 = vpop.eup %3550  ;;  %2300 = vmatpush1.xpose.msra.mxu1 %v2273_v46 }
 0x548   : >> { %v2272_v32 = vmul.f32 %v3551_v15, %v4544_v19  ;;  %v2271_v47 = vmul.f32 %v3551_v15, %v4542_v50 }
 0x549   : >> { %v2233_v8 = vpop.xlane.xlu1 %2232 }
 0x54a   : >> { %3558 = vrcp.f32 %v2233_v8  ;;  %2301 = vmatprep.subr.mxu1 %v2272_v32 }
 0x54b   : >> { %v3553_v35 = vpop.eup %3552  ;;  %2302 = vmatpush1.xpose.msra.mxu1 %v2271_v47 }
 0x54c   : >> { %v2270_v6 = vmul.f32 %v3553_v35, %v4550_v51  ;;  %v2269_v18 = vmul.f32 %v3553_v35, %v4548_v12 }
 0x54e   : >> { %2303 = vmatprep.subr.mxu1 %v2270_v6 }
 0x54f   : >> { %v3555_v5 = vpop.eup %3554  ;;  %2304 = vmatpush1.xpose.msra.mxu1 %v2269_v18 }
 0x550   : >> { %v2268_v34 = vmul.f32 %v3555_v5, %v4556_v3  ;;  %v2267_v10 = vmul.f32 %v3555_v5, %v4554_v24 }
 0x552   : >> { %2305 = vmatprep.subr.mxu1 %v2268_v34  ;;  %v5087_v34 = vld [vmem:[#allocation11_spill] sm:$0xff] (%p863_p11) }
 0x553   : >> { %v3557_v19 = vpop.eup %3556  ;;  %2306 = vmatpush1.xpose.msra.mxu1 %v2267_v10 }
 0x554   : >> { %v2266_v50 = vmul.f32 %v3557_v19, %v4562_v57  ;;  %v2265_v41 = vmul.f32 %v3557_v19, %v4560_v9 }
 0x556   : >> { %2307 = vmatprep.subr.mxu1 %v2266_v50 }
 0x557   : >> { %v3559_v51 = vpop.eup %3558  ;;  %2308 = vmatpush1.xpose.msra.mxu1 %v2265_v41 }
 0x558   : >> { %v2264_v12 = vmul.f32 %v3559_v51, %v4568_v20  ;;  %v2263_v27 = vmul.f32 %v3559_v51, %v4566_v40  ;;  %v5088_v51 = vld [vmem:[#allocation12_spill] sm:$0xff] (%p863_p11) }
 0x55a   : >> { %2309 = vmatprep.subr.mxu1 %v2264_v12 }
 0x55b   : >> { %2310 = vmatpush1.xpose.msra.mxu1 %v2263_v27 }
 0x55e   : >> { %2344 = vmatmul.mubr.f32.vlgmr.msra.gmra.mxu1 %v4500_v28 }
 0x55f   : > { %2478 = vmatprep.mubr.f32.mxu1 (%p863_p11), %v5085_v52 }
 0x599   : >> { %v1614_v24 = vpop.f32.mrf.mxu1 }
 0x59a   : >> { %1619 = vrot.lane.b32.xlu0 %v1614_v24, %s3671_s20 }
 0x59b   : >> { %v1616_v3 = vpop.f32.mrf.mxu1 }
 0x59c   : > { %v5089_v3 = vld [vmem:[#allocation15_spill] sm:$0xff] (%p863_p11) }
 0x59e   : > { %2372 = vperm.xlu0 (%p863_p11), %3560, %v2366_v55  }
 0x5a2   : > { %2377 = vperm.xlu0 (%p863_p11), %3560, %v2367_v43  }
 0x5a6   : > { %2592 = vperm.xlu0 (%p863_p11), %3560, %v2502_v37  }
 0x5aa   : > { %2620 = vperm.xlu0 (%p863_p11), %3560, %v2506_v22  }
 0x5ae   : > { %2615 = vperm.xlu0 (%p863_p11), %3560, %v2505_v25  }
 0x5b2   : > { %2610 = vperm.xlu0 (%p863_p11), %3560, %v2504_v31  }
 0x5b6   : > { %2656 = vperm.xlu0 (%p863_p11), %3560, %v2638_v42  }
 0x5b9   : >> { %v1980_v57 = vpop.f32.mrf.mxu1 }
 0x5ba   : >> { %1984 = vst.msk [vmem:[%s4605_s15 + $0x8] sm:$0xff] %vm1252_vm2, %v1980_v57  ;;  %2646 = vperm.xlu0 (%p863_p11), %3560, %v2636_v14  }
 0x5bb   : >> { %v1982_v9 = vpop.f32.mrf.mxu1 }
 0x5bc   : > { %v5090_v9 = vld [vmem:[#allocation13_spill] sm:$0xff] (%p863_p11) }
 0x5be   : > { %2986 = vperm.xlu0 (%p863_p11), %3560, %v2980_v56  }
 0x5c2   : > { %2996 = vperm.xlu0 (%p863_p11), %3560, %v2982_v23  }
 0x60c   : >> { %v1620_v61 = vpop.permute.xlu0 %1619 }
 0x60d   : >> { %1623 = vst.msk [vmem:[%s4605_s15] sm:$0xff] %vm1622_vm3, %v1620_v61 }
 0x619   : > { %v2373_v39 = vpop.permute.xlu0 (%p863_p11), %2372 }
 0x61d   : > { %v2378_v32 = vpop.permute.xlu0 (%p863_p11), %2377 }
 0x61e   : >> { %v2345_v62 = vpop.f32.mrf.mxu1 }
 0x61f   : >> { %2350 = vrot.lane.b32.xlu1 %v2345_v62, %s3671_s20 }
 0x620   : >> { %v2347_v40 = vpop.f32.mrf.mxu1 }
 0x621   : > { %v5091_v40 = vld [vmem:[#allocation14_spill] sm:$0xff] (%p863_p11) }
 0x623   : > { %2382 = vperm.xlu1 (%p863_p11), %3561, %v2368_v59  }
 0x627   : > { %2387 = vperm.xlu1 (%p863_p11), %3561, %v2369_v0  }
 0x62b   : > { %2587 = vperm.xlu1 (%p863_p11), %3561, %v2501_v45  }
 0x62f   : > { %2582 = vperm.xlu1 (%p863_p11), %3561, %v2500_v29  }
 0x633   : > { %2577 = vperm.xlu1 (%p863_p11), %3561, %v2499_v36  }
 0x637   : > { %2605 = vperm.xlu1 (%p863_p11), %3561, %v2503_v44  }
 0x63b   : > { %2651 = vperm.xlu1 (%p863_p11), %3561, %v2637_v13  }
 0x63f   : > { %2641 = vperm.xlu1 (%p863_p11), %3561, %v2635_v54  }
 0x643   : > { %2991 = vperm.xlu1 (%p863_p11), %3561, %v2981_v11  }
 0x647   : > { %3001 = vperm.xlu1 (%p863_p11), %3561, %v2983_v38  }
 0x68e   : > { %865 = sbr.rel (!%p863_p11) target bundleno = 384 (0x180), region = 118 }
 0x691   : >> { %v2351_v20 = vpop.permute.xlu1 %2350 }
 0x692   : >> { %2353 = vst.msk [vmem:[%s4605_s15 + $0x8] sm:$0xff] %vm1622_vm3, %v2351_v20  ;;  %s3598_s15 = scalar_lea.vmem (%p863_p11), %s4955_s22, 1024 }
 0x693   : > { %p3599_p12 = scmp.ne.s32.totalorder %s4955_s22, %s3598_s15  ;;  %p3606_p2 = scmp.lt.s32.totalorder %s3604_s24, %s3598_s15 }
 0x695   : > { %p3600_p13 = pnand %p3599_p12, %p3784_p5  ;;  %p3607_p3 = por %p3606_p2, %p3605_p1 }
 0x697   : > { %p3601_p0 = pneg %p3600_p13 }
 0x699   : > { %v2365_v28 = vld [vmem:[#allocation3 + $0x38] sm:$0xff]  ;;  %v2364_v60 = vld [vmem:[#allocation3 + $0x30] sm:$0xff]  ;;  %v2363_v16 = vld [vmem:[#allocation3 + $0x28] sm:$0xff]  ;;  %p3608_p4 = pnand %p3607_p3, %p3601_p0 }
 0x69a   : > { %2426 = vmatprep.subr.mxu0 %v2365_v28  ;;  %3300 = vmatprep.subr.mxu1 %v2365_v28  ;;  %v2362_v49 = vld [vmem:[#allocation3 + $0x20] sm:$0xff]  ;;  %v2361_v26 = vld [vmem:[#allocation3 + $0x18] sm:$0xff]  ;;  %v2360_v48 = vld [vmem:[#allocation3 + $0x10] sm:$0xff] }
 0x69b   : > { %2427 = vmatpush1.msra.mxu0 %v2364_v60  ;;  %3304 = vmatpush1.msra.mxu1 %v2364_v60  ;;  %v2359_v63 = vld [vmem:[#allocation3 + $0x8] sm:$0xff]  ;;  %v2358_v7 = vld [vmem:[#allocation3] sm:$0xff] }
 0x69c   : > { %2428 = vmatprep.subr.mxu0 %v2363_v16  ;;  %3301 = vmatprep.subr.mxu1 %v2363_v16  ;;  %v5092_v60 = vld [vmem:[#allocation16_spill] sm:$0xff] }
 0x69d   : > { %2429 = vmatpush1.msra.mxu0 %v2362_v49  ;;  %3305 = vmatpush1.msra.mxu1 %v2362_v49  ;;  %v5093_v49 = vld [vmem:[#allocation17_spill] sm:$0xff] }
 0x69e   : > { %2430 = vmatprep.subr.mxu0 %v2361_v26  ;;  %3302 = vmatprep.subr.mxu1 %v2361_v26  ;;  %v2383_v33 = vpop.permute.xlu1 %2382 }
 0x69f   : > { %2431 = vmatpush1.msra.mxu0 %v2360_v48  ;;  %3306 = vmatpush1.msra.mxu1 %v2360_v48 }
 0x6a0   : > { %2432 = vmatprep.subr.mxu0 %v2359_v63  ;;  %3303 = vmatprep.subr.mxu1 %v2359_v63 }
 0x6a1   : > { %2433 = vmatpush1.msra.mxu0 %v2358_v7  ;;  %3307 = vmatpush1.msra.mxu1 %v2358_v7 }
 0x6a2   : > { %3269 = vmatmul.mubr.msk.f32.vlgmr.msra.gmra.mxu0 %vm663_vm0, %v2354_v4  ;;  %3271 = vmatmul.mubr.msk.f32.vlgmr.msra.gmra.mxu1 %vm663_vm0, %v2356_v21  ;;  %v2388_v6 = vpop.permute.xlu1 %2387  ;;  %v5094_v4 = vld [vmem:[#allocation18_spill] sm:$0xff] }
 0x6a3   : > { %2472 = vmatprep.mubr.f32.mxu0 %v5085_v52  ;;  %2484 = vmatprep.mubr.f32.mxu1 %v5085_v52 }
 0x6a6   : > { %3270 = vmatmul.mubr.msk.f32.gmra.mxu0 %vm663_vm0, %v2355_v58  ;;  %3272 = vmatmul.mubr.msk.f32.gmra.mxu1 %vm663_vm0, %v2357_v2 }
 0x6a7   : > { %2735 = vmatprep.mubr.f32.mxu1 %v5085_v52  ;;  %3080 = vmatprep.mubr.f32.mxu0 %v5085_v52 }
 0x762   : > { %v2468_v17 = vpop.f32.mrf.mxu0  ;;  %v2480_v1 = vpop.f32.mrf.mxu1 }
 0x763   : > { %v2469_v46 = vadd.f32 %v2468_v17, %v2373_v39  ;;  %v2481_v47 = vadd.f32 %v2480_v1, %v2383_v33 }
 0x764   : > { %v2470_v53 = vpop.f32.mrf.mxu0  ;;  %v2482_v15 = vpop.f32.mrf.mxu1 }
 0x765   : > { %v2471_v18 = vadd.f32 %v2470_v53, %v2373_v39  ;;  %v4720_v10 = vadd.f32 %v2469_v46, %v5087_v34  ;;  %v2483_v41 = vadd.f32 %v2482_v15, %v2383_v33  ;;  %v4726_v57 = vadd.f32 %v2481_v47, %v5089_v3 }
 0x766   : > { %v2474_v8 = vpop.f32.mrf.mxu0  ;;  %v2486_v35 = vpop.f32.mrf.mxu1 }
 0x767   : > { %v2475_v5 = vadd.f32 %v2474_v8, %v2378_v32  ;;  %v2487_v27 = vadd.f32 %v2486_v35, %v2388_v6  ;;  %v4729_v61 = vadd.f32 %v2471_v18, %v5090_v9  ;;  %v4737_v16 = vadd.f32 %v2483_v41, %v5092_v60 }
 0x768   : > { %v2476_v19 = vpop.f32.mrf.mxu0  ;;  %v2488_v50 = vpop.f32.mrf.mxu1 }
 0x769   : > { %v4723_v12 = vadd.f32 %v2475_v5, %v5088_v51  ;;  %v2477_v24 = vadd.f32 %v2476_v19, %v2378_v32  ;;  %v2489_v28 = vadd.f32 %v2488_v50, %v2388_v6  ;;  %v4740_v26 = vadd.f32 %v2487_v27, %v5093_v49 }
 0x76b   : > { %v2507_v62 = vadd.f32 %v4723_v12, %v4720_v10  ;;  %v4734_v20 = vadd.f32 %v2477_v24, %v5091_v40  ;;  %v4747_v21 = vadd.f32 %v2489_v28, %v5094_v4  ;;  %v2593_v4 = vpop.permute.xlu0 %2592 }
 0x76d   : > { %v2508_v48 = vadd.f32 %v2507_v62, %v4726_v57  ;;  %v2516_v63 = vadd.f32 %v4734_v20, %v4729_v61 }
 0x76f   : > { %v2509_v7 = vadd.f32 %v2508_v48, %v4740_v26  ;;  %v2517_v55 = vadd.f32 %v2516_v63, %v4737_v16 }
 0x771   : > { %v2510_v59 = vrot.slane %v2509_v7, 4  ;;  %v2518_v58 = vadd.f32 %v2517_v55, %v4747_v21  ;;  %v2588_v55 = vpop.permute.xlu1 %2587 }
 0x773   : > { %v2511_v2 = vadd.f32 %v2510_v59, %v2509_v7  ;;  %v2519_v30 = vrot.slane %v2518_v58, 4  ;;  %v2621_v59 = vpop.permute.xlu0 %2620 }
 0x775   : > { %v2512_v43 = vrot.slane %v2511_v2, 2  ;;  %v2520_v0 = vadd.f32 %v2519_v30, %v2518_v58 }
 0x777   : > { %v2513_v37 = vadd.f32 %v2512_v43, %v2511_v2  ;;  %v2521_v45 = vrot.slane %v2520_v0, 2  ;;  %v2583_v2 = vpop.permute.xlu1 %2582 }
 0x779   : > { %v2514_v22 = vrot.slane %v2513_v37, 1  ;;  %v2522_v29 = vadd.f32 %v2521_v45, %v2520_v0 }
 0x77b   : > { %v2515_v25 = vadd.f32 %v2514_v22, %v2513_v37  ;;  %v2523_v36 = vrot.slane %v2522_v29, 1 }
 0x77d   : > { %v2525_v31 = vmul.f32 0.03125, %v2515_v25  ;;  %v2524_v44 = vadd.f32 %v2523_v36, %v2522_v29  ;;  %v2616_v29 = vpop.permute.xlu0 %2615 }
 0x77f   : > { %v2527_v42 = vsub.f32 %v4720_v10, %v2525_v31  ;;  %v2529_v13 = vsub.f32 %v4723_v12, %v2525_v31  ;;  %v2531_v14 = vsub.f32 %v4726_v57, %v2525_v31  ;;  %v2526_v54 = vmul.f32 0.03125, %v2524_v44 }
 0x780   : > { %v2533_v56 = vsub.f32 %v4740_v26, %v2525_v31 }
 0x781   : > { %v2535_v11 = vmul.f32 %v2527_v42, %v2527_v42  ;;  %v2537_v23 = vmul.f32 %v2529_v13, %v2529_v13  ;;  %v2528_v38 = vsub.f32 %v4729_v61, %v2526_v54  ;;  %v2530_v39 = vsub.f32 %v4734_v20, %v2526_v54 }
 0x782   : > { %v2532_v33 = vsub.f32 %v4737_v16, %v2526_v54  ;;  %v2539_v17 = vmul.f32 %v2531_v14, %v2531_v14  ;;  %v2534_v46 = vsub.f32 %v4747_v21, %v2526_v54  ;;  %v2541_v32 = vmul.f32 %v2533_v56, %v2533_v56 }
 0x783   : > { %v2543_v1 = vadd.f32 %v2537_v23, %v2535_v11  ;;  %v2536_v53 = vmul.f32 %v2528_v38, %v2528_v38  ;;  %v2538_v15 = vmul.f32 %v2530_v39, %v2530_v39  ;;  %v2578_v11 = vpop.permute.xlu1 %2577 }
 0x784   : > { %v2540_v8 = vmul.f32 %v2532_v33, %v2532_v33  ;;  %v2542_v18 = vmul.f32 %v2534_v46, %v2534_v46 }
 0x785   : > { %v2544_v47 = vadd.f32 %v2543_v1, %v2539_v17  ;;  %v2552_v35 = vadd.f32 %v2538_v15, %v2536_v53 }
 0x787   : > { %v2545_v6 = vadd.f32 %v2544_v47, %v2541_v32  ;;  %v2553_v5 = vadd.f32 %v2552_v35, %v2540_v8  ;;  %v2631_v35 = vld [vmem:[%s5011_s9] sm:$0xff] }
 0x789   : > { %v2546_v34 = vrot.slane %v2545_v6, 4  ;;  %v2554_v19 = vadd.f32 %v2553_v5, %v2542_v18  ;;  %v2633_v18 = vld [vmem:[%s5011_s9 + $0x10] sm:$0xff]  ;;  %v2634_v5 = vld [vmem:[%s5011_s9 + $0x18] sm:$0xff] }
 0x78b   : > { %v2547_v50 = vadd.f32 %v2546_v34, %v2545_v6  ;;  %v2555_v41 = vrot.slane %v2554_v19, 4  ;;  %v2632_v6 = vld [vmem:[%s5011_s9 + $0x8] sm:$0xff] }
 0x78d   : > { %v2548_v51 = vrot.slane %v2547_v50, 2  ;;  %v2556_v27 = vadd.f32 %v2555_v41, %v2554_v19 }
 0x78f   : > { %v2549_v24 = vadd.f32 %v2548_v51, %v2547_v50  ;;  %v2557_v3 = vrot.slane %v2556_v27, 2 }
 0x791   : > { %v2550_v9 = vrot.slane %v2549_v24, 1  ;;  %v2558_v62 = vadd.f32 %v2557_v3, %v2556_v27 }
 0x793   : > { %v2551_v40 = vadd.f32 %v2550_v9, %v2549_v24  ;;  %v2559_v28 = vrot.slane %v2558_v62, 1 }
 0x795   : > { %v2561_v60 = vmul.f32 0.03125, %v2551_v40  ;;  %v2560_v49 = vadd.f32 %v2559_v28, %v2558_v62 }
 0x797   : > { %v2563_v48 = vadd.f32 1e-05, %v2561_v60  ;;  %v2562_v63 = vmul.f32 0.03125, %v2560_v49 }
 0x799   : > { %3562 = vrsqrt.f32 %v2563_v48  ;;  %v2564_v7 = vadd.f32 1e-05, %v2562_v63 }
 0x79b   : > { %3564 = vrsqrt.f32 %v2564_v7 }
 0x7a6   : > { %v3563_v58 = vpop.eup %3562 }
 0x7a7   : > { %v2573_v30 = vmul.f32 %v3563_v58, %v2533_v56  ;;  %v2571_v0 = vmul.f32 %v3563_v58, %v2531_v14  ;;  %v2569_v36 = vmul.f32 %v3563_v58, %v2529_v13  ;;  %v2567_v17 = vmul.f32 %v3563_v58, %v2527_v42  ;;  %v2611_v14 = vpop.permute.xlu0 %2610  ;;  %v2606_v13 = vpop.permute.xlu1 %2605 }
 0x7a8   : > { %v3565_v43 = vpop.eup %3564 }
 0x7a9   : > { %v2574_v37 = vmul.f32 %v3565_v43, %v2534_v46  ;;  %v2572_v45 = vmul.f32 %v3565_v43, %v2532_v33  ;;  %v2570_v22 = vmul.f32 %v3565_v43, %v2530_v39  ;;  %v2601_v25 = vmul.f32 %v2593_v4, %v2573_v30 }
 0x7aa   : > { %v2568_v54 = vmul.f32 %v3565_v43, %v2528_v38  ;;  %v2599_v23 = vmul.f32 %v2588_v55, %v2571_v0  ;;  %v2597_v32 = vmul.f32 %v2583_v2, %v2569_v36  ;;  %v2595_v39 = vmul.f32 %v2578_v11, %v2567_v17 }
 0x7ab   : > { %v2602_v31 = vmul.f32 %v2593_v4, %v2574_v37  ;;  %v2600_v44 = vmul.f32 %v2588_v55, %v2572_v45  ;;  %v2598_v53 = vmul.f32 %v2583_v2, %v2570_v22  ;;  %v2629_v15 = vadd.f32 %v2621_v59, %v2601_v25  ;;  %v2652_v34 = vpop.permute.xlu1 %2651  ;;  %v2657_v19 = vpop.permute.xlu0 %2656 }
 0x7ac   : > { %v2596_v47 = vmul.f32 %v2578_v11, %v2568_v54  ;;  %v2627_v33 = vadd.f32 %v2616_v29, %v2599_v23  ;;  %v2625_v8 = vadd.f32 %v2611_v14, %v2597_v32  ;;  %v2623_v42 = vadd.f32 %v2606_v13, %v2595_v39 }
 0x7ad   : > { %v2630_v1 = vadd.f32 %v2621_v59, %v2602_v31  ;;  %v2628_v56 = vadd.f32 %v2616_v29, %v2600_v44  ;;  %v2626_v46 = vadd.f32 %v2611_v14, %v2598_v53 }
 0x7ae   : > { %v2624_v38 = vadd.f32 %v2606_v13, %v2596_v47 }
 0x7af   : > { %2695 = vmatprep.subr.mxu1 %v2630_v1  ;;  %v2642_v50 = vpop.permute.xlu1 %2641  ;;  %v2647_v62 = vpop.permute.xlu0 %2646 }
 0x7b0   : > { %2696 = vmatpush1.msra.mxu1 %v2629_v15 }
 0x7b1   : > { %2697 = vmatprep.subr.mxu1 %v2628_v56 }
 0x7b2   : > { %2698 = vmatpush1.msra.mxu1 %v2627_v33 }
 0x7b3   : > { %2699 = vmatprep.subr.mxu1 %v2626_v46 }
 0x7b4   : > { %2700 = vmatpush1.msra.mxu1 %v2625_v8 }
 0x7b5   : > { %2701 = vmatprep.subr.mxu1 %v2624_v38 }
 0x7b6   : > { %2702 = vmatpush1.msra.mxu1 %v2623_v42 }
 0x7b7   : > { %3273 = vmatmul.mubr.msk.f32.vlgmr.msra.gmra.mxu1 %vm663_vm0, %v2631_v35 }
 0x7b8   : > { %2741 = vmatprep.mubr.f32.mxu1 %v5085_v52 }
 0x7bb   : > { %3274 = vmatmul.mubr.msk.f32.gmra.mxu1 %vm663_vm0, %v2632_v6 }
 0x7bc   : > { %2747 = vmatprep.mubr.f32.mxu1 %v5085_v52 }
 0x7bf   : > { %3275 = vmatmul.mubr.msk.f32.gmra.mxu1 %vm663_vm0, %v2633_v18 }
 0x7c0   : > { %2753 = vmatprep.mubr.f32.mxu1 %v5085_v52 }
 0x7c3   : > { %3276 = vmatmul.mubr.msk.f32.gmra.mxu1 %vm663_vm0, %v2634_v5 }
 0x877   : > { %v2737_v41 = vpop.f32.mrf.mxu1 }
 0x878   : > { %v4778_v51 = vadd.f32 %v2737_v41, %v2642_v50 }
 0x879   : > { %v2739_v27 = vpop.f32.mrf.mxu1 }
 0x87a   : > { %v4781_v24 = vmul.f32 0.70710677, %v4778_v51  ;;  %v4783_v3 = vadd.f32 %v2739_v27, %v2642_v50 }
 0x87b   : > { %v2743_v9 = vpop.f32.mrf.mxu1 }
 0x87c   : > { %v4786_v40 = vand.u32 2147483647, %v4781_v24  ;;  %v4789_v28 = vmul.f32 0.70710677, %v4783_v3  ;;  %v4791_v60 = vadd.f32 %v2743_v9, %v2647_v62  ;;  %vm2776_vm4 = vcmp.ge.f32.partialorder %v4781_v24, 0.0 }
 0x87d   : > { %v2745_v49 = vpop.f32.mrf.mxu1 }
 0x87e   : > { %v2800_v48 = vmul.f32 0.3275911, %v4786_v40  ;;  %v4795_v63 = vand.u32 2147483647, %v4789_v28  ;;  %v4798_v7 = vmul.f32 0.70710677, %v4791_v60  ;;  %v4800_v4 = vadd.f32 %v2745_v49, %v2647_v62 }
 0x87f   : > { %v2749_v55 = vpop.f32.mrf.mxu1  ;;  %v2904_v62 = vsub.f32 0.0, %v4786_v40  ;;  %vm2777_vm5 = vcmp.ge.f32.partialorder %v4789_v28, 0.0 }
 0x880   : > { %v2808_v59 = vadd.f32 1.0, %v2800_v48  ;;  %v2801_v58 = vmul.f32 0.3275911, %v4795_v63  ;;  %v2794_v2 = vand.u32 2147483647, %v4798_v7  ;;  %v4808_v29 = vadd.f32 %v2749_v55, %v2652_v34 }
 0x881   : > { %v4805_v30 = vmul.f32 0.70710677, %v4800_v4  ;;  %v2751_v43 = vpop.f32.mrf.mxu1  ;;  %vm2778_vm11 = vcmp.ge.f32.partialorder %v4798_v7, 0.0 }
 0x882   : > { %3566 = vrcp.f32 %v2808_v59  ;;  %v2809_v0 = vadd.f32 1.0, %v2801_v58  ;;  %v2802_v37 = vmul.f32 0.3275911, %v2794_v2  ;;  %v4810_v31 = vadd.f32 %v2751_v43, %v2652_v34 }
 0x883   : > { %v2795_v45 = vand.u32 2147483647, %v4805_v30  ;;  %v2755_v25 = vpop.f32.mrf.mxu1  ;;  %v4813_v44 = vmul.f32 0.70710677, %v4808_v29  ;;  %v2906_v18 = vsub.f32 0.0, %v2794_v2  ;;  %vm2779_vm6 = vcmp.ge.f32.partialorder %v4805_v30, 0.0 }
 0x884   : > { %3568 = vrcp.f32 %v2809_v0  ;;  %v2810_v22 = vadd.f32 1.0, %v2802_v37  ;;  %v4816_v11 = vmul.f32 0.70710677, %v4810_v31  ;;  %v4819_v17 = vadd.f32 %v2755_v25, %v2657_v19 }
 0x885   : > { %v2803_v36 = vmul.f32 0.3275911, %v2795_v45  ;;  %v2796_v23 = vand.u32 2147483647, %v4813_v44  ;;  %v2757_v1 = vpop.f32.mrf.mxu1  ;;  %v2914_v59 = vmul.f32 %v2906_v18, %v2794_v2  ;;  %vm2780_vm9 = vcmp.ge.f32.partialorder %v4813_v44, 0.0 }
 0x886   : > { %3570 = vrcp.f32 %v2810_v22  ;;  %v2797_v15 = vand.u32 2147483647, %v4816_v11  ;;  %v4823_v32 = vmul.f32 0.70710677, %v4819_v17  ;;  %v4825_v56 = vadd.f32 %v2757_v1, %v2657_v19 }
 0x887   : > { %v2811_v54 = vadd.f32 1.0, %v2803_v36  ;;  %v2804_v53 = vmul.f32 0.3275911, %v2796_v23  ;;  %v2907_v19 = vsub.f32 0.0, %v2795_v45  ;;  %v2908_v58 = vsub.f32 0.0, %v2796_v23 }
 0x888   : > { %v2805_v14 = vmul.f32 0.3275911, %v2797_v15  ;;  %v2798_v33 = vand.u32 2147483647, %v4823_v32  ;;  %v4829_v39 = vmul.f32 0.70710677, %v4825_v56 }
 0x889   : > { %3572 = vrcp.f32 %v2811_v54  ;;  %v2812_v47 = vadd.f32 1.0, %v2804_v53  ;;  %v2915_v43 = vmul.f32 %v2907_v19, %v2795_v45  ;;  %v2909_v0 = vsub.f32 0.0, %v2797_v15 }
 0x88a   : > { %v2813_v13 = vadd.f32 1.0, %v2805_v14  ;;  %v2806_v8 = vmul.f32 0.3275911, %v2798_v33  ;;  %v2799_v38 = vand.u32 2147483647, %v4829_v39  ;;  %v2912_v54 = vmul.f32 %v2904_v62, %v4786_v40 }
 0x88b   : > { %3574 = vrcp.f32 %v2812_v47  ;;  %v2910_v1 = vsub.f32 0.0, %v2798_v33  ;;  %v2905_v47 = vsub.f32 0.0, %v4795_v63  ;;  %v2924_v14 = vmul.f32 1.442695, %v2914_v59 }
 0x88c   : > { %3576 = vrcp.f32 %v2813_v13  ;;  %v2814_v6 = vadd.f32 1.0, %v2806_v8  ;;  %v2807_v5 = vmul.f32 0.3275911, %v2799_v38  ;;  %v2916_v2 = vmul.f32 %v2908_v58, %v2796_v23 }
 0x88d   : > { %v2926_v8 = vmul.f32 1.442695, %v2915_v43  ;;  %v2918_v40 = vmul.f32 %v2910_v1, %v2798_v33  ;;  %v2913_v62 = vmul.f32 %v2905_v47, %v4795_v63  ;;  %vm2782_vm7 = vcmp.ge.f32.partialorder %v4823_v32, 0.0 }
 0x88e   : > { %3578 = vrcp.f32 %v2814_v6  ;;  %v2815_v27 = vadd.f32 1.0, %v2807_v5  ;;  %v2911_v5 = vsub.f32 0.0, %v2799_v38  ;;  %vm2781_vm8 = vcmp.ge.f32.partialorder %v4816_v11, 0.0 }
 0x88f   : > { %v4831_v46 = vpop.eup %3566  ;;  %vm2783_vm10 = vcmp.ge.f32.partialorder %v4829_v39, 0.0 }
 0x890   : > { %v2832_v35 = vmul.f32 1.0614054, %v4831_v46  ;;  %3580 = vrcp.f32 %v2815_v27 }
 0x891   : > { %v4834_v42 = vpop.eup %3568  ;;  %3582 = vpow2.f32 %v2924_v14 }
 0x892   : > { %v2833_v50 = vmul.f32 1.0614054, %v4834_v42  ;;  %v2840_v9 = vadd.f32 -1.4531521, %v2832_v35  ;;  %v2917_v35 = vmul.f32 %v2909_v0, %v2797_v15  ;;  %3584 = vpow2.f32 %v2926_v8 }
 0x893   : > { %v4837_v34 = vpop.eup %3570  ;;  %v2919_v0 = vmul.f32 %v2911_v5, %v2799_v38 }
 0x894   : > { %v2834_v41 = vmul.f32 1.0614054, %v4837_v34  ;;  %v2841_v49 = vadd.f32 -1.4531521, %v2833_v50  ;;  %v2848_v36 = vmul.f32 %v4831_v46, %v2840_v9  ;;  %v2930_v15 = vmul.f32 1.442695, %v2917_v35 }
 0x895   : > { %v2934_v8 = vmul.f32 1.442695, %v2919_v0 }
 0x896   : > { %v4842_v48 = vpop.eup %3572  ;;  %v2842_v55 = vadd.f32 -1.4531521, %v2834_v41  ;;  %v2849_v25 = vmul.f32 %v4834_v42, %v2841_v49  ;;  %v2856_v50 = vadd.f32 1.4214138, %v2848_v36  ;;  %v2920_v41 = vmul.f32 1.442695, %v2912_v54 }
 0x897   : > { %v2835_v37 = vmul.f32 1.0614054, %v4842_v48  ;;  %v2928_v49 = vmul.f32 1.442695, %v2916_v2  ;;  %v2922_v54 = vmul.f32 1.442695, %v2913_v62 }
 0x898   : > { %v2850_v22 = vmul.f32 %v4837_v34, %v2842_v55  ;;  %v4850_v13 = vpop.eup %3574  ;;  %v2857_v19 = vadd.f32 1.4214138, %v2849_v25  ;;  %v2864_v63 = vmul.f32 %v4831_v46, %v2856_v50  ;;  %v2932_v25 = vmul.f32 1.442695, %v2918_v40 }
 0x899   : > { %v2843_v53 = vadd.f32 -1.4531521, %v2835_v37  ;;  %v2836_v18 = vmul.f32 1.0614054, %v4850_v13  ;;  %v4854_v9 = vpop.eup %3576  ;;  %3586 = vpow2.f32 %v2928_v49 }
 0x89a   : > { %v2858_v45 = vadd.f32 1.4214138, %v2850_v22  ;;  %v2837_v59 = vmul.f32 1.0614054, %v4854_v9  ;;  %v2865_v37 = vmul.f32 %v4834_v42, %v2857_v19  ;;  %3588 = vpow2.f32 %v2930_v15 }
 0x89b   : > { %v2851_v6 = vmul.f32 %v4842_v48, %v2843_v53  ;;  %v2844_v23 = vadd.f32 -1.4531521, %v2836_v18  ;;  %v4860_v43 = vpop.eup %3578  ;;  %v2872_v18 = vadd.f32 -0.28449672, %v2864_v63  ;;  %3590 = vpow2.f32 %v2932_v25 }
 0x89c   : > { %v2866_v55 = vmul.f32 %v4837_v34, %v2858_v45  ;;  %v2838_v22 = vmul.f32 1.0614054, %v4860_v43  ;;  %v2845_v36 = vadd.f32 -1.4531521, %v2837_v59  ;;  %3592 = vpow2.f32 %v2922_v54 }
 0x89d   : > { %v2859_v27 = vadd.f32 1.4214138, %v2851_v6  ;;  %v2852_v33 = vmul.f32 %v4850_v13, %v2844_v23  ;;  %v4866_v47 = vpop.eup %3580  ;;  %v2873_v6 = vadd.f32 -0.28449672, %v2865_v37  ;;  %3594 = vpow2.f32 %v2920_v41 }
 0x89e   : > { %v2874_v14 = vadd.f32 -0.28449672, %v2866_v55  ;;  %v2846_v2 = vadd.f32 -1.4531521, %v2838_v22  ;;  %v2853_v45 = vmul.f32 %v4854_v9, %v2845_v36  ;;  %v2839_v35 = vmul.f32 1.0614054, %v4866_v47  ;;  %v3583_v22 = vpop.eup %3582 }
 0x89f   : > { %v2867_v58 = vmul.f32 %v4842_v48, %v2859_v27  ;;  %v2860_v1 = vadd.f32 1.4214138, %v2852_v33  ;;  %3596 = vpow2.f32 %v2934_v8  ;;  %v2881_v59 = vmul.f32 %v4834_v42, %v2873_v6 }
 0x8a0   : > { %v2854_v5 = vmul.f32 %v4860_v43, %v2846_v2  ;;  %v2861_v19 = vadd.f32 1.4214138, %v2853_v45  ;;  %v2847_v40 = vadd.f32 -1.4531521, %v2839_v35  ;;  %v2882_v62 = vmul.f32 %v4837_v34, %v2874_v14  ;;  %v3585_v14 = vpop.eup %3584 }
 0x8a1   : > { %v2875_v53 = vadd.f32 -0.28449672, %v2867_v58  ;;  %v2868_v38 = vmul.f32 %v4850_v13, %v2860_v1  ;;  %v2880_v58 = vmul.f32 %v4831_v46, %v2872_v18 }
 0x8a2   : > { %v2862_v23 = vadd.f32 1.4214138, %v2854_v5  ;;  %v2869_v49 = vmul.f32 %v4854_v9, %v2861_v19  ;;  %v2855_v15 = vmul.f32 %v4866_v47, %v2847_v40  ;;  %v2890_v25 = vadd.f32 0.2548296, %v2882_v62 }
 0x8a3   : > { %v2876_v50 = vadd.f32 -0.28449672, %v2868_v38  ;;  %v2883_v27 = vmul.f32 %v4842_v48, %v2875_v53  ;;  %v2889_v53 = vadd.f32 0.2548296, %v2881_v59  ;;  %v2888_v2 = vadd.f32 0.2548296, %v2880_v58 }
 0x8a4   : > { %v2870_v33 = vmul.f32 %v4860_v43, %v2862_v23  ;;  %v2877_v0 = vadd.f32 -0.28449672, %v2869_v49  ;;  %v2863_v63 = vadd.f32 1.4214138, %v2855_v15  ;;  %v2898_v5 = vmul.f32 %v4837_v34, %v2890_v25 }
 0x8a5   : > { %v2884_v55 = vmul.f32 %v4850_v13, %v2876_v50  ;;  %v2891_v41 = vadd.f32 0.2548296, %v2883_v27  ;;  %v2897_v62 = vmul.f32 %v4834_v42, %v2889_v53  ;;  %v2896_v23 = vmul.f32 %v4831_v46, %v2888_v2 }
 0x8a6   : > { %v2878_v36 = vadd.f32 -0.28449672, %v2870_v33  ;;  %v2885_v54 = vmul.f32 %v4854_v9, %v2877_v0  ;;  %v2871_v1 = vmul.f32 %v4866_v47, %v2863_v63  ;;  %v3587_v18 = vpop.eup %3586  ;;  %v3672_v25 = vmov -1.0  }
 0x8a7   : > { %v2892_v37 = vadd.f32 0.2548296, %v2884_v55  ;;  %v2899_v6 = vmul.f32 %v4842_v48, %v2891_v41  ;;  %v3589_v40 = vpop.eup %3588  ;;  %v2788_v53 = vsel %vm2780_vm9, 1.0, %v3672_v25  ;;  %v2786_v39 = vsel %vm2778_vm11, 1.0, %v3672_v25 }
 0x8a8   : > { %v2886_v38 = vmul.f32 %v4860_v43, %v2878_v36  ;;  %v2893_v8 = vadd.f32 0.2548296, %v2885_v54  ;;  %v2879_v35 = vadd.f32 -0.28449672, %v2871_v1  ;;  %v3591_v15 = vpop.eup %3590  ;;  %v2784_v7 = vsel %vm2776_vm4, 1.0, %v3672_v25 }
 0x8a9   : > { %v2900_v45 = vmul.f32 %v4850_v13, %v2892_v37  ;;  %v2939_v48 = vmul.f32 %v3585_v14, %v2899_v6  ;;  %v3593_v59 = vpop.eup %3592  ;;  %v2785_v11 = vsel %vm2777_vm5, 1.0, %v3672_v25 }
 0x8aa   : > { %v2894_v19 = vadd.f32 0.2548296, %v2886_v38  ;;  %v2901_v50 = vmul.f32 %v4854_v9, %v2893_v8  ;;  %v2887_v27 = vmul.f32 %v4866_v47, %v2879_v35  ;;  %v2938_v9 = vmul.f32 %v3583_v22, %v2898_v5  ;;  %v3595_v58 = vpop.eup %3594 }
 0x8ab   : > { %v2940_v13 = vmul.f32 %v3587_v18, %v2900_v45  ;;  %v2937_v33 = vmul.f32 %v3593_v59, %v2897_v62  ;;  %v2936_v37 = vmul.f32 %v3595_v58, %v2896_v23  ;;  %v2790_v22 = vsel %vm2782_vm7, 1.0, %v3672_v25 }
 0x8ac   : > { %v2902_v49 = vmul.f32 %v4860_v43, %v2894_v19  ;;  %v2941_v55 = vmul.f32 %v3589_v40, %v2901_v50  ;;  %v2895_v34 = vadd.f32 0.2548296, %v2887_v27  ;;  %v3597_v0 = vpop.eup %3596  ;;  %v2947_v32 = vsub.f32 1.0, %v2939_v48 }
 0x8ad   : > { %v2948_v63 = vsub.f32 1.0, %v2940_v13  ;;  %v2946_v54 = vsub.f32 1.0, %v2938_v9  ;;  %v2945_v45 = vsub.f32 1.0, %v2937_v33  ;;  %v2944_v44 = vsub.f32 1.0, %v2936_v37 }
 0x8ae   : > { %v2942_v42 = vmul.f32 %v3591_v15, %v2902_v49  ;;  %v2903_v46 = vmul.f32 %v4866_v47, %v2895_v34  ;;  %v2949_v43 = vsub.f32 1.0, %v2941_v55  ;;  %v2789_v47 = vsel %vm2781_vm8, 1.0, %v3672_v25 }
 0x8af   : > { %v2787_v38 = vsel %vm2779_vm6, 1.0, %v3672_v25  ;;  %v2956_v8 = vmul.f32 %v2948_v63, %v2788_v53  ;;  %v2791_v35 = vsel %vm2783_vm10, 1.0, %v3672_v25  ;;  %v2954_v5 = vmul.f32 %v2946_v54, %v2786_v39 }
 0x8b0   : > { %v2950_v41 = vsub.f32 1.0, %v2942_v42  ;;  %v2943_v36 = vmul.f32 %v3597_v0, %v2903_v46  ;;  %v2957_v2 = vmul.f32 %v2949_v43, %v2789_v47  ;;  %v2955_v18 = vmul.f32 %v2947_v32, %v2787_v38  ;;  %v2987_v0 = vpop.permute.xlu0 %2986 }
 0x8b1   : > { %v2767_v50 = vmul.f32 0.5, %v4825_v56  ;;  %v2953_v62 = vmul.f32 %v2945_v45, %v2785_v11  ;;  %v2952_v30 = vmul.f32 %v2944_v44, %v2784_v7  ;;  %v2964_v23 = vadd.f32 1.0, %v2956_v8 }
 0x8b2   : > { %v2958_v1 = vmul.f32 %v2950_v41, %v2790_v22  ;;  %v2951_v14 = vsub.f32 1.0, %v2943_v36  ;;  %v2965_v27 = vadd.f32 1.0, %v2957_v2  ;;  %v2766_v13 = vmul.f32 0.5, %v4819_v17  ;;  %v2992_v36 = vpop.permute.xlu1 %2991 }
 0x8b3   : > { %v2765_v49 = vmul.f32 0.5, %v4810_v31  ;;  %v2963_v15 = vadd.f32 1.0, %v2955_v18  ;;  %v2962_v24 = vadd.f32 1.0, %v2954_v5  ;;  %v2764_v34 = vmul.f32 0.5, %v4808_v29 }
 0x8b4   : > { %v2959_v6 = vmul.f32 %v2951_v14, %v2791_v35  ;;  %v2966_v19 = vadd.f32 1.0, %v2958_v1  ;;  %v2763_v48 = vmul.f32 0.5, %v4800_v4  ;;  %v2961_v56 = vadd.f32 1.0, %v2953_v62  ;;  %v2976_v4 = vld [vmem:[%s5013_s11] sm:$0xff]  ;;  %v2997_v14 = vpop.permute.xlu0 %2996 }
 0x8b5   : > { %v2973_v59 = vmul.f32 %v2965_v27, %v2765_v49  ;;  %v2960_v9 = vadd.f32 1.0, %v2952_v30  ;;  %v2762_v42 = vmul.f32 0.5, %v4791_v60  ;;  %v2972_v58 = vmul.f32 %v2964_v23, %v2764_v34  ;;  %v2979_v60 = vld [vmem:[%s5013_s11 + $0x18] sm:$0xff] }
 0x8b6   : > { %v2967_v40 = vadd.f32 1.0, %v2959_v6  ;;  %v2974_v28 = vmul.f32 %v2966_v19, %v2766_v13  ;;  %v2761_v17 = vmul.f32 0.5, %v4783_v3  ;;  %v2971_v31 = vmul.f32 %v2963_v15, %v2763_v48  ;;  %v2978_v3 = vld [vmem:[%s5013_s11 + $0x10] sm:$0xff]  ;;  %v3002_v8 = vpop.permute.xlu1 %3001 }
 0x8b7   : > { %v2760_v46 = vmul.f32 0.5, %v4778_v51  ;;  %v2970_v43 = vmul.f32 %v2962_v24, %v2762_v42  ;;  %v2977_v51 = vld [vmem:[%s5013_s11 + $0x8] sm:$0xff] }
 0x8b8   : > { %v2975_v55 = vmul.f32 %v2967_v40, %v2767_v50  ;;  %v2969_v29 = vmul.f32 %v2961_v56, %v2761_v17 }
 0x8b9   : > { %v2968_v33 = vmul.f32 %v2960_v9, %v2760_v46 }
 0x8ba   : > { %3040 = vmatprep.subr.mxu0 %v2975_v55 }
 0x8bb   : > { %3041 = vmatpush1.msra.mxu0 %v2974_v28 }
 0x8bc   : > { %3042 = vmatprep.subr.mxu0 %v2973_v59 }
 0x8bd   : > { %3043 = vmatpush1.msra.mxu0 %v2972_v58 }
 0x8be   : > { %3044 = vmatprep.subr.mxu0 %v2971_v31 }
 0x8bf   : > { %3045 = vmatpush1.msra.mxu0 %v2970_v43 }
 0x8c0   : > { %3046 = vmatprep.subr.mxu0 %v2969_v29 }
 0x8c1   : > { %3047 = vmatpush1.msra.mxu0 %v2968_v33 }
 0x8c2   : > { %3277 = vmatmul.mubr.msk.f32.vlgmr.msra.gmra.mxu0 %vm663_vm0, %v2976_v4 }
 0x8c3   : > { %3086 = vmatprep.mubr.f32.mxu0 %v5085_v52 }
 0x8c6   : > { %3278 = vmatmul.mubr.msk.f32.gmra.mxu0 %vm663_vm0, %v2977_v51 }
 0x8c7   : > { %3092 = vmatprep.mubr.f32.mxu0 %v5085_v52 }
 0x8ca   : > { %3279 = vmatmul.mubr.msk.f32.gmra.mxu0 %vm663_vm0, %v2978_v3 }
 0x8cb   : > { %3098 = vmatprep.mubr.f32.mxu0 %v5085_v52 }
 0x8ce   : > { %3280 = vmatmul.mubr.msk.f32.gmra.mxu0 %vm663_vm0, %v2979_v60 }
 0x982   : > { %v3082_v37 = vpop.f32.mrf.mxu0 }
 0x983   : > { %v3083_v63 = vadd.f32 %v3082_v37, %v2987_v0 }
 0x984   : > { %v3084_v41 = vpop.f32.mrf.mxu0 }
 0x985   : > { %v3105_v25 = vadd.f32 %v3083_v63, %v4720_v10  ;;  %v3085_v22 = vadd.f32 %v3084_v41, %v2987_v0 }
 0x986   : > { %v3088_v32 = vpop.f32.mrf.mxu0 }
 0x987   : > { %3113 = vst [vmem:[%s3977_s17] sm:$0xff] %v3105_v25  ;;  %v3106_v52 = vadd.f32 %v3085_v22, %v4729_v61  ;;  %v3089_v54 = vadd.f32 %v3088_v32, %v2992_v36 }
 0x988   : > { %v3090_v47 = vpop.f32.mrf.mxu0 }
 0x989   : > { %3114 = vst [vmem:[%s3977_s17 + $0x8] sm:$0xff] %v3106_v52  ;;  %v3107_v1 = vadd.f32 %v3089_v54, %v4723_v12  ;;  %v3091_v53 = vadd.f32 %v3090_v47, %v2992_v36 }
 0x98a   : > { %v3094_v2 = vpop.f32.mrf.mxu0 }
 0x98b   : > { %3115 = vst [vmem:[%s3977_s17 + $0x10] sm:$0xff] %v3107_v1  ;;  %v3108_v10 = vadd.f32 %v3091_v53, %v4734_v20  ;;  %v3095_v45 = vadd.f32 %v3094_v2, %v2997_v14 }
 0x98c   : > { %v3096_v44 = vpop.f32.mrf.mxu0 }
 0x98d   : > { %3116 = vst [vmem:[%s3977_s17 + $0x18] sm:$0xff] %v3108_v10  ;;  %v3109_v61 = vadd.f32 %v3095_v45, %v4726_v57  ;;  %v3097_v38 = vadd.f32 %v3096_v44, %v2997_v14 }
 0x98e   : > { %v3100_v12 = vpop.f32.mrf.mxu0 }
 0x98f   : > { %3117 = vst [vmem:[%s3977_s17 + $0x20] sm:$0xff] %v3109_v61  ;;  %v3110_v35 = vadd.f32 %v3097_v38, %v4737_v16  ;;  %v3101_v39 = vadd.f32 %v3100_v12, %v3002_v8 }
 0x990   : > { %v3102_v6 = vpop.f32.mrf.mxu0 }
 0x991   : > { %3118 = vst [vmem:[%s3977_s17 + $0x28] sm:$0xff] %v3110_v35  ;;  %v3111_v20 = vadd.f32 %v3101_v39, %v4740_v26  ;;  %v3103_v18 = vadd.f32 %v3102_v6, %v3002_v8 }
 0x993   : > { %3119 = vst [vmem:[%s3977_s17 + $0x30] sm:$0xff] %v3111_v20  ;;  %v3112_v57 = vadd.f32 %v3103_v18, %v4747_v21 }
 0x995   : > { %3120 = vst [vmem:[%s3977_s17 + $0x38] sm:$0xff] %v3112_v57 }
 0x996   : > { %3611 = shalt.err (!%p3608_p4)
}
 0x997   : > { %s3612_s21 = scalar_lea.hbm %s4953_s19, 1024  ;;  %s3616_s27 = scalar_lea.hbm %s5015_s13, 2048 }
 0x998   : > { %p3613_p7 = scmp.ne.s32.totalorder %s4953_s19, %s3612_s21  ;;  %p3617_p10 = scmp.lt.s32.totalorder %s4953_s19, %s5015_s13 }
 0x999   : > { %p3618_p11 = scmp.lt.s32.totalorder %s3616_s27, %s3612_s21 }
 0x99a   : > { %p3614_p8 = pnand %p3613_p7, %p3784_p5 }
 0x99b   : > { %p3619_p12 = por %p3618_p11, %p3617_p10 }
 0x99c   : > { %p3615_p9 = pneg %p3614_p8 }
 0x99e   : > { %p3620_p13 = pnand %p3619_p12, %p3615_p9 }
 0x9a0   : > { %3623 = shalt.err (!%p3620_p13)
}
 0x9a1   : > { %s3674_s15 = smov 256   ;;  %s3675_s14 = smov 16  }
 0x9a2   : > { %3308 = dma.vmem_to_hbm [thread:$0]  (%p3784_p5), %s4955_s22, 1024, %s4953_s19, %s4962_s29, %s3674_s15, %s3674_s15, %s3675_s14  }
 0x9a3 PF: > { %p3314_p0 = scmp.ge.s32.totalorder %s3662_s28, 2  ;;  %s3150_s24 = sand.u32 1, %s3650_s25  }
 0x9a4   : > { %s3151_s21 = scalar_lea.sflag [#allocation5], %s3150_s24 }
 0x9a5   : > { %p3311_p1 = pnand %p3314_p0, %p3788_p6 }
 0x9a7   : > { %p3312_p2 = pneg %p3311_p1 }
 0x9a9   : > { %3645 = dma.done.wait (%p3312_p2), %s3151_s21, 1024  }
 0x9aa   : > { %3647 = vsyncadd (%p3312_p2), %s3151_s21, 4294966272  ;;  %s5096_s28 = sld [smem:[#allocation8_spill]]  ;;  %s5099_s25 = smov %s3654_s26 }
 0x9ab   : > { %s5097_s17 = sld [smem:[#allocation7_spill]] }
 0x9ac   : > { %s5098_s27 = sld [smem:[#allocation9_spill]] }
 0x9b0   : > { %p23_p3 = scmp.ge.s32.totalorder %s5096_s28, 4  }
 0x9b1   : > { %s5100_s26 = smov %s5097_s17 }
 0x9b2   :  { %25 = sbr.rel (!%p23_p3) target bundleno = 3 (0x3), region = 129 }
 0x9b7   :  { %3156 = vsyncpa [#allocation5], 1 }
 0x9b8   :  { %3158 = vsyncpa [#allocation5 + $0x1], 1 }

</bundles_post_ra>
